<compile_context>
chip_gen: v7x
topology: tpu7x:2x2x1
jax: 0.10.0
libtpu: 0.0.40
codegen_flags: <defaults>
</compile_context>

<pallas_src>
import functools

import jax
import jax.numpy as jnp
from jax.experimental import pallas as pl
from jax.experimental.pallas import tpu as pltpu


_SQRT_HALF = 0.7071067811865476


# ----------------------------------------------------------------------------
# In-kernel math helpers
# ----------------------------------------------------------------------------
def _erf(z, *, approx_recip):
    """Abramowitz & Stegun 7.1.26 erf approximation (max abs err ~1.5e-7)."""
    p = 0.3275911
    a1, a2, a3, a4, a5 = (0.254829592, -0.284496736, 1.421413741,
                          -1.453152027, 1.061405429)
    s = jnp.where(z >= 0.0, 1.0, -1.0)
    az = jnp.abs(z)
    denom = 1.0 + p * az
    if approx_recip:
        # EUP slot (otherwise idle) -> frees VALU; only used on the bf16 path.
        t = pl.reciprocal(denom, approx=True)
    else:
        t = 1.0 / denom
    poly = t * (a1 + t * (a2 + t * (a3 + t * (a4 + t * a5))))
    return s * (1.0 - poly * jnp.exp(-az * az))


def _gelu_exact(x, *, approx_recip):
    """PyTorch nn.GELU() default: x * 0.5 * (1 + erf(x / sqrt(2)))."""
    return 0.5 * x * (1.0 + _erf(x * _SQRT_HALF, approx_recip=approx_recip))


# ----------------------------------------------------------------------------
# Fused MLP kernel.  Grid = (M tiles, hidden chunks); the hidden axis is a
# reduction for fc2, accumulated in a resident f32 VMEM scratch.
# ----------------------------------------------------------------------------
def _mlp_kernel(x_ref, w1_ref, b1_ref, w2_ref, b2_ref, o_ref, acc_ref,
                *, approx_recip):
    j = pl.program_id(1)

    @pl.when(j == 0)
    def _():
        acc_ref[...] = jnp.zeros_like(acc_ref)

    # fc1 for this hidden chunk: MXU matmul with f32 accumulation.
    h = jnp.dot(x_ref[...], w1_ref[...], preferred_element_type=jnp.float32)
    # bias + GELU in f32 (elementwise -> safe to do per hidden chunk).
    h = _gelu_exact(h + b1_ref[...], approx_recip=approx_recip)
    # fc2 partial product, accumulated in f32; W2 chunk stays in stored dtype.
    acc_ref[...] += jnp.dot(h.astype(w2_ref.dtype), w2_ref[...],
                            preferred_element_type=jnp.float32)

    @pl.when(j == pl.num_programs(1) - 1)
    def _():
        o_ref[...] = (acc_ref[...] + b2_ref[...]).astype(o_ref.dtype)


# ----------------------------------------------------------------------------
# Host-side wrapper
# ----------------------------------------------------------------------------
def _round_up(x, m):
    return (x + m - 1) // m * m


def _vmem_capacity_bytes():
    try:
        return int(pltpu.get_tpu_info().vmem_capacity_bytes)
    except Exception:
        return 64 * 1024 * 1024  # conservative (v7x) floor if query fails


def _estimate_vmem_bytes(tm, th, d_in, d_out, xb, w1b, w2b, ob):
    b = 2 * tm * d_in * xb           # x tile, double-buffered
    b += 2 * d_in * th * w1b         # w1 chunk
    b += 2 * th * 4                  # b1 chunk (f32)
    b += 2 * th * d_out * w2b        # w2 chunk
    b += 2 * d_out * 4               # b2
    b += 2 * tm * d_out * ob         # out tile, double-buffered
    b += tm * d_out * 4              # f32 accumulator scratch
    b += tm * th * (4 + w2b)         # hidden intermediate (f32 + cast copy)
    return b


def mlp_forward(x, params, *, tm=256, th=None, approx_gelu=None):
    """ViT Mlp forward: fc2(gelu(fc1(x))) as one fused Pallas kernel."""
    w1, b1, w2, b2 = params["w1"], params["b1"], params["w2"], params["b2"]
    d_in, hidden = w1.shape
    d_out = w2.shape[1]
    assert x.shape[-1] == d_in

    if approx_gelu is None:
        # Approx reciprocal only on the bf16 path; exact divide keeps the f32
        # path within a tight tolerance of PyTorch.
        approx_gelu = (x.dtype == jnp.bfloat16)

    lead = x.shape[:-1]
    m = 1
    for s in lead:
        m *= s
    x2 = x.reshape(m, d_in)

    xb = x.dtype.itemsize
    w1b = w1.dtype.itemsize
    w2b = w2.dtype.itemsize
    ob = x.dtype.itemsize

    # Row tile: bf16 packs 2 rows/sublane -> multiple of 16; f32 -> 8.
    sub = 16 if x.dtype == jnp.bfloat16 else 8
    tm = max(sub, min(tm, _round_up(m, sub)))
    tm = _round_up(tm, sub)

    # VMEM budget: ~3/4 of physical capacity (96 MiB v5e/v6e, 48 MiB v7x),
    # leaving headroom for Mosaic's own scratch.
    budget = (_vmem_capacity_bytes() * 3) // 4

    def fits(tm_, th_):
        return _estimate_vmem_bytes(tm_, th_, d_in, d_out,
                                    xb, w1b, w2b, ob) <= budget

    # Hidden tile: whole hidden if it fits (weights VMEM-resident, DMA'd once),
    # otherwise the largest 128-multiple divisor that fits the budget.
    if th is None:
        cands = [hidden] + [t for t in range(hidden - 128, 0, -128)
                            if hidden % t == 0]
        th = next((t for t in cands if fits(tm, t)), cands[-1])
    assert hidden % th == 0, (hidden, th)

    # Last resort: shrink the row tile if even the smallest hidden tile does
    # not fit (keeps very large configs compiling on v7x's 64 MiB VMEM).
    while tm > sub and not fits(tm, th):
        tm = max(sub, _round_up(tm // 2, sub))

    # Prefer a row tile that divides M exactly (avoids padding the whole
    # activation tensor through HBM); only accept divisors >= tm // 2.
    if m % tm != 0:
        for cand in range(tm, max(sub, tm // 2) - 1, -sub):
            if m % cand == 0:
                tm = cand
                break
    m_pad = _round_up(m, tm)
    if m_pad != m:
        x2 = jnp.pad(x2, ((0, m_pad - m), (0, 0)))

    h_tiles = hidden // th

    # Biases kept in f32 (bias add / GELU / accumulation are done in f32).
    b1_2 = b1.reshape(1, hidden).astype(jnp.float32)
    b2_2 = b2.reshape(1, d_out).astype(jnp.float32)

    kernel = functools.partial(_mlp_kernel, approx_recip=approx_gelu)

    def build(single_buffer_consts):
        def spec(shape, index_map, const):
            # Grid-invariant blocks gain nothing from double-buffering.
            if const and single_buffer_consts and hasattr(pl, "Buffered"):
                return pl.BlockSpec(shape, index_map,
                                    pipeline_mode=pl.Buffered(1))
            return pl.BlockSpec(shape, index_map)

        w_const = (h_tiles == 1)  # weight index_maps grid-invariant
        return pl.pallas_call(
            kernel,
            out_shape=jax.ShapeDtypeStruct((m_pad, d_out), x.dtype),
            grid=(m_pad // tm, h_tiles),
            in_specs=[
                # activations: tiled over M, constant over the hidden axis
                pl.BlockSpec((tm, d_in), lambda i, j: (i, 0)),
                # fc1 / fc2 weights and fc1 bias: tiled over the hidden axis
                spec((d_in, th), lambda i, j: (0, j), w_const),
                spec((1, th), lambda i, j: (0, j), w_const),
                spec((th, d_out), lambda i, j: (j, 0), w_const),
                # fc2 bias: always grid-invariant
                spec((1, d_out), lambda i, j: (0, 0), True),
            ],
            # lane-dense output, resident across the hidden axis (written only
            # at the last hidden step)
            out_specs=pl.BlockSpec((tm, d_out), lambda i, j: (i, 0)),
            scratch_shapes=[pltpu.VMEM((tm, d_out), jnp.float32)],
            compiler_params=pltpu.CompilerParams(
                dimension_semantics=("parallel", "arbitrary"),
                vmem_limit_bytes=budget,
            ),
        )

    try:
        out = build(True)(x2, w1, b1_2, w2, b2_2)
    except Exception:
        # pl.Buffered(1) not supported on this jax version -> default buffers.
        out = build(False)(x2, w1, b1_2, w2, b2_2)

    if m_pad != m:
        out = out[:m]
    return out.reshape(*lead, d_out)


# ----------------------------------------------------------------------------
# Demo / correctness check
# ----------------------------------------------------------------------------
if __name__ == "__main__":
    key = jax.random.PRNGKey(0)
    kx, k1, k2, k3, k4 = jax.random.split(key, 5)

    B, N = 2, 64                           # M = 128 token rows
    D_IN, HIDDEN, D_OUT = 256, 512, 256    # small but lane/MXU-aligned

    x = jax.random.normal(kx, (B, N, D_IN), jnp.float32)
    params = {
        "w1": 0.05 * jax.random.normal(k1, (D_IN, HIDDEN), jnp.float32),
        "b1": 0.05 * jax.random.normal(k2, (HIDDEN,), jnp.float32),
        "w2": 0.05 * jax.random.normal(k3, (HIDDEN, D_OUT), jnp.float32),
        "b2": 0.05 * jax.random.normal(k4, (D_OUT,), jnp.float32),
    }

    # pure-JAX reference: same math as PyTorch (erf-exact GELU), f32 matmuls
    xf = x.reshape(-1, D_IN)
    h_ref = jnp.dot(xf, params["w1"],
                    precision=jax.lax.Precision.HIGHEST) + params["b1"]
    h_ref = jax.nn.gelu(h_ref, approximate=False)
    ref = (jnp.dot(h_ref, params["w2"],
                   precision=jax.lax.Precision.HIGHEST)
           + params["b2"]).reshape(B, N, D_OUT)

    # --- 1) f32, forced multi-tile grid (2 row tiles x 2 hidden chunks):
    #        exercises the fc2 accumulator init/finalize path ----------------
    out = jax.block_until_ready(mlp_forward(x, params, tm=64, th=256))
    assert out.shape == (B, N, D_OUT), out.shape
    err = float(jnp.max(jnp.abs(out - ref)))
    assert jnp.allclose(out, ref, atol=5e-4, rtol=5e-4), err

    # --- 2) f32, auto tiling (whole hidden fits -> weights VMEM-resident) ---
    out2 = jax.block_until_ready(mlp_forward(x, params))
    assert jnp.allclose(out2, ref, atol=5e-4, rtol=5e-4), \
        float(jnp.max(jnp.abs(out2 - ref)))

    # --- 3) bf16 operands (MXU-native), f32 accumulation, approx-recip GELU -
    params_bf16 = dict(params,
                       w1=params["w1"].astype(jnp.bfloat16),
                       w2=params["w2"].astype(jnp.bfloat16))
    out_bf16 = jax.block_until_ready(
        mlp_forward(x.astype(jnp.bfloat16), params_bf16, tm=128))
    assert out_bf16.dtype == jnp.bfloat16
    assert jnp.allclose(out_bf16.astype(jnp.float32), ref,
                        atol=3e-2, rtol=3e-2), \
        float(jnp.max(jnp.abs(out_bf16.astype(jnp.float32) - ref)))

    print("KERNEL_OK")
</pallas_src>

<mosaic_0001>
module attributes {stable_mosaic.version = 11 : i64} {
  func.func @_mlp_kernel(%arg0: i32, %arg1: i32, %arg2: memref<64x256xf32, #tpu.memory_space<vmem>>, %arg3: memref<256x256xf32, #tpu.memory_space<vmem>>, %arg4: memref<1x256xf32, #tpu.memory_space<vmem>>, %arg5: memref<256x256xf32, #tpu.memory_space<vmem>>, %arg6: memref<1x256xf32, #tpu.memory_space<vmem>>, %arg7: memref<64x256xf32, #tpu.memory_space<vmem>>, %arg8: memref<64x256xf32, #tpu.memory_space<vmem>>) attributes {dimension_semantics = [#tpu.dimension_semantics<parallel>, #tpu.dimension_semantics<arbitrary>], iteration_bounds = array<i64: 2, 2>, scalar_prefetch = 0 : i64, scratch_operands = 1 : i64, tpu.core_type = #tpu.core_type<tc>, window_params = [{transform_indices = @transform_0, window_bounds = array<i64: 64, 256>}, {transform_indices = @transform_1, window_bounds = array<i64: 256, 256>}, {transform_indices = @transform_2, window_bounds = array<i64: 1, 256>}, {transform_indices = @transform_3, window_bounds = array<i64: 256, 256>}, {pipeline_mode = #tpu.pipeline_mode<synchronous>, transform_indices = @transform_4, window_bounds = array<i64: 1, 256>}, {transform_indices = @transform_5, window_bounds = array<i64: 64, 256>}]} {
    %c0_i32 = arith.constant 0 : i32
    %0 = arith.cmpi eq, %arg1, %c0_i32 : i32
    %1 = arith.extui %0 : i1 to i32
    %c0_i32_0 = arith.constant 0 : i32
    %2 = arith.cmpi ne, %1, %c0_i32_0 : i32
    scf.if %2 {
      %cst_30 = arith.constant 0.000000e+00 : f32
      %58 = vector.broadcast %cst_30 : f32 to vector<64x256xf32>
      %c0_31 = arith.constant 0 : index
      %c0_32 = arith.constant 0 : index
      %59 = vector.load %arg8[%c0_31, %c0_32] : memref<64x256xf32, #tpu.memory_space<vmem>>, vector<64x256xf32>
      tpu.vector_store %arg8[%c0_31, %c0_32], %58 {strides = array<i32>} : memref<64x256xf32, #tpu.memory_space<vmem>>, vector<64x256xf32>,
    } else {
    }
    %c0 = arith.constant 0 : index
    %c0_1 = arith.constant 0 : index
    %3 = vector.load %arg2[%c0, %c0_1] : memref<64x256xf32, #tpu.memory_space<vmem>>, vector<64x256xf32>
    %c0_2 = arith.constant 0 : index
    %c0_3 = arith.constant 0 : index
    %4 = vector.load %arg3[%c0_2, %c0_3] : memref<256x256xf32, #tpu.memory_space<vmem>>, vector<256x256xf32>
    %cst = arith.constant dense<0.000000e+00> : vector<64x256xf32>
    %5 = tpu.matmul %3, %4, %cst {dimension_numbers = #tpu.dot_dimension_numbers<[1], [0], [0], [1], [0, 0, 1, 1], [], []>} : vector<64x256xf32>, vector<256x256xf32>, vector<64x256xf32> -> vector<64x256xf32>
    %c0_4 = arith.constant 0 : index
    %c0_5 = arith.constant 0 : index
    %6 = vector.load %arg4[%c0_4, %c0_5] : memref<1x256xf32, #tpu.memory_space<vmem>>, vector<1x256xf32>
    %7 = vector.broadcast %6 : vector<1x256xf32> to vector<64x256xf32>
    %8 = arith.addf %5, %7 : vector<64x256xf32>
    %cst_6 = arith.constant 5.000000e-01 : f32
    %9 = vector.broadcast %cst_6 : f32 to vector<64x256xf32>
    %10 = arith.mulf %9, %8 : vector<64x256xf32>
    %cst_7 = arith.constant 0.707106769 : f32
    %11 = vector.broadcast %cst_7 : f32 to vector<64x256xf32>
    %12 = arith.mulf %8, %11 : vector<64x256xf32>
    %cst_8 = arith.constant 0.000000e+00 : f32
    %13 = vector.broadcast %cst_8 : f32 to vector<64x256xf32>
    %14 = arith.cmpf oge, %12, %13 : vector<64x256xf32>
    %cst_9 = arith.constant 1.000000e+00 : f32
    %cst_10 = arith.constant -1.000000e+00 : f32
    %15 = vector.broadcast %cst_9 : f32 to vector<64x256xf32>
    %16 = vector.broadcast %cst_10 : f32 to vector<64x256xf32>
    %17 = arith.select %14, %15, %16 : vector<64x256xi1>, vector<64x256xf32>
    %18 = math.absf %12 : vector<64x256xf32>
    %cst_11 = arith.constant 0.327591091 : f32
    %19 = vector.broadcast %cst_11 : f32 to vector<64x256xf32>
    %20 = arith.mulf %19, %18 : vector<64x256xf32>
    %cst_12 = arith.constant 1.000000e+00 : f32
    %21 = vector.broadcast %cst_12 : f32 to vector<64x256xf32>
    %22 = arith.addf %21, %20 : vector<64x256xf32>
    %cst_13 = arith.constant 1.000000e+00 : f32
    %23 = vector.broadcast %cst_13 : f32 to vector<64x256xf32>
    %24 = arith.divf %23, %22 : vector<64x256xf32>
    %cst_14 = arith.constant 1.06140542 : f32
    %25 = vector.broadcast %cst_14 : f32 to vector<64x256xf32>
    %26 = arith.mulf %24, %25 : vector<64x256xf32>
    %cst_15 = arith.constant -1.45315206 : f32
    %27 = vector.broadcast %cst_15 : f32 to vector<64x256xf32>
    %28 = arith.addf %27, %26 : vector<64x256xf32>
    %29 = arith.mulf %24, %28 : vector<64x256xf32>
    %cst_16 = arith.constant 1.42141378 : f32
    %30 = vector.broadcast %cst_16 : f32 to vector<64x256xf32>
    %31 = arith.addf %30, %29 : vector<64x256xf32>
    %32 = arith.mulf %24, %31 : vector<64x256xf32>
    %cst_17 = arith.constant -0.284496725 : f32
    %33 = vector.broadcast %cst_17 : f32 to vector<64x256xf32>
    %34 = arith.addf %33, %32 : vector<64x256xf32>
    %35 = arith.mulf %24, %34 : vector<64x256xf32>
    %cst_18 = arith.constant 0.254829586 : f32
    %36 = vector.broadcast %cst_18 : f32 to vector<64x256xf32>
    %37 = arith.addf %36, %35 : vector<64x256xf32>
    %38 = arith.mulf %24, %37 : vector<64x256xf32>
    %cst_19 = arith.constant 0.000000e+00 : f32
    %39 = vector.broadcast %cst_19 : f32 to vector<64x256xf32>
    %40 = arith.subf %39, %18 : vector<64x256xf32>
    %41 = arith.mulf %40, %18 : vector<64x256xf32>
    %42 = math.exp %41 : vector<64x256xf32>
    %43 = arith.mulf %38, %42 : vector<64x256xf32>
    %cst_20 = arith.constant 1.000000e+00 : f32
    %44 = vector.broadcast %cst_20 : f32 to vector<64x256xf32>
    %45 = arith.subf %44, %43 : vector<64x256xf32>
    %46 = arith.mulf %17, %45 : vector<64x256xf32>
    %cst_21 = arith.constant 1.000000e+00 : f32
    %47 = vector.broadcast %cst_21 : f32 to vector<64x256xf32>
    %48 = arith.addf %47, %46 : vector<64x256xf32>
    %49 = arith.mulf %10, %48 : vector<64x256xf32>
    %c0_22 = arith.constant 0 : index
    %c0_23 = arith.constant 0 : index
    %50 = vector.load %arg8[%c0_22, %c0_23] : memref<64x256xf32, #tpu.memory_space<vmem>>, vector<64x256xf32>
    %c0_24 = arith.constant 0 : index
    %c0_25 = arith.constant 0 : index
    %51 = vector.load %arg5[%c0_24, %c0_25] : memref<256x256xf32, #tpu.memory_space<vmem>>, vector<256x256xf32>
    %cst_26 = arith.constant dense<0.000000e+00> : vector<64x256xf32>
    %52 = tpu.matmul %49, %51, %cst_26 {dimension_numbers = #tpu.dot_dimension_numbers<[1], [0], [0], [1], [0, 0, 1, 1], [], []>} : vector<64x256xf32>, vector<256x256xf32>, vector<64x256xf32> -> vector<64x256xf32>
    %53 = arith.addf %50, %52 : vector<64x256xf32>
    %c0_27 = arith.constant 0 : index
    %c0_28 = arith.constant 0 : index
    %54 = vector.load %arg8[%c0_27, %c0_28] : memref<64x256xf32, #tpu.memory_space<vmem>>, vector<64x256xf32>
    tpu.vector_store %arg8[%c0_27, %c0_28], %53 {strides = array<i32>} : memref<64x256xf32, #tpu.memory_space<vmem>>, vector<64x256xf32>,
    %c1_i32 = arith.constant 1 : i32
    %55 = arith.cmpi eq, %arg1, %c1_i32 : i32
    %56 = arith.extui %55 : i1 to i32
    %c0_i32_29 = arith.constant 0 : i32
    %57 = arith.cmpi ne, %56, %c0_i32_29 : i32
    scf.if %57 {
      %c0_30 = arith.constant 0 : index
      %c0_31 = arith.constant 0 : index
      %58 = vector.load %arg8[%c0_30, %c0_31] : memref<64x256xf32, #tpu.memory_space<vmem>>, vector<64x256xf32>
      %c0_32 = arith.constant 0 : index
      %c0_33 = arith.constant 0 : index
      %59 = vector.load %arg6[%c0_32, %c0_33] : memref<1x256xf32, #tpu.memory_space<vmem>>, vector<1x256xf32>
      %60 = vector.broadcast %59 : vector<1x256xf32> to vector<64x256xf32>
      %61 = arith.addf %58, %60 : vector<64x256xf32>
      %c0_34 = arith.constant 0 : index
      %c0_35 = arith.constant 0 : index
      %62 = vector.load %arg7[%c0_34, %c0_35] : memref<64x256xf32, #tpu.memory_space<vmem>>, vector<64x256xf32>
      tpu.vector_store %arg7[%c0_34, %c0_35], %61 {strides = array<i32>} : memref<64x256xf32, #tpu.memory_space<vmem>>, vector<64x256xf32>,
    } else {
    }
    return
  }
  func.func @transform_0(%arg0: i32, %arg1: i32) -> (i32, i32) {
    %c0_i32 = arith.constant 0 : i32
    %c0_i32_0 = arith.constant 0 : i32
    return %arg0, %c0_i32 : i32, i32
  }
  func.func @transform_1(%arg0: i32, %arg1: i32) -> (i32, i32) {
    %c0_i32 = arith.constant 0 : i32
    %c0_i32_0 = arith.constant 0 : i32
    return %c0_i32, %arg1 : i32, i32
  }
  func.func @transform_2(%arg0: i32, %arg1: i32) -> (i32, i32) {
    %c0_i32 = arith.constant 0 : i32
    %c0_i32_0 = arith.constant 0 : i32
    return %c0_i32, %arg1 : i32, i32
  }
  func.func @transform_3(%arg0: i32, %arg1: i32) -> (i32, i32) {
    %c0_i32 = arith.constant 0 : i32
    %c0_i32_0 = arith.constant 0 : i32
    return %arg1, %c0_i32 : i32, i32
  }
  func.func @transform_4(%arg0: i32, %arg1: i32) -> (i32, i32) {
    %c0_i32 = arith.constant 0 : i32
    %c0_i32_0 = arith.constant 0 : i32
    %c0_i32_1 = arith.constant 0 : i32
    return %c0_i32, %c0_i32_0 : i32, i32
  }
  func.func @transform_5(%arg0: i32, %arg1: i32) -> (i32, i32) {
    %c0_i32 = arith.constant 0 : i32
    %c0_i32_0 = arith.constant 0 : i32
    return %arg0, %c0_i32 : i32, i32
  }
}

module attributes {stable_mosaic.version = 11 : i64} {
  func.func @_mlp_kernel(%arg0: i32, %arg1: i32, %arg2: memref<64x256xf32, #tpu.memory_space<vmem>>, %arg3: memref<256x256xf32, #tpu.memory_space<vmem>>, %arg4: memref<1x256xf32, #tpu.memory_space<vmem>>, %arg5: memref<256x256xf32, #tpu.memory_space<vmem>>, %arg6: memref<1x256xf32, #tpu.memory_space<vmem>>, %arg7: memref<64x256xf32, #tpu.memory_space<vmem>>, %arg8: memref<64x256xf32, #tpu.memory_space<vmem>>) attributes {dimension_semantics = [#tpu.dimension_semantics<parallel>, #tpu.dimension_semantics<arbitrary>], iteration_bounds = array<i64: 2, 2>, scalar_prefetch = 0 : i64, scratch_operands = 1 : i64, tpu.core_type = #tpu.core_type<tc>, window_params = [{transform_indices = @transform_0, window_bounds = array<i64: 64, 256>}, {transform_indices = @transform_1, window_bounds = array<i64: 256, 256>}, {transform_indices = @transform_2, window_bounds = array<i64: 1, 256>}, {transform_indices = @transform_3, window_bounds = array<i64: 256, 256>}, {pipeline_mode = #tpu.pipeline_mode<synchronous>, transform_indices = @transform_4, window_bounds = array<i64: 1, 256>}, {transform_indices = @transform_5, window_bounds = array<i64: 64, 256>}]} {
    %c0_i32 = arith.constant 0 : i32
    %0 = arith.cmpi eq, %arg1, %c0_i32 : i32
    %1 = arith.extui %0 : i1 to i32
    %c0_i32_0 = arith.constant 0 : i32
    %2 = arith.cmpi ne, %1, %c0_i32_0 : i32
    scf.if %2 {
      %cst_30 = arith.constant 0.000000e+00 : f32
      %58 = vector.broadcast %cst_30 : f32 to vector<64x256xf32>
      %c0_31 = arith.constant 0 : index
      %c0_32 = arith.constant 0 : index
      %59 = vector.load %arg8[%c0_31, %c0_32] : memref<64x256xf32, #tpu.memory_space<vmem>>, vector<64x256xf32>
      tpu.vector_store %arg8[%c0_31, %c0_32], %58 {strides = array<i32>} : memref<64x256xf32, #tpu.memory_space<vmem>>, vector<64x256xf32>,
    } else {
    }
    %c0 = arith.constant 0 : index
    %c0_1 = arith.constant 0 : index
    %3 = vector.load %arg2[%c0, %c0_1] : memref<64x256xf32, #tpu.memory_space<vmem>>, vector<64x256xf32>
    %c0_2 = arith.constant 0 : index
    %c0_3 = arith.constant 0 : index
    %4 = vector.load %arg3[%c0_2, %c0_3] : memref<256x256xf32, #tpu.memory_space<vmem>>, vector<256x256xf32>
    %cst = arith.constant dense<0.000000e+00> : vector<64x256xf32>
    %5 = tpu.matmul %3, %4, %cst {dimension_numbers = #tpu.dot_dimension_numbers<[1], [0], [0], [1], [0, 0, 1, 1], [], []>} : vector<64x256xf32>, vector<256x256xf32>, vector<64x256xf32> -> vector<64x256xf32>
    %c0_4 = arith.constant 0 : index
    %c0_5 = arith.constant 0 : index
    %6 = vector.load %arg4[%c0_4, %c0_5] : memref<1x256xf32, #tpu.memory_space<vmem>>, vector<1x256xf32>
    %7 = vector.broadcast %6 : vector<1x256xf32> to vector<64x256xf32>
    %8 = arith.addf %5, %7 : vector<64x256xf32>
    %cst_6 = arith.constant 5.000000e-01 : f32
    %9 = vector.broadcast %cst_6 : f32 to vector<64x256xf32>
    %10 = arith.mulf %9, %8 : vector<64x256xf32>
    %cst_7 = arith.constant 0.707106769 : f32
    %11 = vector.broadcast %cst_7 : f32 to vector<64x256xf32>
    %12 = arith.mulf %8, %11 : vector<64x256xf32>
    %cst_8 = arith.constant 0.000000e+00 : f32
    %13 = vector.broadcast %cst_8 : f32 to vector<64x256xf32>
    %14 = arith.cmpf oge, %12, %13 : vector<64x256xf32>
    %cst_9 = arith.constant 1.000000e+00 : f32
    %cst_10 = arith.constant -1.000000e+00 : f32
    %15 = vector.broadcast %cst_9 : f32 to vector<64x256xf32>
    %16 = vector.broadcast %cst_10 : f32 to vector<64x256xf32>
    %17 = arith.select %14, %15, %16 : vector<64x256xi1>, vector<64x256xf32>
    %18 = math.absf %12 : vector<64x256xf32>
    %cst_11 = arith.constant 0.327591091 : f32
    %19 = vector.broadcast %cst_11 : f32 to vector<64x256xf32>
    %20 = arith.mulf %19, %18 : vector<64x256xf32>
    %cst_12 = arith.constant 1.000000e+00 : f32
    %21 = vector.broadcast %cst_12 : f32 to vector<64x256xf32>
    %22 = arith.addf %21, %20 : vector<64x256xf32>
    %cst_13 = arith.constant 1.000000e+00 : f32
    %23 = vector.broadcast %cst_13 : f32 to vector<64x256xf32>
    %24 = arith.divf %23, %22 : vector<64x256xf32>
    %cst_14 = arith.constant 1.06140542 : f32
    %25 = vector.broadcast %cst_14 : f32 to vector<64x256xf32>
    %26 = arith.mulf %24, %25 : vector<64x256xf32>
    %cst_15 = arith.constant -1.45315206 : f32
    %27 = vector.broadcast %cst_15 : f32 to vector<64x256xf32>
    %28 = arith.addf %27, %26 : vector<64x256xf32>
    %29 = arith.mulf %24, %28 : vector<64x256xf32>
    %cst_16 = arith.constant 1.42141378 : f32
    %30 = vector.broadcast %cst_16 : f32 to vector<64x256xf32>
    %31 = arith.addf %30, %29 : vector<64x256xf32>
    %32 = arith.mulf %24, %31 : vector<64x256xf32>
    %cst_17 = arith.constant -0.284496725 : f32
    %33 = vector.broadcast %cst_17 : f32 to vector<64x256xf32>
    %34 = arith.addf %33, %32 : vector<64x256xf32>
    %35 = arith.mulf %24, %34 : vector<64x256xf32>
    %cst_18 = arith.constant 0.254829586 : f32
    %36 = vector.broadcast %cst_18 : f32 to vector<64x256xf32>
    %37 = arith.addf %36, %35 : vector<64x256xf32>
    %38 = arith.mulf %24, %37 : vector<64x256xf32>
    %cst_19 = arith.constant 0.000000e+00 : f32
    %39 = vector.broadcast %cst_19 : f32 to vector<64x256xf32>
    %40 = arith.subf %39, %18 : vector<64x256xf32>
    %41 = arith.mulf %40, %18 : vector<64x256xf32>
    %42 = math.exp %41 : vector<64x256xf32>
    %43 = arith.mulf %38, %42 : vector<64x256xf32>
    %cst_20 = arith.constant 1.000000e+00 : f32
    %44 = vector.broadcast %cst_20 : f32 to vector<64x256xf32>
    %45 = arith.subf %44, %43 : vector<64x256xf32>
    %46 = arith.mulf %17, %45 : vector<64x256xf32>
    %cst_21 = arith.constant 1.000000e+00 : f32
    %47 = vector.broadcast %cst_21 : f32 to vector<64x256xf32>
    %48 = arith.addf %47, %46 : vector<64x256xf32>
    %49 = arith.mulf %10, %48 : vector<64x256xf32>
    %c0_22 = arith.constant 0 : index
    %c0_23 = arith.constant 0 : index
    %50 = vector.load %arg8[%c0_22, %c0_23] : memref<64x256xf32, #tpu.memory_space<vmem>>, vector<64x256xf32>
    %c0_24 = arith.constant 0 : index
    %c0_25 = arith.constant 0 : index
    %51 = vector.load %arg5[%c0_24, %c0_25] : memref<256x256xf32, #tpu.memory_space<vmem>>, vector<256x256xf32>
    %cst_26 = arith.constant dense<0.000000e+00> : vector<64x256xf32>
    %52 = tpu.matmul %49, %51, %cst_26 {dimension_numbers = #tpu.dot_dimension_numbers<[1], [0], [0], [1], [0, 0, 1, 1], [], []>} : vector<64x256xf32>, vector<256x256xf32>, vector<64x256xf32> -> vector<64x256xf32>
    %53 = arith.addf %50, %52 : vector<64x256xf32>
    %c0_27 = arith.constant 0 : index
    %c0_28 = arith.constant 0 : index
    %54 = vector.load %arg8[%c0_27, %c0_28] : memref<64x256xf32, #tpu.memory_space<vmem>>, vector<64x256xf32>
    tpu.vector_store %arg8[%c0_27, %c0_28], %53 {strides = array<i32>} : memref<64x256xf32, #tpu.memory_space<vmem>>, vector<64x256xf32>,
    %c1_i32 = arith.constant 1 : i32
    %55 = arith.cmpi eq, %arg1, %c1_i32 : i32
    %56 = arith.extui %55 : i1 to i32
    %c0_i32_29 = arith.constant 0 : i32
    %57 = arith.cmpi ne, %56, %c0_i32_29 : i32
    scf.if %57 {
      %c0_30 = arith.constant 0 : index
      %c0_31 = arith.constant 0 : index
      %58 = vector.load %arg8[%c0_30, %c0_31] : memref<64x256xf32, #tpu.memory_space<vmem>>, vector<64x256xf32>
      %c0_32 = arith.constant 0 : index
      %c0_33 = arith.constant 0 : index
      %59 = vector.load %arg6[%c0_32, %c0_33] : memref<1x256xf32, #tpu.memory_space<vmem>>, vector<1x256xf32>
      %60 = vector.broadcast %59 : vector<1x256xf32> to vector<64x256xf32>
      %61 = arith.addf %58, %60 : vector<64x256xf32>
      %c0_34 = arith.constant 0 : index
      %c0_35 = arith.constant 0 : index
      %62 = vector.load %arg7[%c0_34, %c0_35] : memref<64x256xf32, #tpu.memory_space<vmem>>, vector<64x256xf32>
      tpu.vector_store %arg7[%c0_34, %c0_35], %61 {strides = array<i32>} : memref<64x256xf32, #tpu.memory_space<vmem>>, vector<64x256xf32>,
    } else {
    }
    return
  }
  func.func @transform_0(%arg0: i32, %arg1: i32) -> (i32, i32) {
    %c0_i32 = arith.constant 0 : i32
    %c0_i32_0 = arith.constant 0 : i32
    return %arg0, %c0_i32 : i32, i32
  }
  func.func @transform_1(%arg0: i32, %arg1: i32) -> (i32, i32) {
    %c0_i32 = arith.constant 0 : i32
    %c0_i32_0 = arith.constant 0 : i32
    return %c0_i32, %arg1 : i32, i32
  }
  func.func @transform_2(%arg0: i32, %arg1: i32) -> (i32, i32) {
    %c0_i32 = arith.constant 0 : i32
    %c0_i32_0 = arith.constant 0 : i32
    return %c0_i32, %arg1 : i32, i32
  }
  func.func @transform_3(%arg0: i32, %arg1: i32) -> (i32, i32) {
    %c0_i32 = arith.constant 0 : i32
    %c0_i32_0 = arith.constant 0 : i32
    return %arg1, %c0_i32 : i32, i32
  }
  func.func @transform_4(%arg0: i32, %arg1: i32) -> (i32, i32) {
    %c0_i32 = arith.constant 0 : i32
    %c0_i32_0 = arith.constant 0 : i32
    %c0_i32_1 = arith.constant 0 : i32
    return %c0_i32, %c0_i32_0 : i32, i32
  }
  func.func @transform_5(%arg0: i32, %arg1: i32) -> (i32, i32) {
    %c0_i32 = arith.constant 0 : i32
    %c0_i32_0 = arith.constant 0 : i32
    return %arg0, %c0_i32 : i32, i32
  }
}

</mosaic_0001>

<bundles_post_ra>
// kernel: tpu_custom_call.1
= control target key start
LH: loop header
LB: loop body
LE: loop exit
PB: predicated region body
PF: predicated region fallthrough
CT: control target
= control target key end

     0   :  { %s2942_s0 = inlined_call_operand.hbm [shape: f32[128,256], index: 0, kind: input, shape index: {}]   ;;  %s2943_s1 = inlined_call_operand.hbm [shape: f32[256,512], index: 1, kind: input, shape index: {}]   ;;  %s2944_s2 = inlined_call_operand.vmem [shape: f32[1,512], index: 2, kind: input, shape index: {}]   ;;  %s2945_s3 = inlined_call_operand.hbm [shape: f32[512,256], index: 3, kind: input, shape index: {}]   ;;  %s2946_s4 = inlined_call_operand.vmem [shape: f32[1,256], index: 4, kind: input, shape index: {}]   ;;  %s2947_s5 = inlined_call_operand.hbm [shape: f32[128,256], index: 5, kind: output, shape index: {}]  }
   0x1   :  { %2976 = sst [smem:[#allocation43_spill]] %s2943_s1 }
   0x2   :  { %2977 = sst [smem:[#allocation44_spill]] %s2946_s4 }
   0x3   :  { %2978 = sst [smem:[#allocation45_spill]] %s2947_s5 }
   0x4   :  { %10 = vsyncpa [#allocation4], 0 }
   0x5   :  { %12 = vsyncpa [#allocation4 + $0x1], 0 }
   0x6   :  { %13 = vsyncpa [#allocation7], 0 }
   0x7   :  { %15 = vsyncpa [#allocation7 + $0x1], 0 }
   0x8   :  { %16 = vsyncpa [#allocation5], 0 }
   0x9   :  { %18 = vsyncpa [#allocation5 + $0x1], 0  ;;  %s2060_s18 = smov 0   ;;  %s2062_s19 = smov 0  }
   0xa   :  { %s2064_s20 = smov 0   ;;  %s2066_s21 = smov 0  }
   0xb   :  { %s2068_s22 = smov 0   ;;  %s2070_s23 = smov 0  }
   0xc   :  { %s2072_s24 = smov 0   ;;  %s2074_s25 = smov 0  }
   0xd   :  { %s2076_s26 = smov 0   ;;  %s2078_s27 = smov 0  }
   0xe   :  { %s2080_s28 = smov 0  }
   0xf LB: > { %2979 = sst [smem:[#allocation13_spill]] %s1985_s20  ;;  %s33_s29 = sadd.s32 1, %s2009_s26  ;;  %s2017_s28 = sphi %s2080_s28, %s24_s28   ;;  %s2013_s27 = sphi %s2078_s27, %s3067_s27   ;;  %s2009_s26 = sphi %s2076_s26, %s3073_s26   ;;  %s2005_s25 = sphi %s2074_s25, %s3065_s25   ;;  %s2001_s24 = sphi %s2072_s24, %s3072_s24   ;;  %s1997_s23 = sphi %s2070_s23, %s3064_s23   ;;  %s1993_s22 = sphi %s2068_s22, %s3071_s22   ;;  %s1989_s21 = sphi %s2066_s21, %s3070_s21   ;;  %s1985_s20 = sphi %s2064_s20, %s3062_s20   ;;  %s1981_s19 = sphi %s2062_s19, %s3069_s19   ;;  %s1977_s18 = sphi %s2060_s18, %s3068_s18  }
  0x10   : > { %2980 = sst [smem:[#allocation14_spill]] %s1997_s23  ;;  %p2950_p0 = scmp.eq.s32.totalorder %s2017_s28, 0 }
  0x11   : > { %2981 = sst [smem:[#allocation15_spill]] %s2005_s25  ;;  %p2117_p1 = scmp.ge.s32.totalorder %s33_s29, 2 }
  0x12   : > { %2982 = sst [smem:[#allocation16_spill]] %s2013_s27  ;;  %s69_s6 = sadd.s32 1, %s1985_s20 }
  0x13   : > { %p76_p2 = scmp.ne.s32.totalorder %s1985_s20, %s1981_s19  ;;  %s3075_s29 = smov (%p2117_p1, %s33_s29), 0 }
  0x14   : > { %2984 = sst [smem:[#allocation17_spill]] %s3075_s29  ;;  %s66_s7 = ssub.s32 %s2009_s26, %s3075_s29 }
  0x15   : > { %p78_p4 = por %p76_p2, %p2950_p0  ;;  %p2949_p5 = scmp.lt.s32.totalorder %s2017_s28, 4 }
  0x16   : > { %p67_p6 = scmp.eq.s32.totalorder %s66_s7, 0  ;;  %s230_s8 = sand.u32 1, %s2017_s28  }
  0x17   : > { %s232_s10 = sand.u32 1, %s1985_s20   ;;  %s1485_s12 = sshll.u32 %s2009_s26, 8 }
  0x18   : > { %s2137_s9 = scalar_select %p67_p6, %s1985_s20, %s69_s6  }
  0x19   : > { %s2140_s11 = sshll.u32 %s232_s10, 9  ;;  %s2986_s1 = sld [smem:[#allocation43_spill]] }
  0x1a   : > { %2985 = sst [smem:[#allocation18_spill]] %s2137_s9  ;;  %s234_s16 = scalar_lea.vmem [#allocation6], %s2140_s11 }
  0x1b   : > { %s241_s17 = sshll.u32 %s234_s16, 4  ;;  %p2151_p7 = pnand %p2949_p5, %p78_p4  ;;  %s2155_s17 = int_to_ptr.vmem [resolvable:$true] %s241_s17 }
  0x1c   : > { %s2158_s7 = scalar_lea.sflag [#allocation7], %s230_s8 }
  0x1d   : > { %p2953_p10 = pneg %p2151_p7 }
  0x1f   : > { %s2146_s15 = scalar_lea.hbm %s2986_s1, %s1485_s12  ;;  %s1806_s14 = scalar_lea.hbm %s2986_s1, 16384 }
  0x20   : > { %s1801_s10 = scalar_lea.hbm %s2146_s15, 8192  ;;  %p1807_p13 = scmp.lt.u32.totalorder %s2146_s15, %s2986_s1 }
  0x21   : > { %p1802_p9 = scmp.ne.s32.totalorder %s2146_s15, %s1801_s10  ;;  %p1808_p2 = scmp.lt.u32.totalorder %s1806_s14, %s1801_s10 }
  0x22   : > { %p1810_p6 = scmp.lt.u32.totalorder %s1801_s10, %s2146_s15 }
  0x23   : > { %p1804_p11 = pnand %p2953_p10, %p1802_p9  ;;  %p1809_p4 = por %p1808_p2, %p1807_p13 }
  0x25   : > { %p1805_p12 = pneg %p1804_p11  ;;  %p1811_p5 = por %p1810_p6, %p1809_p4 }
  0x27   : > { %p1812_p3 = pnand %p1811_p5, %p1805_p12 }
  0x29   : > { %1815 = shalt.err (!%p1812_p3)
}
  0x2a   : > { %s1816_s8 = scalar_lea.vmem %s2155_s17, 8192  ;;  %s2019_s12 = smov [#allocation6]  }
  0x2b   : > { %p1817_p9 = scmp.ne.s32.totalorder %s2155_s17, %s1816_s8  ;;  %s1821_s13 = sshll.u32 %s2019_s12, 4  ;;  %s1822_s13 = int_to_ptr.vmem [resolvable:$false] %s1821_s13 }
  0x2c   : > { %s1823_s29 = scalar_lea.vmem %s1822_s13, 16384  ;;  %p1824_p8 = scmp.lt.s32.totalorder %s2155_s17, %s1822_s13 }
  0x2d   : > { %p1819_p11 = pnand %p1817_p9, %p2953_p10  ;;  %p1825_p13 = scmp.lt.s32.totalorder %s1823_s29, %s1816_s8 }
  0x2f   : > { %p1820_p0 = pneg %p1819_p11  ;;  %p1826_p2 = por %p1825_p13, %p1824_p8 }
  0x31   : > { %p1827_p4 = pnand %p1826_p2, %p1820_p0 }
  0x33   : > { %1830 = shalt.err (!%p1827_p4)
}
  0x34   : > { %s2020_s10 = smov 512   ;;  %s2951_s14 = smov 256  }
  0x35   : > { %s2954_s16 = smov 16   ;;  %p279_p0 = scmp.lt.s32.totalorder %s2017_s28, 5 }
  0x36   : > { %1632 = dma.hbm_to_vmem [thread:$0]  (!%p2151_p7), %s2146_s15, 8192, %s2155_s17, %s2158_s7, %s2020_s10, %s2951_s14, %s2954_s16  }
  0x37   : > { %p2988_p3 = scmp.ge.s32.totalorder %s2017_s28, 1  ;;  %s2196_s12 = sadd.s32 4294967295, %s2017_s28  }
  0x38   : > { %s1455_s13 = sadd.s32 4294967294, %s2017_s28   ;;  %s36_s29 = sadd.s32 1, %s2013_s27 }
  0x39   : > { %p2191_p5 = pnand %p2988_p3, %p279_p0  ;;  %s43_s1 = sadd.s32 1, %s1997_s23 }
  0x3a   : > { %s3077_s29 = smov (!%p2117_p1, %s36_s29), %s2013_s27  ;;  %p50_p8 = scmp.ne.s32.totalorder %s1997_s23, %s1993_s22 }
  0x3b   : > { %s2989_s8 = scalar_select %p2191_p5, 1, 0 }
  0x3c   : > { %p56_p12 = scmp.ne.s32.totalorder %s1993_s22, %s1989_s21  ;;  %p38_p6 = scmp.ge.s32.totalorder %s3077_s29, 2 }
  0x3d   : > { %p57_p9 = scmp.eq.s32.totalorder %s2196_s12, 0  ;;  %p2990_p11 = scmp.eq.s32.totalorder %s2017_s28, 0 }
  0x3e   : > { %p179_p2 = scmp.eq.s32.totalorder %s2196_s12, 3  ;;  %s3079_s29 = smov (%p38_p6, %s3077_s29), 0 }
  0x3f   : > { %p2211_p13 = por %p2990_p11, %p50_p8  ;;  %2992 = sst [smem:[#allocation19_spill]] %s3079_s29 }
  0x40   : > { %p2221_p1 = por %p57_p9, %p56_p12  ;;  %p2994_p4 = scmp.ne.s32.totalorder %s1981_s19, %s1977_s18 }
  0x41   : > { %s40_s10 = ssub.s32 %s2013_s27, %s3079_s29  ;;  %p2234_p3 = por %p179_p2, %p50_p8 }
  0x42   : > { %s2993_s30 = scalar_select %p2221_p1, 1, 0 }
  0x43   : > { %p2228_p0 = por %p2994_p4, %p57_p9  ;;  %p41_p11 = scmp.eq.s32.totalorder %s40_s10, 0 }
  0x44   : > { %s2996_s14 = scalar_select %p2234_p3, 1, 0 }
  0x45   : > { %s2995_s17 = scalar_select %p2228_p0, 1, 0 }
  0x46   : > { %p185_p10 = scmp.eq.s32.totalorder %s1455_s13, 3  ;;  %s208_s16 = sand.u32 1, %s1997_s23  }
  0x47   : > { %s1484_s9 = sshll.u32 %s2013_s27, 11  ;;  %s1458_s18 = sshll.u32 %s208_s16, 7 }
  0x48   : > { %s2241_s20 = scalar_select %p41_p11, %s1997_s23, %s43_s1  }
  0x49   : > { %p2246_p6 = por %p185_p10, %p56_p12  ;;  %s2253_s29 = scalar_lea.hbm %s2942_s0, %s1484_s9 }
  0x4a   : > { %2997 = sst [smem:[#allocation20_spill]] %s2241_s20  ;;  %p2999_p8 = scmp.lt.s32.totalorder %s2017_s28, 4 }
  0x4b   : > { %s2998_s5 = scalar_select %p2246_p6, 1, 0 }
  0x4c   : > { %p2259_p9 = pnand %p2999_p8, %p2211_p13  ;;  %s212_s13 = scalar_lea.vmem [#allocation3], %s1458_s18 }
  0x4d   : > { %s220_s10 = sshll.u32 %s212_s13, 4  ;;  %s2265_s27 = scalar_lea.sflag [#allocation4], %s208_s16  ;;  %s2263_s10 = int_to_ptr.vmem [resolvable:$true] %s220_s10 }
  0x4e   : > { %s1831_s4 = scalar_lea.hbm %s2253_s29, 2048  ;;  %p1833_p12 = pneg %p2259_p9 }
  0x4f   : > { %p1832_p10 = scmp.ne.s32.totalorder %s2253_s29, %s1831_s4  ;;  %s1836_s15 = scalar_lea.hbm %s2942_s0, 4096 }
  0x50   : > { %p1837_p13 = scmp.lt.u32.totalorder %s2253_s29, %s2942_s0  ;;  %p1838_p11 = scmp.lt.u32.totalorder %s1836_s15, %s1831_s4 }
  0x51   : > { %p1834_p2 = pnand %p1833_p12, %p1832_p10  ;;  %p1840_p6 = scmp.lt.u32.totalorder %s1831_s4, %s2253_s29 }
  0x52   : > { %p1839_p8 = por %p1838_p11, %p1837_p13 }
  0x53   : > { %p1835_p4 = pneg %p1834_p2 }
  0x54   : > { %p1841_p3 = por %p1840_p6, %p1839_p8 }
  0x56   : > { %p1842_p0 = pnand %p1841_p3, %p1835_p4 }
  0x58   : > { %1845 = shalt.err (!%p1842_p0)
}
  0x59   : > { %s1846_s16 = scalar_lea.vmem %s2263_s10, 2048  ;;  %s2023_s18 = smov [#allocation3]  }
  0x5a   : > { %p1847_p10 = scmp.ne.s32.totalorder %s2263_s10, %s1846_s16  ;;  %s1851_s13 = sshll.u32 %s2023_s18, 4  ;;  %s1852_s13 = int_to_ptr.vmem [resolvable:$false] %s1851_s13 }
  0x5b   : > { %s1853_s20 = scalar_lea.vmem %s1852_s13, 4096  ;;  %p1854_p5 = scmp.lt.s32.totalorder %s2263_s10, %s1852_s13 }
  0x5c   : > { %p1849_p2 = pnand %p1847_p10, %p1833_p12  ;;  %p1855_p13 = scmp.lt.s32.totalorder %s1853_s20, %s1846_s16 }
  0x5e   : > { %p1850_p1 = pneg %p1849_p2  ;;  %p1856_p11 = por %p1855_p13, %p1854_p5 }
  0x60   : > { %p1857_p6 = pnand %p1856_p11, %p1850_p1 }
  0x62   : > { %1860 = shalt.err (!%p1857_p6)
}
  0x63   : > { %s3001_s23 = smov 16   ;;  %s3002_s4 = smov 256  }
  0x64   : > { %1629 = dma.hbm_to_vmem [thread:$0]  (!%p2259_p9), %s2253_s29, 2048, %s2263_s10, %s2265_s27, %s3002_s4, %s3002_s4, %s3001_s23  }
  0x65   : > { %s1487_s25 = sshll.u32 %s2009_s26, 13  ;;  %s263_s9 = scalar_lea.vmem [#allocation8], %s2140_s11 }
  0x66   : > { %s271_s15 = sshll.u32 %s263_s9, 4  ;;  %s2301_s13 = scalar_lea.hbm %s2945_s3, %s1487_s25  ;;  %s2303_s15 = int_to_ptr.vmem [resolvable:$true] %s271_s15 }
  0x67   : > { %s1861_s1 = scalar_lea.hbm %s2301_s13, 8192  ;;  %p3003_p1 = pneg %p2151_p7 }
  0x68   : > { %p1862_p5 = scmp.ne.s32.totalorder %s2301_s13, %s1861_s1  ;;  %s1866_s29 = scalar_lea.hbm %s2945_s3, 16384 }
  0x69   : > { %p1867_p9 = scmp.lt.u32.totalorder %s2301_s13, %s2945_s3  ;;  %p1868_p12 = scmp.lt.u32.totalorder %s1866_s29, %s1861_s1 }
  0x6a   : > { %p1864_p0 = pnand %p1862_p5, %p3003_p1  ;;  %p1870_p8 = scmp.lt.u32.totalorder %s1861_s1, %s2301_s13 }
  0x6b   : > { %p1869_p4 = por %p1868_p12, %p1867_p9 }
  0x6c   : > { %p1865_p3 = pneg %p1864_p0 }
  0x6d   : > { %p1871_p10 = por %p1870_p8, %p1869_p4 }
  0x6f   : > { %p1872_p2 = pnand %p1871_p10, %p1865_p3 }
  0x71   : > { %1875 = shalt.err (!%p1872_p2)
}
  0x72   : > { %s1876_s25 = scalar_lea.vmem %s2303_s15, 8192  ;;  %p3004_p11 = pmov %p3003_p1 }
  0x73   : > { %p1877_p13 = scmp.ne.s32.totalorder %s2303_s15, %s1876_s25  ;;  %s2024_s9 = smov [#allocation8]  }
  0x74   : > { %s1881_s18 = sshll.u32 %s2024_s9, 4  ;;  %s1882_s18 = int_to_ptr.vmem [resolvable:$false] %s1881_s18 }
  0x75   : > { %p1879_p6 = pnand %p1877_p13, %p3004_p11  ;;  %s1883_s16 = scalar_lea.vmem %s1882_s18, 16384 }
  0x76   : > { %p1884_p1 = scmp.lt.s32.totalorder %s2303_s15, %s1882_s18  ;;  %p1885_p0 = scmp.lt.s32.totalorder %s1883_s16, %s1876_s25 }
  0x77   : > { %p1880_p5 = pneg %p1879_p6 }
  0x78   : > { %p1886_p9 = por %p1885_p0, %p1884_p1 }
  0x7a   : > { %p1887_p12 = pnand %p1886_p9, %p1880_p5 }
  0x7c   : > { %1890 = shalt.err (!%p1887_p12)
}
  0x7d   : > { %1635 = dma.hbm_to_vmem [thread:$0]  (!%p2151_p7), %s2301_s13, 8192, %s2303_s15, %s2158_s7, %s3002_s4, %s3002_s4, %s3001_s23  }
  0x7e   : > { %p3005_p3 = scmp.ne.s32.totalorder %s2989_s8, 0 }
  0x80   : > { %283 = sbr.rel (%p3005_p3) target bundleno = 809 (0x329), region = 40 }
  0x87   : > { %s2335_s1 = sand.u32 1, %s1993_s22   ;;  %p3006_p4 = scmp.ne.s32.totalorder %s2993_s30, 0 }
  0x88   : > { %s1470_s27 = sshll.u32 %s2335_s1, 7  ;;  %s286_s11 = scalar_lea.sflag [#allocation4], %s2335_s1 }
  0x89   : > { %s2339_s29 = scalar_lea.vmem [#allocation3], %s1470_s27 }
  0x8a   : > { %1964 = dma.done.wait (%p3006_p4), %s286_s11, 2048  }
  0x8b   : > { %1966 = vsyncadd (%p3006_p4), %s286_s11, 4294965248  ;;  %s294_s6 = sand.u32 1, %s2196_s12   ;;  %s296_s7 = sand.u32 1, %s1981_s19  }
  0x8c   : > { %s1471_s8 = sshll.u32 %s296_s7, 9  ;;  %s295_s23 = scalar_lea.sflag [#allocation7], %s294_s6 }
  0x8d   : > { %s2347_s4 = scalar_lea.vmem [#allocation6], %s1471_s8  ;;  %p3007_p7 = scmp.ne.s32.totalorder %s2995_s17, 0 }
  0x8f   : > { %1968 = dma.done.wait (%p3007_p7), %s295_s23, 16384  }
  0x90   : > { %1970 = vsyncadd (%p3007_p7), %s295_s23, 4294950912  ;;  %s1474_s15 = sshll.u32 %s2001_s24, 1  ;;  %s2360_s10 = scalar_lea.vmem [#allocation8], %s1471_s8 }
  0x91   : > { %p351_p8 = scmp.lt.s32.totalorder %s1474_s15, 3  ;;  %s2362_s20 = scalar_lea.vmem [#allocation9], %s1470_s27 }
  0x92   : > { %p1475_p10 = scmp.ne.s32.totalorder %s2001_s24, 0 }
  0x93   : > { %s3081_s15 = smov (!%p351_p8, %s1474_s15), 3  ;;  %v2025_v0 = vmov (!%p1475_p10), 0.0  }
  0x94   : > { %s353_s12 = scalar_lea.vmem %s2944_s2, %s3081_s15  ;;  %360 = sbr.rel (%p1475_p10) target bundleno = 156 (0x9c), region = 56  ;;  %361 = vst [vmem:[#allocation2] sm:$0xff] (!%p1475_p10), %v2025_v0  ;;  %362 = vst [vmem:[#allocation2 + $0x8] sm:$0xff] (!%p1475_p10), %v2025_v0 }
  0x95   : > { %363 = vst [vmem:[#allocation2 + $0x10] sm:$0xff] (!%p1475_p10), %v2025_v0  ;;  %364 = vst [vmem:[#allocation2 + $0x18] sm:$0xff] (!%p1475_p10), %v2025_v0 }
  0x96   : > { %365 = vst [vmem:[#allocation2 + $0x20] sm:$0xff] (!%p1475_p10), %v2025_v0  ;;  %366 = vst [vmem:[#allocation2 + $0x28] sm:$0xff] (!%p1475_p10), %v2025_v0 }
  0x97   : > { %367 = vst [vmem:[#allocation2 + $0x30] sm:$0xff] (!%p1475_p10), %v2025_v0  ;;  %368 = vst [vmem:[#allocation2 + $0x38] sm:$0xff] (!%p1475_p10), %v2025_v0 }
  0x98   : > { %369 = vst [vmem:[#allocation2 + $0x40] sm:$0xff] (!%p1475_p10), %v2025_v0  ;;  %370 = vst [vmem:[#allocation2 + $0x48] sm:$0xff] (!%p1475_p10), %v2025_v0 }
  0x99   : > { %371 = vst [vmem:[#allocation2 + $0x50] sm:$0xff] (!%p1475_p10), %v2025_v0  ;;  %372 = vst [vmem:[#allocation2 + $0x58] sm:$0xff] (!%p1475_p10), %v2025_v0 }
  0x9a   : > { %373 = vst [vmem:[#allocation2 + $0x60] sm:$0xff] (!%p1475_p10), %v2025_v0  ;;  %374 = vst [vmem:[#allocation2 + $0x68] sm:$0xff] (!%p1475_p10), %v2025_v0 }
  0x9b   : > { %375 = vst [vmem:[#allocation2 + $0x70] sm:$0xff] %v2025_v0  ;;  %376 = vst [vmem:[#allocation2 + $0x78] sm:$0xff] %v2025_v0 }
  0x9c PF: > { %v394_v1 = vld [vmem:[%s2347_s4 + $0x8] sm:$0xff]  ;;  %v396_v2 = vld [vmem:[%s2347_s4 + $0x18] sm:$0xff]  ;;  %v393_v3 = vld [vmem:[%s2347_s4] sm:$0xff]  ;;  %p1476_p2 = scmp.ne.s32.totalorder %s2001_s24, 1 }
  0x9d   : > { %v1490_v4 = vpack.c.bf16 %v396_v2, %v394_v1  ;;  %v395_v5 = vld [vmem:[%s2347_s4 + $0x10] sm:$0xff]  ;;  %v398_v6 = vld [vmem:[%s2347_s4 + $0x28] sm:$0xff]  ;;  %v400_v7 = vld [vmem:[%s2347_s4 + $0x38] sm:$0xff]  ;;  %s3053_s16 = sld [smem:[#allocation44_spill]] (!%p1476_p2) }
  0x9e   : > { %v1492_v8 = vpack.c.bf16 %v395_v5, %v393_v3  ;;  %v1494_v9 = vpack.c.bf16 %v400_v7, %v398_v6  ;;  %v397_v10 = vld [vmem:[%s2347_s4 + $0x20] sm:$0xff]  ;;  %v399_v11 = vld [vmem:[%s2347_s4 + $0x30] sm:$0xff]  ;;  %v402_v12 = vld [vmem:[%s2347_s4 + $0x48] sm:$0xff] }
  0x9f   : > { %1491 = vmatprep.subr.bf16.mxu0 %v1490_v4  ;;  %v404_v13 = vld [vmem:[%s2347_s4 + $0x58] sm:$0xff]  ;;  %v1496_v14 = vpack.c.bf16 %v399_v11, %v397_v10  ;;  %v401_v16 = vld [vmem:[%s2347_s4 + $0x40] sm:$0xff]  ;;  %v403_v17 = vld [vmem:[%s2347_s4 + $0x50] sm:$0xff] }
  0xa0   : > { %1493 = vmatpush1.bf16.msra.mxu0 %v1492_v8  ;;  %v1498_v15 = vpack.c.bf16 %v404_v13, %v402_v12  ;;  %v406_v18 = vld [vmem:[%s2347_s4 + $0x68] sm:$0xff]  ;;  %v408_v19 = vld [vmem:[%s2347_s4 + $0x78] sm:$0xff]  ;;  %v1500_v20 = vpack.c.bf16 %v403_v17, %v401_v16  ;;  %v405_v22 = vld [vmem:[%s2347_s4 + $0x60] sm:$0xff] }
  0xa1   : > { %1495 = vmatprep.subr.bf16.mxu0 %v1494_v9  ;;  %v1502_v21 = vpack.c.bf16 %v408_v19, %v406_v18  ;;  %v407_v23 = vld [vmem:[%s2347_s4 + $0x70] sm:$0xff]  ;;  %v410_v24 = vld [vmem:[%s2347_s4 + $0x88] sm:$0xff]  ;;  %v412_v25 = vld [vmem:[%s2347_s4 + $0x98] sm:$0xff] }
  0xa2   : > { %v1504_v26 = vpack.c.bf16 %v407_v23, %v405_v22  ;;  %v1506_v27 = vpack.c.bf16 %v412_v25, %v410_v24  ;;  %v409_v28 = vld [vmem:[%s2347_s4 + $0x80] sm:$0xff]  ;;  %v411_v29 = vld [vmem:[%s2347_s4 + $0x90] sm:$0xff]  ;;  %v414_v30 = vld [vmem:[%s2347_s4 + $0xa8] sm:$0xff] }
  0xa3   : > { %v416_v31 = vld [vmem:[%s2347_s4 + $0xb8] sm:$0xff]  ;;  %v1508_v32 = vpack.c.bf16 %v411_v29, %v409_v28  ;;  %v413_v34 = vld [vmem:[%s2347_s4 + $0xa0] sm:$0xff]  ;;  %v415_v35 = vld [vmem:[%s2347_s4 + $0xb0] sm:$0xff] }
  0xa4   : > { %1497 = vmatpush1.bf16.msra.mxu0 %v1496_v14  ;;  %v1510_v33 = vpack.c.bf16 %v416_v31, %v414_v30  ;;  %v418_v36 = vld [vmem:[%s2347_s4 + $0xc8] sm:$0xff]  ;;  %v420_v37 = vld [vmem:[%s2347_s4 + $0xd8] sm:$0xff]  ;;  %v1512_v38 = vpack.c.bf16 %v415_v35, %v413_v34  ;;  %v417_v40 = vld [vmem:[%s2347_s4 + $0xc0] sm:$0xff] }
  0xa5   : > { %1499 = vmatprep.subr.bf16.mxu0 %v1498_v15  ;;  %v1514_v39 = vpack.c.bf16 %v420_v37, %v418_v36  ;;  %v419_v41 = vld [vmem:[%s2347_s4 + $0xd0] sm:$0xff]  ;;  %v378_v42 = vld [vmem:[%s2339_s29 + $0x8] sm:$0xff]  ;;  %v424_v44 = vld [vmem:[%s2347_s4 + $0xf8] sm:$0xff] }
  0xa6   : > { %v422_v43 = vld [vmem:[%s2347_s4 + $0xe8] sm:$0xff]  ;;  %533 = vmatprep.mubr.f32.mxu0 %v378_v42  ;;  %v1516_v45 = vpack.c.bf16 %v419_v41, %v417_v40  ;;  %v421_v47 = vld [vmem:[%s2347_s4 + $0xe0] sm:$0xff]  ;;  %v423_v48 = vld [vmem:[%s2347_s4 + $0xf0] sm:$0xff] }
  0xa7   : > { %v1518_v46 = vpack.c.bf16 %v424_v44, %v422_v43  ;;  %v426_v49 = vld [vmem:[%s2347_s4 + $0x108] sm:$0xff]  ;;  %v428_v50 = vld [vmem:[%s2347_s4 + $0x118] sm:$0xff]  ;;  %v425_v52 = vld [vmem:[%s2347_s4 + $0x100] sm:$0xff]  ;;  %v1520_v57 = vpack.c.bf16 %v423_v48, %v421_v47 }
  0xa8   : > { %1501 = vmatpush1.bf16.msra.mxu0 %v1500_v20  ;;  %v1031_v51 = vld [vmem:[%s2360_s10 + $0x8] sm:$0xff]  ;;  %v427_v53 = vld [vmem:[%s2347_s4 + $0x110] sm:$0xff]  ;;  %v1033_v54 = vld [vmem:[%s2360_s10 + $0x18] sm:$0xff]  ;;  %v1522_v63 = vpack.c.bf16 %v428_v50, %v426_v49 }
  0xa9   : > { %1503 = vmatprep.subr.bf16.mxu0 %v1502_v21  ;;  %v1030_v55 = vld [vmem:[%s2360_s10] sm:$0xff]  ;;  %v1032_v56 = vld [vmem:[%s2360_s10 + $0x10] sm:$0xff]  ;;  %v1554_v58 = vpack.c.bf16 %v1033_v54, %v1031_v51  ;;  %v1035_v60 = vld [vmem:[%s2360_s10 + $0x28] sm:$0xff]  ;;  %v1524_v7 = vpack.c.bf16 %v427_v53, %v425_v52 }
  0xaa   : > { %v1556_v59 = vpack.c.bf16 %v1032_v56, %v1030_v55  ;;  %v1037_v61 = vld [vmem:[%s2360_s10 + $0x38] sm:$0xff]  ;;  %v1034_v62 = vld [vmem:[%s2360_s10 + $0x20] sm:$0xff]  ;;  %v1036_v1 = vld [vmem:[%s2360_s10 + $0x30] sm:$0xff] }
  0xab   : > { %v1558_v0 = vpack.c.bf16 %v1037_v61, %v1035_v60  ;;  %v1039_v2 = vld [vmem:[%s2360_s10 + $0x48] sm:$0xff]  ;;  %v1041_v3 = vld [vmem:[%s2360_s10 + $0x58] sm:$0xff]  ;;  %1555 = vmatprep.subr.bf16.mxu1 %v1554_v58  ;;  %v1560_v6 = vpack.c.bf16 %v1036_v1, %v1034_v62  ;;  %v1038_v9 = vld [vmem:[%s2360_s10 + $0x40] sm:$0xff] }
  0xac   : > { %1505 = vmatpush1.bf16.msra.mxu0 %v1504_v26  ;;  %v430_v4 = vld [vmem:[%s2347_s4 + $0x128] sm:$0xff]  ;;  %v432_v5 = vld [vmem:[%s2347_s4 + $0x138] sm:$0xff]  ;;  %1557 = vmatpush1.bf16.msra.mxu1 %v1556_v59  ;;  %v1562_v8 = vpack.c.bf16 %v1041_v3, %v1039_v2  ;;  %v1040_v10 = vld [vmem:[%s2360_s10 + $0x50] sm:$0xff] }
  0xad   : > { %1507 = vmatprep.subr.bf16.mxu0 %v1506_v27  ;;  %1559 = vmatprep.subr.bf16.mxu1 %v1558_v0  ;;  %v1526_v11 = vpack.c.bf16 %v432_v5, %v430_v4  ;;  %v429_v12 = vld [vmem:[%s2347_s4 + $0x120] sm:$0xff]  ;;  %v431_v13 = vld [vmem:[%s2347_s4 + $0x130] sm:$0xff]  ;;  %v434_v14 = vld [vmem:[%s2347_s4 + $0x148] sm:$0xff]  ;;  %v1564_v16 = vpack.c.bf16 %v1040_v10, %v1038_v9 }
  0xae   : > { %v436_v15 = vld [vmem:[%s2347_s4 + $0x158] sm:$0xff]  ;;  %v1528_v17 = vpack.c.bf16 %v431_v13, %v429_v12  ;;  %v433_v19 = vld [vmem:[%s2347_s4 + $0x140] sm:$0xff]  ;;  %v435_v20 = vld [vmem:[%s2347_s4 + $0x150] sm:$0xff] }
  0xaf   : > { %v1530_v18 = vpack.c.bf16 %v436_v15, %v434_v14  ;;  %v438_v21 = vld [vmem:[%s2347_s4 + $0x168] sm:$0xff]  ;;  %v440_v22 = vld [vmem:[%s2347_s4 + $0x178] sm:$0xff]  ;;  %v1532_v23 = vpack.c.bf16 %v435_v20, %v433_v19  ;;  %v437_v25 = vld [vmem:[%s2347_s4 + $0x160] sm:$0xff] }
  0xb0   : > { %1509 = vmatpush1.bf16.msra.mxu0 %v1508_v32  ;;  %1561 = vmatpush1.bf16.msra.mxu1 %v1560_v6  ;;  %v1534_v24 = vpack.c.bf16 %v440_v22, %v438_v21  ;;  %v439_v26 = vld [vmem:[%s2347_s4 + $0x170] sm:$0xff]  ;;  %v442_v27 = vld [vmem:[%s2347_s4 + $0x188] sm:$0xff]  ;;  %v444_v28 = vld [vmem:[%s2347_s4 + $0x198] sm:$0xff] }
  0xb1   : > { %1511 = vmatprep.subr.bf16.mxu0 %v1510_v33  ;;  %1563 = vmatprep.subr.bf16.mxu1 %v1562_v8  ;;  %v1536_v29 = vpack.c.bf16 %v439_v26, %v437_v25  ;;  %v1538_v30 = vpack.c.bf16 %v444_v28, %v442_v27  ;;  %v441_v31 = vld [vmem:[%s2347_s4 + $0x180] sm:$0xff]  ;;  %v443_v32 = vld [vmem:[%s2347_s4 + $0x190] sm:$0xff]  ;;  %v446_v33 = vld [vmem:[%s2347_s4 + $0x1a8] sm:$0xff] }
  0xb2   : > { %v448_v34 = vld [vmem:[%s2347_s4 + $0x1b8] sm:$0xff]  ;;  %v1540_v35 = vpack.c.bf16 %v443_v32, %v441_v31  ;;  %v445_v37 = vld [vmem:[%s2347_s4 + $0x1a0] sm:$0xff]  ;;  %v451_v44 = vld [vmem:[%s2347_s4 + $0x1d0] sm:$0xff] }
  0xb3   : > { %v1542_v36 = vpack.c.bf16 %v448_v34, %v446_v33  ;;  %v452_v40 = vld [vmem:[%s2347_s4 + $0x1d8] sm:$0xff]  ;;  %v449_v43 = vld [vmem:[%s2347_s4 + $0x1c0] sm:$0xff]  ;;  %v455_v50 = vld [vmem:[%s2347_s4 + $0x1f0] sm:$0xff] }
  0xb4   : > { %1513 = vmatpush1.bf16.msra.mxu0 %v1512_v38  ;;  %1565 = vmatpush1.bf16.msra.mxu1 %v1564_v16  ;;  %v447_v38 = vld [vmem:[%s2347_s4 + $0x1b0] sm:$0xff]  ;;  %v1548_v47 = vpack.c.bf16 %v451_v44, %v449_v43  ;;  %v453_v49 = vld [vmem:[%s2347_s4 + $0x1e0] sm:$0xff]  ;;  %v380_v53 = vld [vmem:[%s2339_s29 + $0x18] sm:$0xff] }
  0xb5   : > { %1515 = vmatprep.subr.bf16.mxu0 %v1514_v39  ;;  %v450_v39 = vld [vmem:[%s2347_s4 + $0x1c8] sm:$0xff]  ;;  %v1544_v41 = vpack.c.bf16 %v447_v38, %v445_v37  ;;  %v1552_v51 = vpack.c.bf16 %v455_v50, %v453_v49  ;;  %v377_v52 = vld [vmem:[%s2339_s29] sm:$0xff]  ;;  %v379_v54 = vld [vmem:[%s2339_s29 + $0x10] sm:$0xff] }
  0xb6   : > { %v1546_v42 = vpack.c.bf16 %v452_v40, %v450_v39  ;;  %v382_v55 = vld [vmem:[%s2339_s29 + $0x28] sm:$0xff]  ;;  %v381_v56 = vld [vmem:[%s2339_s29 + $0x20] sm:$0xff]  ;;  %v383_v58 = vld [vmem:[%s2339_s29 + $0x30] sm:$0xff] }
  0xb7   : > { %v386_v59 = vld [vmem:[%s2339_s29 + $0x48] sm:$0xff]  ;;  %v385_v60 = vld [vmem:[%s2339_s29 + $0x40] sm:$0xff]  ;;  %v388_v61 = vld [vmem:[%s2339_s29 + $0x58] sm:$0xff] }
  0xb8   : > { %1517 = vmatpush1.bf16.msra.mxu0 %v1516_v45  ;;  %v454_v45 = vld [vmem:[%s2347_s4 + $0x1e8] sm:$0xff]  ;;  %v387_v62 = vld [vmem:[%s2339_s29 + $0x50] sm:$0xff]  ;;  %v389_v0 = vld [vmem:[%s2339_s29 + $0x60] sm:$0xff] }
  0xb9   : > { %1519 = vmatprep.subr.bf16.mxu0 %v1518_v46  ;;  %v456_v46 = vld [vmem:[%s2347_s4 + $0x1f8] sm:$0xff]  ;;  %v391_v2 = vld [vmem:[%s2339_s29 + $0x70] sm:$0xff]  ;;  %v1043_v3 = vld [vmem:[%s2360_s10 + $0x68] sm:$0xff] }
  0xba   : > { %v1550_v48 = vpack.c.bf16 %v456_v46, %v454_v45  ;;  %v392_v1 = vld [vmem:[%s2339_s29 + $0x78] sm:$0xff]  ;;  %v1042_v6 = vld [vmem:[%s2360_s10 + $0x60] sm:$0xff]  ;;  %v1047_v9 = vld [vmem:[%s2360_s10 + $0x88] sm:$0xff] }
  0xbb   : > { %v1045_v4 = vld [vmem:[%s2360_s10 + $0x78] sm:$0xff]  ;;  %v1046_v12 = vld [vmem:[%s2360_s10 + $0x80] sm:$0xff]  ;;  %v1048_v13 = vld [vmem:[%s2360_s10 + $0x90] sm:$0xff] }
  0xbc   : > { %1521 = vmatpush1.bf16.msra.mxu0 %v1520_v57  ;;  %v384_v57 = vld [vmem:[%s2339_s29 + $0x38] sm:$0xff]  ;;  %v1566_v5 = vpack.c.bf16 %v1045_v4, %v1043_v3  ;;  %v1572_v14 = vpack.c.bf16 %v1048_v13, %v1046_v12  ;;  %v1051_v15 = vld [vmem:[%s2360_s10 + $0xa8] sm:$0xff]  ;;  %v1052_v19 = vld [vmem:[%s2360_s10 + $0xb0] sm:$0xff] }
  0xbd   : > { %1523 = vmatprep.subr.bf16.mxu0 %v1522_v63  ;;  %v390_v63 = vld [vmem:[%s2339_s29 + $0x68] sm:$0xff]  ;;  %v1049_v10 = vld [vmem:[%s2360_s10 + $0x98] sm:$0xff]  ;;  %v1056_v25 = vld [vmem:[%s2360_s10 + $0xd0] sm:$0xff] }
  0xbe   : > { %1567 = vmatprep.subr.bf16.mxu1 %v1566_v5  ;;  %v1053_v16 = vld [vmem:[%s2360_s10 + $0xb8] sm:$0xff]  ;;  %v1055_v21 = vld [vmem:[%s2360_s10 + $0xc8] sm:$0xff]  ;;  %v1060_v31 = vld [vmem:[%s2360_s10 + $0xf0] sm:$0xff] }
  0xbf   : > { %v1057_v22 = vld [vmem:[%s2360_s10 + $0xd8] sm:$0xff]  ;;  %v1059_v27 = vld [vmem:[%s2360_s10 + $0xe8] sm:$0xff]  ;;  %v1064_v37 = vld [vmem:[%s2360_s10 + $0x110] sm:$0xff] }
  0xc0   : > { %1525 = vmatpush1.bf16.msra.mxu0 %v1524_v7  ;;  %v1044_v7 = vld [vmem:[%s2360_s10 + $0x70] sm:$0xff]  ;;  %v1061_v28 = vld [vmem:[%s2360_s10 + $0xf8] sm:$0xff]  ;;  %v1063_v33 = vld [vmem:[%s2360_s10 + $0x108] sm:$0xff] }
  0xc1   : > { %1527 = vmatprep.subr.bf16.mxu0 %v1526_v11  ;;  %v1568_v8 = vpack.c.bf16 %v1044_v7, %v1042_v6  ;;  %v1570_v11 = vpack.c.bf16 %v1049_v10, %v1047_v9  ;;  %v1065_v34 = vld [vmem:[%s2360_s10 + $0x118] sm:$0xff]  ;;  %v1067_v39 = vld [vmem:[%s2360_s10 + $0x128] sm:$0xff]  ;;  %v1068_v43 = vld [vmem:[%s2360_s10 + $0x130] sm:$0xff] }
  0xc2   : > { %v1069_v40 = vld [vmem:[%s2360_s10 + $0x138] sm:$0xff]  ;;  %v1071_v45 = vld [vmem:[%s2360_s10 + $0x148] sm:$0xff]  ;;  %v1072_v49 = vld [vmem:[%s2360_s10 + $0x150] sm:$0xff] }
  0xc3   : > { %1569 = vmatpush1.bf16.msra.mxu1 %v1568_v8  ;;  %v1073_v46 = vld [vmem:[%s2360_s10 + $0x158] sm:$0xff]  ;;  %v1084_v3 = vld [vmem:[%s2360_s10 + $0x1b0] sm:$0xff]  ;;  %v1087_v5 = vld [vmem:[%s2360_s10 + $0x1c8] sm:$0xff] }
  0xc4   : > { %1529 = vmatpush1.bf16.msra.mxu0 %v1528_v17  ;;  %1571 = vmatprep.subr.bf16.mxu1 %v1570_v11  ;;  %v1574_v17 = vpack.c.bf16 %v1053_v16, %v1051_v15  ;;  %v1089_v6 = vld [vmem:[%s2360_s10 + $0x1d8] sm:$0xff]  ;;  %v1086_v8 = vld [vmem:[%s2360_s10 + $0x1c0] sm:$0xff]  ;;  %v1088_v9 = vld [vmem:[%s2360_s10 + $0x1d0] sm:$0xff] }
  0xc5   : > { %1531 = vmatprep.subr.bf16.mxu0 %v1530_v18  ;;  %v1050_v18 = vld [vmem:[%s2360_s10 + $0xa0] sm:$0xff]  ;;  %v1610_v7 = vpack.c.bf16 %v1089_v6, %v1087_v5  ;;  %v1091_v10 = vld [vmem:[%s2360_s10 + $0x1e8] sm:$0xff]  ;;  %v1612_v11 = vpack.c.bf16 %v1088_v9, %v1086_v8  ;;  %v1093_v12 = vld [vmem:[%s2360_s10 + $0x1f8] sm:$0xff] }
  0xc6   : > { %v1576_v20 = vpack.c.bf16 %v1052_v19, %v1050_v18  ;;  %v1090_v13 = vld [vmem:[%s2360_s10 + $0x1e0] sm:$0xff]  ;;  %v1614_v15 = vpack.c.bf16 %v1093_v12, %v1091_v10 }
  0xc7   : > { %1573 = vmatpush1.bf16.msra.mxu1 %v1572_v14  ;;  %v1092_v14 = vld [vmem:[%s2360_s10 + $0x1f0] sm:$0xff] }
  0xc8   : > { %1533 = vmatpush1.bf16.msra.mxu0 %v1532_v23  ;;  %1575 = vmatprep.subr.bf16.mxu1 %v1574_v17  ;;  %v1578_v23 = vpack.c.bf16 %v1057_v22, %v1055_v21  ;;  %v1616_v16 = vpack.c.bf16 %v1092_v14, %v1090_v13  ;;  %v459_v17 = vlaneseq }
  0xc9   : > { %1535 = vmatprep.subr.bf16.mxu0 %v1534_v24  ;;  %v1054_v24 = vld [vmem:[%s2360_s10 + $0xc0] sm:$0xff] }
  0xca   : > { %v1580_v26 = vpack.c.bf16 %v1056_v25, %v1054_v24  ;;  %v2509_v18 = vshrl.u32 %v459_v17, 7 }
  0xcb   : > { %1577 = vmatpush1.bf16.msra.mxu1 %v1576_v20  ;;  %v457_v20 = vld [vmem:[%s353_s12] sm:$0x3] }
  0xcc   : > { %1537 = vmatpush1.bf16.msra.mxu0 %v1536_v29  ;;  %1579 = vmatprep.subr.bf16.mxu1 %v1578_v23  ;;  %v1582_v29 = vpack.c.bf16 %v1061_v28, %v1059_v27  ;;  %3008 = vst [vmem:[#allocation21_spill] sm:$0xff] %v2509_v18  ;;  %v2965_v19 = vsub.s32 0, %v2509_v18  ;;  %v2964_v21 = vsub.s32 1, %v2509_v18 }
  0xcd   : > { %1539 = vmatprep.subr.bf16.mxu0 %v1538_v30  ;;  %v1058_v30 = vld [vmem:[%s2360_s10 + $0xe0] sm:$0xff] }
  0xce   : > { %v1584_v32 = vpack.c.bf16 %v1060_v31, %v1058_v30  ;;  %v2520_v22 = vrot.slane %v457_v20, %v2965_v19  ;;  %v2524_v23 = vrot.slane %v457_v20, %v2964_v21 }
  0xcf   : > { %1581 = vmatpush1.bf16.msra.mxu1 %v1580_v26 }
  0xd0   : > { %1541 = vmatpush1.bf16.msra.mxu0 %v1540_v35  ;;  %1583 = vmatprep.subr.bf16.mxu1 %v1582_v29  ;;  %v1586_v35 = vpack.c.bf16 %v1065_v34, %v1063_v33 }
  0xd1   : > { %1543 = vmatprep.subr.bf16.mxu0 %v1542_v36  ;;  %v1062_v36 = vld [vmem:[%s2360_s10 + $0x100] sm:$0xff] }
  0xd2   : > { %v1588_v38 = vpack.c.bf16 %v1064_v37, %v1062_v36 }
  0xd3   : > { %1585 = vmatpush1.bf16.msra.mxu1 %v1584_v32 }
  0xd4   : > { %1545 = vmatpush1.bf16.msra.mxu0 %v1544_v41  ;;  %1587 = vmatprep.subr.bf16.mxu1 %v1586_v35  ;;  %v1590_v41 = vpack.c.bf16 %v1069_v40, %v1067_v39 }
  0xd5   : > { %1547 = vmatprep.subr.bf16.mxu0 %v1546_v42  ;;  %v1066_v42 = vld [vmem:[%s2360_s10 + $0x120] sm:$0xff] }
  0xd6   : > { %v1592_v44 = vpack.c.bf16 %v1068_v43, %v1066_v42 }
  0xd7   : > { %1589 = vmatpush1.bf16.msra.mxu1 %v1588_v38 }
  0xd8   : > { %1549 = vmatpush1.bf16.msra.mxu0 %v1548_v47  ;;  %1591 = vmatprep.subr.bf16.mxu1 %v1590_v41  ;;  %v1594_v47 = vpack.c.bf16 %v1073_v46, %v1071_v45 }
  0xd9   : > { %1551 = vmatprep.subr.bf16.mxu0 %v1550_v48  ;;  %v1070_v48 = vld [vmem:[%s2360_s10 + $0x140] sm:$0xff] }
  0xda   : > { %v1596_v50 = vpack.c.bf16 %v1072_v49, %v1070_v48 }
  0xdb   : > { %1593 = vmatpush1.bf16.msra.mxu1 %v1592_v44 }
  0xdc   : > { %1553 = vmatpush1.bf16.msra.mxu0 %v1552_v51  ;;  %1595 = vmatprep.subr.bf16.mxu1 %v1594_v47  ;;  %v1075_v51 = vld [vmem:[%s2360_s10 + $0x168] sm:$0xff]  ;;  %v2968_v47 = vmov -1.0  }
  0xdf   : > { %534 = vmatmul.mubr.f32.vlgmr.msra.gmra.mrb[0].mxu0 %v377_v52  ;;  %1597 = vmatpush1.bf16.msra.mxu1 %v1596_v50  ;;  %v1077_v52 = vld [vmem:[%s2360_s10 + $0x178] sm:$0xff] }
  0xe0   : > { %539 = vmatprep.mubr.f32.mxu0 %v380_v53  ;;  %v1598_v53 = vpack.c.bf16 %v1077_v52, %v1075_v51 }
  0xe2   : > { %1599 = vmatprep.subr.bf16.mxu1 %v1598_v53 }
  0xe3   : > { %540 = vmatmul.mubr.f32.gmra.mrb[2].mxu0 %v379_v54  ;;  %v1074_v54 = vld [vmem:[%s2360_s10 + $0x160] sm:$0xff] }
  0xe4   : > { %545 = vmatprep.mubr.f32.mxu0 %v382_v55  ;;  %v1076_v55 = vld [vmem:[%s2360_s10 + $0x170] sm:$0xff] }
  0xe7   : > { %546 = vmatmul.mubr.f32.gmra.mrb[4].mxu0 %v381_v56  ;;  %v1600_v56 = vpack.c.bf16 %v1076_v55, %v1074_v54 }
  0xe8   : > { %551 = vmatprep.mubr.f32.mxu0 %v384_v57  ;;  %v1079_v57 = vld [vmem:[%s2360_s10 + $0x188] sm:$0xff] }
  0xe9   : > { %1601 = vmatpush1.bf16.msra.mxu1 %v1600_v56 }
  0xeb   : > { %552 = vmatmul.mubr.f32.gmra.mrb[6].mxu0 %v383_v58  ;;  %v1081_v58 = vld [vmem:[%s2360_s10 + $0x198] sm:$0xff] }
  0xec   : > { %557 = vmatprep.mubr.f32.mxu0 %v386_v59  ;;  %v1602_v59 = vpack.c.bf16 %v1081_v58, %v1079_v57 }
  0xee   : > { %1603 = vmatprep.subr.bf16.mxu1 %v1602_v59 }
  0xef   : > { %558 = vmatmul.mubr.f32.gmra.mrb[8].mxu0 %v385_v60  ;;  %v1078_v60 = vld [vmem:[%s2360_s10 + $0x180] sm:$0xff] }
  0xf0   : > { %563 = vmatprep.mubr.f32.mxu0 %v388_v61  ;;  %v1080_v61 = vld [vmem:[%s2360_s10 + $0x190] sm:$0xff] }
  0xf3   : > { %564 = vmatmul.mubr.f32.gmra.mrb[10].mxu0 %v387_v62  ;;  %v1604_v62 = vpack.c.bf16 %v1080_v61, %v1078_v60 }
  0xf4   : > { %569 = vmatprep.mubr.f32.mxu0 %v390_v63  ;;  %v1083_v63 = vld [vmem:[%s2360_s10 + $0x1a8] sm:$0xff] }
  0xf5   : > { %1605 = vmatpush1.bf16.msra.mxu1 %v1604_v62 }
  0xf7   : > { %570 = vmatmul.mubr.f32.gmra.mrb[12].mxu0 %v389_v0  ;;  %v1085_v0 = vld [vmem:[%s2360_s10 + $0x1b8] sm:$0xff] }
  0xf8   : > { %575 = vmatprep.mubr.f32.mxu0 %v392_v1  ;;  %v1606_v1 = vpack.c.bf16 %v1085_v0, %v1083_v63 }
  0xfa   : > { %1607 = vmatprep.subr.bf16.mxu1 %v1606_v1 }
  0xfb   : > { %576 = vmatmul.mubr.f32.gmra.mrb[14].mxu0 %v391_v2  ;;  %v1082_v2 = vld [vmem:[%s2360_s10 + $0x1a0] sm:$0xff] }
  0xfc   : > { %v1608_v4 = vpack.c.bf16 %v1084_v3, %v1082_v2 }
  0xfe   : > { %1609 = vmatpush1.bf16.msra.mxu1 %v1608_v4 }
  0xff   : > { %1611 = vmatprep.subr.bf16.mxu1 %v1610_v7 }
 0x102   : > { %1613 = vmatpush1.bf16.msra.mxu1 %v1612_v11 }
 0x103   : > { %1615 = vmatprep.subr.bf16.mxu1 %v1614_v15 }
 0x106   : > { %1617 = vmatpush1.bf16.msra.mxu1 %v1616_v16 }
 0x1b2   : > { %v535_v24 = vpop.f32.mrb[0].mxu0 }
 0x1b3   : > { %v536_v25 = vadd.f32 %v535_v24, %v2520_v22  ;;  %v537_v26 = vpop.f32.mrb[1].mxu0 }
 0x1b4   : > { %v538_v27 = vadd.f32 %v537_v26, %v2524_v23 }
 0x1b5   : > { %v598_v28 = vmul.f32 0.70710677, %v536_v25  ;;  %v2533_v46 = vmul.f32 0.5, %v536_v25 }
 0x1b6   : > { %v2528_v29 = vmul.f32 0.70710677, %v538_v27  ;;  %v541_v30 = vpop.f32.mrb[2].mxu0  ;;  %v2538_v51 = vmul.f32 0.5, %v538_v27 }
 0x1b7   : > { %v646_v31 = vand.u32 2147483647, %v598_v28  ;;  %v542_v32 = vadd.f32 %v541_v30, %v2520_v22  ;;  %v543_v33 = vpop.f32.mrb[3].mxu0  ;;  %vm614_vm0 = vcmp.ge.f32.partialorder %v598_v28, 0.0 }
 0x1b8   : > { %v647_v34 = vand.u32 2147483647, %v2528_v29  ;;  %v544_v35 = vadd.f32 %v543_v33, %v2524_v23  ;;  %v2536_v48 = vsel %vm614_vm0, 1.0, %v2968_v47  ;;  %vm615_vm10 = vcmp.ge.f32.partialorder %v2528_v29, 0.0 }
 0x1b9   : > { %v662_v36 = vmul.f32 0.3275911, %v646_v31  ;;  %v870_v37 = vsub.f32 0.0, %v646_v31  ;;  %v600_v38 = vmul.f32 0.70710677, %v542_v32  ;;  %v2542_v2 = vmul.f32 0.5, %v542_v32 }
 0x1ba   : > { %v663_v39 = vmul.f32 0.3275911, %v647_v34  ;;  %v871_v40 = vsub.f32 0.0, %v647_v34  ;;  %v601_v41 = vmul.f32 0.70710677, %v544_v35  ;;  %v547_v45 = vpop.f32.mrb[4].mxu0 }
 0x1bb   : > { %v678_v42 = vadd.f32 1.0, %v662_v36  ;;  %v886_v43 = vmul.f32 %v870_v37, %v646_v31  ;;  %v648_v44 = vand.u32 2147483647, %v600_v38  ;;  %v549_v50 = vpop.f32.mrb[5].mxu0  ;;  %vm616_vm1 = vcmp.ge.f32.partialorder %v600_v38, 0.0 }
 0x1bc   : > { %v887_v49 = vmul.f32 %v871_v40, %v647_v34  ;;  %v679_v52 = vadd.f32 1.0, %v663_v39  ;;  %vm617_vm2 = vcmp.ge.f32.partialorder %v601_v41, 0.0  ;;  %v649_v56 = vand.u32 2147483647, %v601_v41 }
 0x1bd   : > { %v664_v53 = vmul.f32 0.3275911, %v648_v44  ;;  %v872_v54 = vsub.f32 0.0, %v648_v44  ;;  %v902_v55 = vmul.f32 1.442695, %v886_v43  ;;  %1737 = vrcp.f32 %v678_v42 }
 0x1be   : > { %v553_v57 = vpop.f32.mrb[6].mxu0  ;;  %v904_v58 = vmul.f32 1.442695, %v887_v49  ;;  %v548_v60 = vadd.f32 %v547_v45, %v2520_v22  ;;  %v665_v63 = vmul.f32 0.3275911, %v649_v56  ;;  %v873_v0 = vsub.f32 0.0, %v649_v56 }
 0x1bf   : > { %v680_v59 = vadd.f32 1.0, %v664_v53  ;;  %v555_v61 = vpop.f32.mrb[7].mxu0  ;;  %v888_v62 = vmul.f32 %v872_v54, %v648_v44  ;;  %v550_v1 = vadd.f32 %v549_v50, %v2524_v23  ;;  %1739 = vrcp.f32 %v679_v52 }
 0x1c0   : > { %v2544_v3 = vmul.f32 0.5, %v544_v35  ;;  %v602_v4 = vmul.f32 0.70710677, %v548_v60  ;;  %1741 = vpow2.f32 %v902_v55  ;;  %v2548_v5 = vsel %vm616_vm1, 1.0, %v2968_v47 }
 0x1c1   : > { %v889_v6 = vmul.f32 %v873_v0, %v649_v56  ;;  %v603_v7 = vmul.f32 0.70710677, %v550_v1  ;;  %1743 = vpow2.f32 %v904_v58  ;;  %v2552_v9 = vsel %vm617_vm2, 1.0, %v2968_v47 }
 0x1c2   : > { %v559_v8 = vpop.f32.mrb[8].mxu0  ;;  %v650_v10 = vand.u32 2147483647, %v602_v4  ;;  %v554_v11 = vadd.f32 %v553_v57, %v2520_v22  ;;  %1745 = vrcp.f32 %v680_v59  ;;  %v906_v13 = vmul.f32 1.442695, %v888_v62 }
 0x1c3   : > { %v561_v12 = vpop.f32.mrb[9].mxu0  ;;  %v681_v14 = vadd.f32 1.0, %v665_v63  ;;  %v2555_v15 = vmul.f32 0.5, %v548_v60  ;;  %vm618_vm3 = vcmp.ge.f32.partialorder %v602_v4, 0.0  ;;  %v651_v20 = vand.u32 2147483647, %v603_v7 }
 0x1c4   : > { %v666_v16 = vmul.f32 0.3275911, %v650_v10  ;;  %v874_v17 = vsub.f32 0.0, %v650_v10  ;;  %v908_v24 = vmul.f32 1.442695, %v889_v6  ;;  %vm619_vm4 = vcmp.ge.f32.partialorder %v603_v7, 0.0 }
 0x1c5   : > { %v604_v25 = vmul.f32 0.70710677, %v554_v11  ;;  %v556_v26 = vadd.f32 %v555_v61, %v2524_v23  ;;  %v667_v31 = vmul.f32 0.3275911, %v651_v20  ;;  %v875_v32 = vsub.f32 0.0, %v651_v20 }
 0x1c6   : > { %v565_v27 = vpop.f32.mrb[10].mxu0  ;;  %v682_v28 = vadd.f32 1.0, %v666_v16  ;;  %v890_v30 = vmul.f32 %v874_v17, %v650_v10  ;;  %1747 = vpow2.f32 %v906_v13  ;;  %v2558_v34 = vmul.f32 0.5, %v550_v1 }
 0x1c7   : > { %v567_v33 = vpop.f32.mrb[11].mxu0  ;;  %v652_v35 = vand.u32 2147483647, %v604_v25  ;;  %v605_v36 = vmul.f32 0.70710677, %v556_v26  ;;  %v2560_v37 = vpop.eup %1737  ;;  %1749 = vrcp.f32 %v681_v14  ;;  %v2564_v38 = vsel %vm618_vm3, 1.0, %v2968_v47 }
 0x1c8   : > { %v2568_v39 = vsel %vm619_vm4, 1.0, %v2968_v47  ;;  %v891_v40 = vmul.f32 %v875_v32, %v651_v20  ;;  %1751 = vpow2.f32 %v908_v24  ;;  %v910_v41 = vmul.f32 1.442695, %v890_v30 }
 0x1c9   : > { %v668_v42 = vmul.f32 0.3275911, %v652_v35  ;;  %v876_v43 = vsub.f32 0.0, %v652_v35  ;;  %v2572_v45 = vpop.eup %1739  ;;  %1753 = vrcp.f32 %v682_v28  ;;  %v683_v49 = vadd.f32 1.0, %v667_v31 }
 0x1ca   : > { %v2570_v44 = vpop.f32.mrb[12].mxu0  ;;  %vm620_vm5 = vcmp.ge.f32.partialorder %v604_v25, 0.0  ;;  %v653_v50 = vand.u32 2147483647, %v605_v36  ;;  %v2576_v53 = vpop.eup %1741  ;;  %v912_v54 = vmul.f32 1.442695, %v891_v40  ;;  %v560_v56 = vadd.f32 %v559_v8, %v2520_v22 }
 0x1cb   : > { %v2574_v52 = vpop.f32.mrb[13].mxu0  ;;  %v684_v55 = vadd.f32 1.0, %v668_v42  ;;  %vm621_vm6 = vcmp.ge.f32.partialorder %v605_v36, 0.0  ;;  %v2579_v57 = vpop.eup %1743  ;;  %v892_v58 = vmul.f32 %v876_v43, %v652_v35  ;;  %v562_v61 = vadd.f32 %v561_v12, %v2524_v23 }
 0x1cc   : > { %v669_v59 = vmul.f32 0.3275911, %v653_v50  ;;  %v877_v60 = vsub.f32 0.0, %v653_v50  ;;  %v2582_v62 = vpop.eup %1745  ;;  %1755 = vpow2.f32 %v910_v41  ;;  %v2584_v63 = vmul.f32 0.5, %v554_v11 }
 0x1cd   : > { %v2586_v0 = vmul.f32 0.5, %v556_v26  ;;  %v606_v1 = vmul.f32 0.70710677, %v560_v56  ;;  %1757 = vrcp.f32 %v683_v49  ;;  %v2592_v6 = vsel %vm620_vm5, 1.0, %v2968_v47 }
 0x1ce   : > { %v2588_v4 = vpop.f32.mrb[14].mxu0  ;;  %v893_v7 = vmul.f32 %v877_v60, %v653_v50  ;;  %v607_v8 = vmul.f32 0.70710677, %v562_v61  ;;  %1759 = vpow2.f32 %v912_v54  ;;  %v2598_v12 = vsel %vm621_vm6, 1.0, %v2968_v47 }
 0x1cf   : > { %v2594_v10 = vpop.f32.mrb[15].mxu0  ;;  %v654_v11 = vand.u32 2147483647, %v606_v1  ;;  %v2601_v13 = vadd.f32 %v565_v27, %v2520_v22  ;;  %1761 = vrcp.f32 %v684_v55  ;;  %v914_v14 = vmul.f32 1.442695, %v892_v58 }
 0x1d0   : > { %v685_v16 = vadd.f32 1.0, %v669_v59  ;;  %v2603_v17 = vmul.f32 0.5, %v560_v56  ;;  %v2605_v20 = vpop.eup %1747  ;;  %v2607_v26 = vmul.f32 0.5, %v562_v61  ;;  %v655_v28 = vand.u32 2147483647, %v607_v8 }
 0x1d1   : > { %3009 = vst [vmem:[#allocation22_spill] sm:$0xff] %v2601_v13  ;;  %v670_v24 = vmul.f32 0.3275911, %v654_v11  ;;  %v878_v25 = vsub.f32 0.0, %v654_v11  ;;  %v2609_v30 = vpop.eup %1749  ;;  %v916_v31 = vmul.f32 1.442695, %v893_v7  ;;  %v568_v27 = vadd.f32 %v567_v33, %v2524_v23 }
 0x1d2   : > { %3010 = vst [vmem:[#allocation23_spill] sm:$0xff] %v2603_v17  ;;  %3011 = vst [vmem:[#allocation24_spill] sm:$0xff] %v2607_v26  ;;  %vm622_vm7 = vcmp.ge.f32.partialorder %v606_v1, 0.0  ;;  %v608_v32 = vmul.f32 0.70710677, %v2601_v13  ;;  %v2613_v35 = vpop.eup %1751  ;;  %vm623_vm8 = vcmp.ge.f32.partialorder %v607_v8, 0.0  ;;  %1763 = vpow2.f32 %v914_v14 }
 0x1d3   : > { %v894_v36 = vmul.f32 %v878_v25, %v654_v11  ;;  %v671_v40 = vmul.f32 0.3275911, %v655_v28  ;;  %v879_v41 = vsub.f32 0.0, %v655_v28  ;;  %v2615_v42 = vpop.eup %1753  ;;  %v686_v43 = vadd.f32 1.0, %v670_v24 }
 0x1d4   : > { %v656_v49 = vand.u32 2147483647, %v608_v32  ;;  %v609_v50 = vmul.f32 0.70710677, %v568_v27  ;;  %1765 = vrcp.f32 %v685_v16  ;;  %v2618_v54 = vsel %vm622_vm7, 1.0, %v2968_v47 }
 0x1d5   : > { %3012 = vst [vmem:[#allocation25_spill] sm:$0xff] %v2618_v54  ;;  %v918_v55 = vmul.f32 1.442695, %v894_v36  ;;  %v895_v56 = vmul.f32 %v879_v41, %v655_v28  ;;  %v2621_v33 = vsel %vm623_vm8, 1.0, %v2968_v47  ;;  %v687_v58 = vadd.f32 1.0, %v671_v40 }
 0x1d6   : > { %3013 = vst [vmem:[#allocation26_spill] sm:$0xff] %v2621_v33  ;;  %v672_v59 = vmul.f32 0.3275911, %v656_v49  ;;  %v880_v60 = vsub.f32 0.0, %v656_v49  ;;  %v2623_v61 = vpop.eup %1755  ;;  %1767 = vpow2.f32 %v916_v31  ;;  %vm624_vm9 = vcmp.ge.f32.partialorder %v608_v32, 0.0 }
 0x1d7   : > { %v920_v1 = vmul.f32 1.442695, %v895_v56  ;;  %v657_v7 = vand.u32 2147483647, %v609_v50  ;;  %v2625_v8 = vpop.eup %1757  ;;  %1769 = vrcp.f32 %v686_v43  ;;  %v2629_v16 = vadd.f32 %v2570_v44, %v2520_v22 }
 0x1d8   : > { %v688_v11 = vadd.f32 1.0, %v672_v59  ;;  %v896_v14 = vmul.f32 %v880_v60, %v656_v49  ;;  %v2631_v24 = vpop.eup %1759  ;;  %1771 = vpow2.f32 %v918_v55  ;;  %v2635_v31 = vadd.f32 %v2574_v52, %v2524_v23 }
 0x1d9   : > { %3014 = vst [vmem:[#allocation27_spill] sm:$0xff] %v2629_v16  ;;  %v673_v25 = vmul.f32 0.3275911, %v657_v7  ;;  %v881_v28 = vsub.f32 0.0, %v657_v7  ;;  %v2637_v36 = vpop.eup %1761  ;;  %1773 = vrcp.f32 %v687_v58  ;;  %v2639_v41 = vmul.f32 0.5, %v568_v27 }
 0x1da   : > { %3015 = vst [vmem:[#allocation28_spill] sm:$0xff] %v2635_v31  ;;  %v922_v40 = vmul.f32 1.442695, %v896_v14  ;;  %v610_v43 = vmul.f32 0.70710677, %v2629_v16  ;;  %1775 = vpow2.f32 %v920_v1  ;;  %vm625_vm11 = vcmp.ge.f32.partialorder %v609_v50, 0.0 }
 0x1db   : > { %3016 = vst [vmem:[#allocation29_spill] sm:$0xff] %v2639_v41  ;;  %v689_v44 = vadd.f32 1.0, %v673_v25  ;;  %v897_v49 = vmul.f32 %v881_v28, %v657_v7  ;;  %v611_v55 = vmul.f32 0.70710677, %v2635_v31  ;;  %1777 = vrcp.f32 %v688_v11 }
 0x1dc   : > { %v658_v56 = vand.u32 2147483647, %v610_v43  ;;  %v2646_v52 = vadd.f32 %v2588_v4, %v2520_v22  ;;  %v2650_v27 = vsel %vm624_vm9, 1.0, %v2968_v47  ;;  %1779 = vpow2.f32 %v922_v40  ;;  %v2652_v59 = vpop.eup %1763 }
 0x1dd   : > { %3018 = vst [vmem:[#allocation31_spill] sm:$0xff] %v2650_v27  ;;  %v924_v58 = vmul.f32 1.442695, %v897_v49  ;;  %vm626_vm12 = vcmp.ge.f32.partialorder %v610_v43, 0.0  ;;  %vm627_vm13 = vcmp.ge.f32.partialorder %v611_v55, 0.0  ;;  %v2657_v50 = vsel %vm625_vm11, 1.0, %v2968_v47 }
 0x1de   : > { %3017 = vst [vmem:[#allocation30_spill] sm:$0xff] %v2646_v52  ;;  %v674_v60 = vmul.f32 0.3275911, %v658_v56  ;;  %v882_v1 = vsub.f32 0.0, %v658_v56  ;;  %v659_v7 = vand.u32 2147483647, %v611_v55  ;;  %v2654_v11 = vpop.eup %1765  ;;  %1781 = vrcp.f32 %v689_v44 }
 0x1df   : > { %3019 = vst [vmem:[#allocation32_spill] sm:$0xff] %v2657_v50  ;;  %v2660_v22 = vmul.f32 0.70710677, %v2646_v52  ;;  %v2664_v4 = vadd.f32 %v2594_v10, %v2524_v23  ;;  %v2670_v49 = vsel %vm626_vm12, 1.0, %v2968_v47  ;;  %v2673_v55 = vsel %vm627_vm13, 1.0, %v2968_v47 }
 0x1e0   : > { %v690_v32 = vadd.f32 1.0, %v674_v60  ;;  %v898_v14 = vmul.f32 %v882_v1, %v658_v56  ;;  %v675_v25 = vmul.f32 0.3275911, %v659_v7  ;;  %v883_v28 = vsub.f32 0.0, %v659_v7  ;;  %v2666_v40 = vpop.eup %1767  ;;  %3021 = vst [vmem:[#allocation34_spill] sm:$0xff] %v2670_v49  ;;  %3022 = vst [vmem:[#allocation35_spill] sm:$0xff] %v2673_v55 }
 0x1e1   : > { %3020 = vst [vmem:[#allocation33_spill] sm:$0xff] %v2664_v4  ;;  %v660_v44 = vand.u32 2147483647, %v2660_v22  ;;  %v613_v21 = vmul.f32 0.70710677, %v2664_v4  ;;  %v2677_v19 = vpop.eup %1769  ;;  %1783 = vpow2.f32 %v924_v58  ;;  %v3024_v52 = vmov -1.0  }
 0x1e2   : > { %v926_v23 = vmul.f32 1.442695, %v898_v14  ;;  %v691_v10 = vadd.f32 1.0, %v675_v25  ;;  %v899_v56 = vmul.f32 %v883_v28, %v659_v7  ;;  %v2679_v60 = vpop.eup %1771  ;;  %1785 = vrcp.f32 %v690_v32 }
 0x1e3   : > { %3023 = vst [vmem:[#allocation36_spill] sm:$0xff] %v2679_v60  ;;  %v676_v1 = vmul.f32 0.3275911, %v660_v44  ;;  %v884_v43 = vsub.f32 0.0, %v660_v44  ;;  %vm629_vm14 = vcmp.ge.f32.partialorder %v613_v21, 0.0  ;;  %v2681_v18 = vpop.eup %1773  ;;  %v2691_v7 = vsel %vm615_vm10, 1.0, %v3024_v52 }
 0x1e4   : > { %1787 = vpow2.f32 %v926_v23  ;;  %v928_v47 = vmul.f32 1.442695, %v899_v56  ;;  %v2684_v16 = vsel %vm629_vm14, 1.0, %v3024_v52  ;;  %v661_v4 = vand.u32 2147483647, %v613_v21  ;;  %v2686_v13 = vpop.eup %1775 }
 0x1e5   : > { %3025 = vst [vmem:[#allocation37_spill] sm:$0xff] %v2684_v16  ;;  %1789 = vrcp.f32 %v691_v10  ;;  %v692_v58 = vadd.f32 1.0, %v676_v1  ;;  %v900_v14 = vmul.f32 %v884_v43, %v660_v44  ;;  %v2693_v32 = vpop.eup %1777  ;;  %v727_v23 = vmul.f32 1.0614054, %v2572_v45 }
 0x1e6   : > { %1791 = vpow2.f32 %v928_v47  ;;  %v677_v25 = vmul.f32 0.3275911, %v661_v4  ;;  %v885_v28 = vsub.f32 0.0, %v661_v4  ;;  %v2696_v56 = vpop.eup %1779  ;;  %v726_v10 = vmul.f32 1.0614054, %v2560_v37 }
 0x1e7   : > { %3026 = vst [vmem:[#allocation38_spill] sm:$0xff] %v2696_v56  ;;  %1793 = vrcp.f32 %v692_v58  ;;  %v930_v21 = vmul.f32 1.442695, %v900_v14  ;;  %v729_v44 = vmul.f32 1.0614054, %v2609_v30  ;;  %vm628_vm15 = vcmp.ge.f32.partialorder %v2660_v22, 0.0 }
 0x1e8   : > { %v693_v1 = vadd.f32 1.0, %v677_v25  ;;  %v901_v43 = vmul.f32 %v885_v28, %v661_v4  ;;  %v743_v29 = vadd.f32 -1.4531521, %v727_v23  ;;  %v728_v52 = vmul.f32 1.0614054, %v2582_v62  ;;  %v2701_v16 = vpop.eup %1781 }
 0x1e9   : > { %1795 = vpow2.f32 %v930_v21  ;;  %v742_v47 = vadd.f32 -1.4531521, %v726_v10  ;;  %v745_v31 = vadd.f32 -1.4531521, %v729_v44  ;;  %v731_v49 = vmul.f32 1.0614054, %v2625_v8 }
 0x1ea   : > { %1797 = vrcp.f32 %v693_v1  ;;  %v932_v41 = vmul.f32 1.442695, %v901_v43  ;;  %v759_v58 = vmul.f32 %v2572_v45, %v743_v29  ;;  %v744_v14 = vadd.f32 -1.4531521, %v728_v52 }
 0x1eb   : > { %v758_v17 = vmul.f32 %v2560_v37, %v742_v47  ;;  %v761_v25 = vmul.f32 %v2609_v30, %v745_v31  ;;  %v747_v4 = vadd.f32 -1.4531521, %v731_v49  ;;  %v730_v28 = vmul.f32 1.0614054, %v2615_v42  ;;  %v2708_v23 = vpop.eup %1783 }
 0x1ec   : > { %3027 = vst [vmem:[#allocation39_spill] sm:$0xff] %v2708_v23  ;;  %1799 = vpow2.f32 %v932_v41  ;;  %v775_v21 = vadd.f32 1.4214138, %v759_v58  ;;  %v760_v10 = vmul.f32 %v2582_v62, %v744_v14  ;;  %v733_v44 = vmul.f32 1.0614054, %v2654_v11  ;;  %v2712_v1 = vpop.eup %1785 }
 0x1ed   : > { %v774_v43 = vadd.f32 1.4214138, %v758_v17  ;;  %v777_v29 = vadd.f32 1.4214138, %v761_v25  ;;  %v763_v52 = vmul.f32 %v2625_v8, %v747_v4  ;;  %v746_v47 = vadd.f32 -1.4531521, %v730_v28 }
 0x1ee   : > { %v2715_v26 = vpop.eup %1787  ;;  %v791_v31 = vmul.f32 %v2572_v45, %v775_v21  ;;  %v776_v49 = vadd.f32 1.4214138, %v760_v10  ;;  %v749_v55 = vadd.f32 -1.4531521, %v733_v44  ;;  %v732_v41 = vmul.f32 1.0614054, %v2637_v36 }
 0x1ef   : > { %3028 = vst [vmem:[#allocation40_spill] sm:$0xff] %v2715_v26  ;;  %v2719_v58 = vpop.eup %1789  ;;  %v790_v14 = vmul.f32 %v2560_v37, %v774_v43  ;;  %v793_v27 = vmul.f32 %v2609_v30, %v777_v29  ;;  %v779_v50 = vadd.f32 1.4214138, %v763_v52  ;;  %v762_v17 = vmul.f32 %v2615_v42, %v746_v47 }
 0x1f0   : > { %v2724_v25 = vpop.eup %1791  ;;  %v807_v4 = vadd.f32 -0.28449672, %v791_v31  ;;  %v792_v28 = vmul.f32 %v2582_v62, %v776_v49  ;;  %v765_v21 = vmul.f32 %v2654_v11, %v749_v55  ;;  %v748_v10 = vadd.f32 -1.4531521, %v732_v41 }
 0x1f1   : > { %3029 = vst [vmem:[#allocation41_spill] sm:$0xff] %v2724_v25  ;;  %v2728_v44 = vpop.eup %1793  ;;  %v806_v26 = vadd.f32 -0.28449672, %v790_v14  ;;  %v809_v54 = vadd.f32 -0.28449672, %v793_v27  ;;  %v795_v33 = vmul.f32 %v2625_v8, %v779_v50 }
 0x1f2   : > { %v778_v43 = vadd.f32 1.4214138, %v762_v17  ;;  %v823_v29 = vmul.f32 %v2572_v45, %v807_v4  ;;  %v808_v52 = vadd.f32 -0.28449672, %v792_v28  ;;  %v781_v56 = vadd.f32 1.4214138, %v765_v21 }
 0x1f3   : > { %v764_v47 = vmul.f32 %v2637_v36, %v748_v10  ;;  %v2733_v25 = vpop.eup %1795  ;;  %v822_v31 = vmul.f32 %v2560_v37, %v806_v26  ;;  %v825_v55 = vmul.f32 %v2609_v30, %v809_v54  ;;  %v811_v49 = vadd.f32 -0.28449672, %v795_v33 }
 0x1f4   : > { %3030 = vst [vmem:[#allocation42_spill] sm:$0xff] %v2733_v25  ;;  %v794_v41 = vmul.f32 %v2615_v42, %v778_v43  ;;  %v2738_v14 = vpop.eup %1797  ;;  %v839_v27 = vadd.f32 0.2548296, %v823_v29  ;;  %v824_v50 = vmul.f32 %v2582_v62, %v808_v52  ;;  %v797_v17 = vmul.f32 %v2654_v11, %v781_v56 }
 0x1f5   : > { %v780_v4 = vadd.f32 1.4214138, %v764_v47  ;;  %v838_v28 = vadd.f32 0.2548296, %v822_v31  ;;  %v841_v21 = vadd.f32 0.2548296, %v825_v55  ;;  %v827_v10 = vmul.f32 %v2625_v8, %v811_v49 }
 0x1f6   : > { %v810_v25 = vadd.f32 -0.28449672, %v794_v41  ;;  %v2743_v23 = vpop.eup %1799  ;;  %v855_v26 = vmul.f32 %v2572_v45, %v839_v27  ;;  %v840_v54 = vadd.f32 0.2548296, %v824_v50  ;;  %v813_v33 = vadd.f32 -0.28449672, %v797_v17 }
 0x1f7   : > { %v796_v43 = vmul.f32 %v2637_v36, %v780_v4  ;;  %v854_v29 = vmul.f32 %v2560_v37, %v838_v28  ;;  %v857_v52 = vmul.f32 %v2609_v30, %v841_v21  ;;  %v843_v60 = vadd.f32 0.2548296, %v827_v10 }
 0x1f8   : > { %v826_v56 = vmul.f32 %v2615_v42, %v810_v25  ;;  %v935_v47 = vmul.f32 %v2579_v57, %v855_v26  ;;  %v856_v31 = vmul.f32 %v2582_v62, %v840_v54  ;;  %v829_v55 = vmul.f32 %v2654_v11, %v813_v33 }
 0x1f9   : > { %v812_v49 = vadd.f32 -0.28449672, %v796_v43  ;;  %v934_v45 = vmul.f32 %v2576_v53, %v854_v29  ;;  %v937_v41 = vmul.f32 %v2613_v35, %v857_v52  ;;  %v859_v27 = vmul.f32 %v2625_v8, %v843_v60 }
 0x1fa   : > { %v842_v50 = vadd.f32 0.2548296, %v826_v56  ;;  %v951_v37 = vsub.f32 1.0, %v935_v47  ;;  %v936_v30 = vmul.f32 %v2605_v20, %v856_v31  ;;  %v845_v17 = vadd.f32 0.2548296, %v829_v55 }
 0x1fb   : > { %v828_v25 = vmul.f32 %v2637_v36, %v812_v49  ;;  %v950_v4 = vsub.f32 1.0, %v934_v45  ;;  %v953_v57 = vsub.f32 1.0, %v937_v41  ;;  %v939_v62 = vmul.f32 %v2631_v24, %v859_v27 }
 0x1fc   : > { %v858_v28 = vmul.f32 %v2615_v42, %v842_v50  ;;  %v967_v21 = vmul.f32 %v951_v37, %v2691_v7  ;;  %v952_v53 = vsub.f32 1.0, %v936_v30  ;;  %v861_v35 = vmul.f32 %v2654_v11, %v845_v17 }
 0x1fd   : > { %v844_v10 = vadd.f32 0.2548296, %v828_v25  ;;  %v966_v8 = vmul.f32 %v950_v4, %v2536_v48  ;;  %v969_v60 = vmul.f32 %v953_v57, %v2552_v9  ;;  %v955_v20 = vsub.f32 1.0, %v939_v62 }
 0x1fe   : > { %v938_v26 = vmul.f32 %v2623_v61, %v858_v28  ;;  %v983_v54 = vadd.f32 1.0, %v967_v21  ;;  %v968_v33 = vmul.f32 %v952_v53, %v2548_v5  ;;  %v941_v24 = vmul.f32 %v2666_v40, %v861_v35 }
 0x1ff   : > { %v860_v42 = vmul.f32 %v2637_v36, %v844_v10  ;;  %v982_v43 = vadd.f32 1.0, %v966_v8  ;;  %v985_v7 = vadd.f32 1.0, %v969_v60  ;;  %v971_v29 = vmul.f32 %v955_v20, %v2568_v39 }
 0x200   : > { %v954_v11 = vsub.f32 1.0, %v938_v26  ;;  %v999_v52 = vmul.f32 %v983_v54, %v2538_v51  ;;  %v984_v48 = vadd.f32 1.0, %v968_v33  ;;  %v957_v56 = vsub.f32 1.0, %v941_v24 }
 0x201   : > { %v940_v9 = vmul.f32 %v2652_v59, %v860_v42  ;;  %v998_v61 = vmul.f32 %v982_v43, %v2533_v46  ;;  %v1001_v47 = vmul.f32 %v985_v7, %v2544_v3  ;;  %v987_v5 = vadd.f32 1.0, %v971_v29 }
 0x202   : > { %v970_v40 = vmul.f32 %v954_v11, %v2564_v38  ;;  %1158 = vmatprep.mubr.f32.mxu1 %v999_v52  ;;  %v1000_v36 = vmul.f32 %v984_v48, %v2542_v2  ;;  %v973_v31 = vmul.f32 %v957_v56, %v2598_v12  ;;  %v735_v55 = vmul.f32 1.0614054, %v2681_v18 }
 0x203   : > { %v956_v39 = vsub.f32 1.0, %v940_v9  ;;  %1159 = vmatmul.mubr.f32.vlgmr.msra.gmra.mrb[0].mxu1 %v998_v61  ;;  %v1003_v51 = vmul.f32 %v987_v5, %v2558_v34  ;;  %v734_v59 = vmul.f32 1.0614054, %v2677_v19  ;;  %v737_v46 = vmul.f32 1.0614054, %v2701_v16 }
 0x204   : > { %v986_v49 = vadd.f32 1.0, %v970_v40  ;;  %1164 = vmatprep.mubr.f32.mxu1 %v1001_v47  ;;  %v989_v3 = vadd.f32 1.0, %v973_v31  ;;  %v751_v45 = vadd.f32 -1.4531521, %v735_v55  ;;  %v736_v2 = vmul.f32 1.0614054, %v2693_v32 }
 0x205   : > { %v972_v38 = vmul.f32 %v956_v39, %v2592_v6  ;;  %v750_v41 = vadd.f32 -1.4531521, %v734_v59  ;;  %v753_v27 = vadd.f32 -1.4531521, %v737_v46  ;;  %v739_v50 = vmul.f32 1.0614054, %v2719_v58 }
 0x206   : > { %v1002_v12 = vmul.f32 %v986_v49, %v2555_v15  ;;  %v1005_v34 = vmul.f32 %v989_v3, %v2586_v0  ;;  %v767_v30 = vmul.f32 %v2681_v18, %v751_v45  ;;  %v752_v17 = vadd.f32 -1.4531521, %v736_v2 }
 0x207   : > { %v988_v37 = vadd.f32 1.0, %v972_v38  ;;  %1165 = vmatmul.mubr.f32.gmra.mrb[2].mxu1 %v1000_v36  ;;  %v766_v25 = vmul.f32 %v2677_v19, %v750_v41  ;;  %v769_v6 = vmul.f32 %v2701_v16, %v753_v27  ;;  %v755_v4 = vadd.f32 -1.4531521, %v739_v50 }
 0x208   : > { %v738_v57 = vmul.f32 1.0614054, %v2712_v1  ;;  %1170 = vmatprep.mubr.f32.mxu1 %v1003_v51  ;;  %v783_v62 = vadd.f32 1.4214138, %v767_v30  ;;  %v768_v28 = vmul.f32 %v2693_v32, %v752_v17  ;;  %v741_v0 = vmul.f32 1.0614054, %v2738_v14 }
 0x209   : > { %v1004_v15 = vmul.f32 %v988_v37, %v2584_v63  ;;  %v782_v21 = vadd.f32 1.4214138, %v766_v25  ;;  %v785_v53 = vadd.f32 1.4214138, %v769_v6  ;;  %v771_v35 = vmul.f32 %v2719_v58, %v755_v4 }
 0x20a   : > { %v754_v10 = vadd.f32 -1.4531521, %v738_v57  ;;  %v799_v8 = vmul.f32 %v2681_v18, %v783_v62  ;;  %v784_v60 = vadd.f32 1.4214138, %v768_v28  ;;  %v757_v20 = vadd.f32 -1.4531521, %v741_v0 }
 0x20b   : > { %v740_v26 = vmul.f32 1.0614054, %v2728_v44  ;;  %1171 = vmatmul.mubr.f32.gmra.mrb[4].mxu1 %v1002_v12  ;;  %v798_v54 = vmul.f32 %v2677_v19, %v782_v21  ;;  %v801_v63 = vmul.f32 %v2701_v16, %v785_v53  ;;  %v787_v33 = vadd.f32 1.4214138, %v771_v35  ;;  %v3033_v0 = vld [vmem:[#allocation38_spill] sm:$0xff] }
 0x20c   : > { %v770_v24 = vmul.f32 %v2712_v1, %v754_v10  ;;  %1176 = vmatprep.mubr.f32.mxu1 %v1005_v34  ;;  %v815_v42 = vadd.f32 -0.28449672, %v799_v8  ;;  %v800_v43 = vmul.f32 %v2693_v32, %v784_v60  ;;  %v773_v7 = vmul.f32 %v2738_v14, %v757_v20  ;;  %v3034_v10 = vld [vmem:[#allocation41_spill] sm:$0xff]  ;;  %v3035_v20 = vld [vmem:[#allocation26_spill] sm:$0xff] }
 0x20d   : > { %v756_v29 = vadd.f32 -1.4531521, %v740_v26  ;;  %v814_v11 = vadd.f32 -0.28449672, %v798_v54  ;;  %v817_v52 = vadd.f32 -0.28449672, %v801_v63  ;;  %v803_v48 = vmul.f32 %v2719_v58, %v787_v33 }
 0x20e   : > { %v786_v56 = vadd.f32 1.4214138, %v770_v24  ;;  %v831_v9 = vmul.f32 %v2681_v18, %v815_v42  ;;  %v816_v61 = vadd.f32 -0.28449672, %v800_v43  ;;  %v789_v47 = vadd.f32 1.4214138, %v773_v7 }
 0x20f   : > { %v772_v5 = vmul.f32 %v2728_v44, %v756_v29  ;;  %1177 = vmatmul.mubr.f32.gmra.mrb[6].mxu1 %v1004_v15  ;;  %v830_v40 = vmul.f32 %v2677_v19, %v814_v11  ;;  %v833_v36 = vmul.f32 %v2701_v16, %v817_v52  ;;  %v819_v31 = vadd.f32 -0.28449672, %v803_v48  ;;  %v3032_v15 = vld [vmem:[#allocation39_spill] sm:$0xff]  ;;  %v3037_v42 = vld [vmem:[#allocation32_spill] sm:$0xff] }
 0x210   : > { %v802_v39 = vmul.f32 %v2712_v1, %v786_v56  ;;  %v847_v55 = vadd.f32 0.2548296, %v831_v9  ;;  %v832_v51 = vmul.f32 %v2693_v32, %v816_v61  ;;  %v805_v49 = vmul.f32 %v2738_v14, %v789_v47  ;;  %v3038_v29 = vld [vmem:[#allocation40_spill] sm:$0xff]  ;;  %v3039_v48 = vld [vmem:[#allocation31_spill] sm:$0xff] }
 0x211   : > { %v788_v59 = vadd.f32 1.4214138, %v772_v5  ;;  %v846_v46 = vadd.f32 0.2548296, %v830_v40  ;;  %v849_v3 = vadd.f32 0.2548296, %v833_v36  ;;  %v835_v38 = vmul.f32 %v2719_v58, %v819_v31 }
 0x212   : > { %v818_v45 = vadd.f32 -0.28449672, %v802_v39  ;;  %v863_v2 = vmul.f32 %v2681_v18, %v847_v55  ;;  %v848_v12 = vadd.f32 0.2548296, %v832_v51  ;;  %v821_v41 = vadd.f32 -0.28449672, %v805_v49 }
 0x213   : > { %v804_v27 = vmul.f32 %v2728_v44, %v788_v59  ;;  %v862_v50 = vmul.f32 %v2677_v19, %v846_v46  ;;  %v865_v34 = vmul.f32 %v2701_v16, %v849_v3  ;;  %v851_v37 = vadd.f32 0.2548296, %v835_v38  ;;  %v3031_v18 = vld [vmem:[#allocation36_spill] sm:$0xff]  ;;  %v3040_v5 = vld [vmem:[#allocation35_spill] sm:$0xff]  ;;  %v3042_v51 = vld [vmem:[#allocation42_spill] sm:$0xff] }
 0x214   : > { %v834_v30 = vmul.f32 %v2712_v1, %v818_v45  ;;  %v943_v17 = vmul.f32 %v2686_v13, %v863_v2  ;;  %v864_v25 = vmul.f32 %v2693_v32, %v848_v12  ;;  %v837_v6 = vmul.f32 %v2738_v14, %v821_v41  ;;  %v3041_v36 = vld [vmem:[#allocation24_spill] sm:$0xff]  ;;  %v3043_v59 = vld [vmem:[#allocation23_spill] sm:$0xff]  ;;  %v3044_v3 = vld [vmem:[#allocation29_spill] sm:$0xff] }
 0x215   : > { %v820_v4 = vadd.f32 -0.28449672, %v804_v27  ;;  %v942_v57 = vmul.f32 %v3031_v18, %v862_v50  ;;  %v945_v62 = vmul.f32 %v3032_v15, %v865_v34  ;;  %v867_v19 = vmul.f32 %v2719_v58, %v851_v37  ;;  %v3036_v58 = vld [vmem:[#allocation25_spill] sm:$0xff]  ;;  %v3045_v2 = vld [vmem:[#allocation34_spill] sm:$0xff]  ;;  %v3046_v12 = vld [vmem:[#allocation28_spill] sm:$0xff] }
 0x216   : > { %v850_v28 = vadd.f32 0.2548296, %v834_v30  ;;  %v959_v16 = vsub.f32 1.0, %v943_v17  ;;  %v944_v21 = vmul.f32 %v3033_v0, %v864_v25  ;;  %v853_v53 = vadd.f32 0.2548296, %v837_v6  ;;  %v3047_v41 = vld [vmem:[#allocation37_spill] sm:$0xff] }
 0x217   : > { %v836_v13 = vmul.f32 %v2728_v44, %v820_v4  ;;  %v958_v35 = vsub.f32 1.0, %v942_v57  ;;  %v961_v32 = vsub.f32 1.0, %v945_v62  ;;  %v947_v8 = vmul.f32 %v3034_v10, %v867_v19  ;;  %v3048_v34 = vld [vmem:[#allocation22_spill] sm:$0xff]  ;;  %v3050_v15 = vld [vmem:[#allocation33_spill] sm:$0xff]  ;;  %v3051_v19 = vld [vmem:[#allocation27_spill] sm:$0xff] }
 0x218   : > { %v866_v60 = vmul.f32 %v2712_v1, %v850_v28  ;;  %v975_v26 = vmul.f32 %v959_v16, %v3035_v20  ;;  %v960_v54 = vsub.f32 1.0, %v944_v21  ;;  %v869_v63 = vmul.f32 %v2738_v14, %v853_v53  ;;  %v3052_v53 = vld [vmem:[#allocation30_spill] sm:$0xff] }
 0x219   : > { %v852_v33 = vadd.f32 0.2548296, %v836_v13  ;;  %v974_v24 = vmul.f32 %v958_v35, %v3036_v58  ;;  %v977_v43 = vmul.f32 %v961_v32, %v3037_v42  ;;  %v963_v7 = vsub.f32 1.0, %v947_v8  ;;  %v1014_v35 = vld [vmem:[#allocation2] sm:$0xff]  ;;  %v1015_v32 = vld [vmem:[#allocation2 + $0x8] sm:$0xff] }
 0x21a   : > { %v946_v11 = vmul.f32 %v3038_v29, %v866_v60  ;;  %v991_v52 = vadd.f32 1.0, %v975_v26  ;;  %v976_v56 = vmul.f32 %v960_v54, %v3039_v48  ;;  %v949_v9 = vmul.f32 %v2743_v23, %v869_v63  ;;  %v1016_v26 = vld [vmem:[#allocation2 + $0x10] sm:$0xff]  ;;  %v1017_v54 = vld [vmem:[#allocation2 + $0x18] sm:$0xff]  ;;  %v1018_v42 = vld [vmem:[#allocation2 + $0x20] sm:$0xff] }
 0x21b   : > { %v868_v1 = vmul.f32 %v2728_v44, %v852_v33  ;;  %v990_v61 = vadd.f32 1.0, %v974_v24  ;;  %v993_v47 = vadd.f32 1.0, %v977_v43  ;;  %v979_v40 = vmul.f32 %v963_v7, %v3040_v5  ;;  %v1019_v43 = vld [vmem:[#allocation2 + $0x28] sm:$0xff]  ;;  %v1020_v48 = vld [vmem:[#allocation2 + $0x30] sm:$0xff]  ;;  %v1022_v5 = vld [vmem:[#allocation2 + $0x40] sm:$0xff] }
 0x21c   : > { %v962_v14 = vsub.f32 1.0, %v946_v11  ;;  %v1007_v31 = vmul.f32 %v991_v52, %v3041_v36  ;;  %v992_v39 = vadd.f32 1.0, %v976_v56  ;;  %v965_v55 = vsub.f32 1.0, %v949_v9  ;;  %v1021_v56 = vld [vmem:[#allocation2 + $0x38] sm:$0xff] }
 0x21d   : > { %v948_v49 = vmul.f32 %v3042_v51, %v868_v1  ;;  %v1006_v46 = vmul.f32 %v990_v61, %v3043_v59  ;;  %v1009_v38 = vmul.f32 %v993_v47, %v3044_v3  ;;  %v995_v45 = vadd.f32 1.0, %v979_v40  ;;  %v1023_v40 = vld [vmem:[#allocation2 + $0x48] sm:$0xff]  ;;  %v1025_v51 = vld [vmem:[#allocation2 + $0x58] sm:$0xff] }
 0x21e   : > { %v978_v23 = vmul.f32 %v962_v14, %v3045_v2  ;;  %v595_v44 = vmul.f32 0.5, %v3046_v12  ;;  %1182 = vmatprep.mubr.f32.mxu1 %v1007_v31  ;;  %v981_v27 = vmul.f32 %v965_v55, %v3047_v41  ;;  %v592_v37 = vmul.f32 0.5, %v3048_v34  ;;  %v1024_v55 = vld [vmem:[#allocation2 + $0x50] sm:$0xff] }
 0x21f   : > { %v964_v50 = vsub.f32 1.0, %v948_v49  ;;  %1183 = vmatmul.mubr.f32.gmra.mrb[8].mxu1 %v1006_v46  ;;  %v3049_v30 = vmov -1.0   ;;  %v597_v62 = vmul.f32 0.5, %v3050_v15  ;;  %v594_v28 = vmul.f32 0.5, %v3051_v19  ;;  %v1028_v41 = vld [vmem:[#allocation2 + $0x70] sm:$0xff] }
 0x220   : > { %v644_v17 = vsel %vm628_vm15, 1.0, %v3049_v30  ;;  %1188 = vmatprep.mubr.f32.mxu1 %v1009_v38  ;;  %v1011_v25 = vmul.f32 %v995_v45, %v595_v44  ;;  %v997_v6 = vadd.f32 1.0, %v981_v27  ;;  %v1008_v4 = vmul.f32 %v992_v39, %v592_v37  ;;  %v1026_v38 = vld [vmem:[#allocation2 + $0x60] sm:$0xff]  ;;  %v1027_v45 = vld [vmem:[#allocation2 + $0x68] sm:$0xff]  ;;  %v1029_v27 = vld [vmem:[#allocation2 + $0x78] sm:$0xff] }
 0x221   : > { %v994_v18 = vadd.f32 1.0, %v978_v23  ;;  %v980_v57 = vmul.f32 %v964_v50, %v644_v17  ;;  %v596_v13 = vmul.f32 0.5, %v3052_v53 }
 0x222   : > { %v1013_v16 = vmul.f32 %v997_v6, %v597_v62 }
 0x223   : > { %1189 = vmatmul.mubr.f32.gmra.mrb[10].mxu1 %v1008_v4  ;;  %v1010_v0 = vmul.f32 %v994_v18, %v594_v28  ;;  %v996_v21 = vadd.f32 1.0, %v980_v57  ;;  %v3054_v4 = vld [vmem:[#allocation21_spill] sm:$0xff] (!%p1476_p2) }
 0x224   : > { %1194 = vmatprep.mubr.f32.mxu1 %v1011_v25  ;;  %v1259_v25 = vld [vmem:[%s3053_s16] sm:$0x3] (!%p1476_p2)  ;;  %v3055_v18 = vsub.s32 (!%p1476_p2), 0, %v3054_v4  ;;  %v3056_v15 = vsub.s32 (!%p1476_p2), 1, %v3054_v4 }
 0x225   : > { %v1012_v22 = vmul.f32 %v996_v21, %v596_v13 }
 0x226   : > { %v1264_v57 = vrot.slane (!%p1476_p2), %v1259_v25, %v3055_v18  ;;  %v1268_v62 = vrot.slane (!%p1476_p2), %v1259_v25, %v3056_v15 }
 0x227   : > { %1195 = vmatmul.mubr.f32.gmra.mrb[12].mxu1 %v1010_v0 }
 0x228   : > { %1200 = vmatprep.mubr.f32.mxu1 %v1013_v16 }
 0x22b   : > { %1201 = vmatmul.mubr.f32.gmra.mrb[14].mxu1 %v1012_v22 }
 0x2d6   : > { %v1160_v10 = vpop.f32.mrb[0].mxu1 }
 0x2d7   : > { %v1207_v8 = vadd.f32 %v1160_v10, %v1014_v35  ;;  %v1162_v60 = vpop.f32.mrb[1].mxu1 }
 0x2d8   : > { %v1208_v20 = vadd.f32 %v1162_v60, %v1015_v32 }
 0x2d9   : > { %1223 = vst [vmem:[#allocation2] sm:$0xff] %v1207_v8 }
 0x2da   : > { %1224 = vst [vmem:[#allocation2 + $0x8] sm:$0xff] %v1208_v20  ;;  %v1166_v63 = vpop.f32.mrb[2].mxu1 }
 0x2db   : > { %v1209_v33 = vadd.f32 %v1166_v63, %v1016_v26  ;;  %v1168_v58 = vpop.f32.mrb[3].mxu1 }
 0x2dc   : > { %v1210_v24 = vadd.f32 %v1168_v58, %v1017_v54 }
 0x2dd   : > { %1225 = vst [vmem:[#allocation2 + $0x10] sm:$0xff] %v1209_v33 }
 0x2de   : > { %1226 = vst [vmem:[#allocation2 + $0x18] sm:$0xff] %v1210_v24  ;;  %v1172_v7 = vpop.f32.mrb[4].mxu1 }
 0x2df   : > { %v1211_v29 = vadd.f32 %v1172_v7, %v1018_v42  ;;  %v1174_v11 = vpop.f32.mrb[5].mxu1 }
 0x2e0   : > { %v1212_v52 = vadd.f32 %v1174_v11, %v1019_v43  ;;  %v1243_v17 = vld [vmem:[#allocation2] sm:$0xff] (!%p1476_p2) }
 0x2e1   : > { %1227 = vst [vmem:[#allocation2 + $0x20] sm:$0xff] %v1211_v29  ;;  %v1244_v6 = vld [vmem:[#allocation2 + $0x8] sm:$0xff] (!%p1476_p2)  ;;  %v1271_v13 = vadd.f32 (!%p1476_p2), %v1264_v57, %v1243_v17 }
 0x2e2   : > { %1228 = vst [vmem:[#allocation2 + $0x28] sm:$0xff] %v1212_v52  ;;  %v1178_v9 = vpop.f32.mrb[6].mxu1  ;;  %v1272_v22 = vadd.f32 (!%p1476_p2), %v1268_v62, %v1244_v6 }
 0x2e3   : > { %v1213_v1 = vadd.f32 %v1178_v9, %v1020_v48  ;;  %v1180_v61 = vpop.f32.mrb[7].mxu1  ;;  %1287 = vst [vmem:[%s2362_s20] sm:$0xff] (!%p1476_p2), %v1271_v13 }
 0x2e4   : > { %v1214_v47 = vadd.f32 %v1180_v61, %v1021_v56  ;;  %v1245_v19 = vld [vmem:[#allocation2 + $0x10] sm:$0xff] (!%p1476_p2)  ;;  %1288 = vst [vmem:[%s2362_s20 + $0x8] sm:$0xff] (!%p1476_p2), %v1272_v22 }
 0x2e5   : > { %1229 = vst [vmem:[#allocation2 + $0x30] sm:$0xff] %v1213_v1  ;;  %v1246_v28 = vld [vmem:[#allocation2 + $0x18] sm:$0xff] (!%p1476_p2)  ;;  %v1273_v35 = vadd.f32 (!%p1476_p2), %v1264_v57, %v1245_v19 }
 0x2e6   : > { %1230 = vst [vmem:[#allocation2 + $0x38] sm:$0xff] %v1214_v47  ;;  %v1274_v32 = vadd.f32 (!%p1476_p2), %v1268_v62, %v1246_v28 }
 0x2e7   : > { %1289 = vst [vmem:[%s2362_s20 + $0x10] sm:$0xff] (!%p1476_p2), %v1273_v35 }
 0x2e8   : > { %v1247_v16 = vld [vmem:[#allocation2 + $0x20] sm:$0xff] (!%p1476_p2)  ;;  %1290 = vst [vmem:[%s2362_s20 + $0x18] sm:$0xff] (!%p1476_p2), %v1274_v32 }
 0x2e9   : > { %v1248_v0 = vld [vmem:[#allocation2 + $0x28] sm:$0xff] (!%p1476_p2)  ;;  %v1275_v20 = vadd.f32 (!%p1476_p2), %v1264_v57, %v1247_v16 }
 0x2ea   : > { %v1276_v26 = vadd.f32 (!%p1476_p2), %v1268_v62, %v1248_v0 }
 0x2eb   : > { %1291 = vst [vmem:[%s2362_s20 + $0x20] sm:$0xff] (!%p1476_p2), %v1275_v20 }
 0x2ec   : > { %v1249_v21 = vld [vmem:[#allocation2 + $0x30] sm:$0xff] (!%p1476_p2)  ;;  %1292 = vst [vmem:[%s2362_s20 + $0x28] sm:$0xff] (!%p1476_p2), %v1276_v26 }
 0x2ed   : > { %v1250_v53 = vld [vmem:[#allocation2 + $0x38] sm:$0xff] (!%p1476_p2)  ;;  %v1277_v54 = vadd.f32 (!%p1476_p2), %v1264_v57, %v1249_v21 }
 0x2ee   : > { %v1278_v63 = vadd.f32 (!%p1476_p2), %v1268_v62, %v1250_v53 }
 0x2ef   : > { %1293 = vst [vmem:[%s2362_s20 + $0x30] sm:$0xff] (!%p1476_p2), %v1277_v54 }
 0x2f0   : > { %1294 = vst [vmem:[%s2362_s20 + $0x38] sm:$0xff] (!%p1476_p2), %v1278_v63 }
 0x2f2   : > { %v1184_v14 = vpop.f32.mrb[8].mxu1 }
 0x2f3   : > { %v1215_v36 = vadd.f32 %v1184_v14, %v1022_v5  ;;  %v1186_v31 = vpop.f32.mrb[9].mxu1 }
 0x2f4   : > { %v1216_v39 = vadd.f32 %v1186_v31, %v1023_v40 }
 0x2f5   : > { %1231 = vst [vmem:[#allocation2 + $0x40] sm:$0xff] %v1215_v36 }
 0x2f6   : > { %1232 = vst [vmem:[#allocation2 + $0x48] sm:$0xff] %v1216_v39  ;;  %v1190_v49 = vpop.f32.mrb[10].mxu1 }
 0x2f7   : > { %v1217_v59 = vadd.f32 %v1190_v49, %v1024_v55  ;;  %v1192_v46 = vpop.f32.mrb[11].mxu1 }
 0x2f8   : > { %v1218_v3 = vadd.f32 %v1192_v46, %v1025_v51 }
 0x2f9   : > { %1233 = vst [vmem:[#allocation2 + $0x50] sm:$0xff] %v1217_v59 }
 0x2fa   : > { %1234 = vst [vmem:[#allocation2 + $0x58] sm:$0xff] %v1218_v3  ;;  %v1196_v2 = vpop.f32.mrb[12].mxu1 }
 0x2fb   : > { %v1219_v23 = vadd.f32 %v1196_v2, %v1026_v38  ;;  %v1198_v12 = vpop.f32.mrb[13].mxu1 }
 0x2fc   : > { %v1220_v44 = vadd.f32 %v1198_v12, %v1027_v45  ;;  %1242 = sbr.rel (%p1476_p2) target bundleno = 781 (0x30d), region = 60  ;;  %v1251_v10 = vld [vmem:[#allocation2 + $0x40] sm:$0xff] (!%p1476_p2) }
 0x2fd   : > { %1235 = vst [vmem:[#allocation2 + $0x60] sm:$0xff] %v1219_v23  ;;  %v1252_v8 = vld [vmem:[#allocation2 + $0x48] sm:$0xff] (!%p1476_p2)  ;;  %v1279_v42 = vadd.f32 (!%p1476_p2), %v1264_v57, %v1251_v10 }
 0x2fe   : > { %1236 = vst [vmem:[#allocation2 + $0x68] sm:$0xff] %v1220_v44  ;;  %v1202_v50 = vpop.f32.mrb[14].mxu1  ;;  %v1280_v43 = vadd.f32 (!%p1476_p2), %v1268_v62, %v1252_v8 }
 0x2ff   : > { %v1221_v34 = vadd.f32 %v1202_v50, %v1028_v41  ;;  %v1204_v37 = vpop.f32.mrb[15].mxu1  ;;  %1295 = vst [vmem:[%s2362_s20 + $0x40] sm:$0xff] (!%p1476_p2), %v1279_v42 }
 0x300   : > { %v1222_v30 = vadd.f32 %v1204_v37, %v1029_v27  ;;  %v1253_v60 = vld [vmem:[#allocation2 + $0x50] sm:$0xff] (!%p1476_p2)  ;;  %1296 = vst [vmem:[%s2362_s20 + $0x48] sm:$0xff] (!%p1476_p2), %v1280_v43 }
 0x301   : > { %1237 = vst [vmem:[#allocation2 + $0x70] sm:$0xff] %v1221_v34  ;;  %v1254_v33 = vld [vmem:[#allocation2 + $0x58] sm:$0xff] (!%p1476_p2)  ;;  %v1281_v7 = vadd.f32 (!%p1476_p2), %v1264_v57, %v1253_v60 }
 0x302   : > { %1238 = vst [vmem:[#allocation2 + $0x78] sm:$0xff] %v1222_v30  ;;  %v1282_v29 = vadd.f32 (!%p1476_p2), %v1268_v62, %v1254_v33 }
 0x303   : > { %1297 = vst [vmem:[%s2362_s20 + $0x50] sm:$0xff] %v1281_v7 }
 0x304   : > { %v1255_v58 = vld [vmem:[#allocation2 + $0x60] sm:$0xff]  ;;  %1298 = vst [vmem:[%s2362_s20 + $0x58] sm:$0xff] %v1282_v29 }
 0x305   : > { %v1256_v24 = vld [vmem:[#allocation2 + $0x68] sm:$0xff]  ;;  %v1283_v48 = vadd.f32 %v1264_v57, %v1255_v58 }
 0x306   : > { %v1284_v56 = vadd.f32 %v1268_v62, %v1256_v24 }
 0x307   : > { %1299 = vst [vmem:[%s2362_s20 + $0x60] sm:$0xff] %v1283_v48 }
 0x308   : > { %v1257_v11 = vld [vmem:[#allocation2 + $0x70] sm:$0xff]  ;;  %1300 = vst [vmem:[%s2362_s20 + $0x68] sm:$0xff] %v1284_v56 }
 0x309   : > { %v1258_v52 = vld [vmem:[#allocation2 + $0x78] sm:$0xff]  ;;  %v1285_v9 = vadd.f32 %v1264_v57, %v1257_v11 }
 0x30a   : > { %v1286_v1 = vadd.f32 %v1268_v62, %v1258_v52 }
 0x30b   : > { %1301 = vst [vmem:[%s2362_s20 + $0x70] sm:$0xff] %v1285_v9 }
 0x30c   : > { %1302 = vst [vmem:[%s2362_s20 + $0x78] sm:$0xff] %v1286_v1 }
 0x30d PF: > { %s3057_s24 = sld [smem:[#allocation15_spill]]  ;;  %s1318_s8 = sshll.u32 %s2362_s20, 4  ;;  %s2879_s8 = int_to_ptr.vmem [resolvable:$true] %s1318_s8 }
 0x30e   : > { %s3058_s6 = sld [smem:[#allocation45_spill]]  ;;  %s1304_s23 = scalar_lea.sflag [#allocation5], %s2335_s1 }
 0x30f   : > { %s1891_s4 = scalar_lea.vmem %s2879_s8, 2048  ;;  %p3059_p11 = scmp.ne.s32.totalorder %s2996_s14, 0 }
 0x310   : > { %p1892_p13 = scmp.ne.s32.totalorder %s2879_s8, %s1891_s4  ;;  %s2027_s15 = smov [#allocation9]  }
 0x311   : > { %s1895_s30 = sshll.u32 %s2027_s15, 4  ;;  %s1896_s30 = int_to_ptr.vmem [resolvable:$false] %s1895_s30 }
 0x312   : > { %p1893_p6 = pnand %p1892_p13, %p3059_p11  ;;  %s1897_s13 = scalar_lea.vmem %s1896_s30, 4096 }
 0x313   : > { %s1489_s27 = sshll.u32 %s3057_s24, 11  ;;  %p1898_p1 = scmp.lt.s32.totalorder %s2879_s8, %s1896_s30 }
 0x314   : > { %s2876_s7 = scalar_lea.hbm %s3058_s6, %s1489_s27  ;;  %p1894_p5 = pneg %p1893_p6 }
 0x315   : > { %p1899_p0 = scmp.lt.s32.totalorder %s1897_s13, %s1891_s4 }
 0x317   : > { %p1900_p9 = por %p1899_p0, %p1898_p1 }
 0x319   : > { %p1901_p12 = pnand %p1900_p9, %p1894_p5 }
 0x31b   : > { %1904 = shalt.err (!%p1901_p12)
}
 0x31c   : > { %s1905_s12 = scalar_lea.hbm %s2876_s7, 2048  ;;  %s1909_s17 = scalar_lea.hbm %s3058_s6, 4096 }
 0x31d   : > { %p1906_p3 = scmp.ne.s32.totalorder %s2876_s7, %s1905_s12  ;;  %p1910_p8 = scmp.lt.u32.totalorder %s2876_s7, %s3058_s6 }
 0x31e   : > { %p1911_p10 = scmp.lt.u32.totalorder %s1909_s17, %s1905_s12  ;;  %p1913_p13 = scmp.lt.u32.totalorder %s1905_s12, %s2876_s7 }
 0x31f   : > { %p1907_p4 = pnand %p1906_p3, %p3059_p11 }
 0x320   : > { %p1912_p2 = por %p1911_p10, %p1910_p8 }
 0x321   : > { %p1908_p7 = pneg %p1907_p4 }
 0x322   : > { %p1914_p6 = por %p1913_p13, %p1912_p2 }
 0x324   : > { %p1915_p5 = pnand %p1914_p6, %p1908_p7 }
 0x326   : > { %1918 = shalt.err (!%p1915_p5)
}
 0x327   : > { %s2028_s18 = smov 256   ;;  %s2029_s16 = smov 16  }
 0x328   : > { %1624 = dma.vmem_to_hbm [thread:$0]  (%p3059_p11), %s2879_s8, 2048, %s2876_s7, %s1304_s23, %s2028_s18, %s2028_s18, %s2029_s16  }
 0x329 PF: > { %p1641_p1 = scmp.ge.s32.totalorder %s2017_s28, 2  ;;  %s1333_s24 = sand.u32 1, %s1989_s21  }
 0x32a   : > { %p3060_p0 = scmp.ne.s32.totalorder %s2998_s5, 0  ;;  %s1334_s27 = scalar_lea.sflag [#allocation5], %s1333_s24 }
 0x32c   : > { %p1637_p9 = pnand %p1641_p1, %p3060_p0 }
 0x32e   : > { %1972 = dma.done.wait (!%p1637_p9), %s1334_s27, 2048  }
 0x32f   : > { %1974 = vsyncadd (!%p1637_p9), %s1334_s27, 4294965248  ;;  %s24_s28 = sadd.s32 1, %s2017_s28   ;;  %s3061_s11 = sld [smem:[#allocation13_spill]] }
 0x330   : > { %p21_p12 = scmp.ge.s32.totalorder %s24_s28, 6   ;;  %s3062_s20 = sld [smem:[#allocation18_spill]] }
 0x331   : > { %s3063_s14 = sld [smem:[#allocation14_spill]]  ;;  %s3064_s23 = sld [smem:[#allocation20_spill]] }
 0x332   : > { %s3065_s25 = sld [smem:[#allocation16_spill]]  ;;  %s3066_s1 = sld [smem:[#allocation17_spill]] }
 0x333   : > { %s3067_s27 = sld [smem:[#allocation19_spill]]  ;;  %s3068_s18 = smov %s1981_s19 }
 0x334   : > { %s3070_s21 = smov %s1993_s22  ;;  %s3072_s24 = smov %s2009_s26 }
 0x335   : > { %s3069_s19 = smov %s3061_s11  ;;  %23 = sbr.rel (!%p21_p12) target bundleno = 15 (0xf), region = 120 }
 0x337   : > { %s3071_s22 = smov %s3063_s14 }
 0x338   : > { %s3073_s26 = smov %s3066_s1 }
 0x33c   :  { %1339 = vsyncpa [#allocation4], 1 }
 0x33d   :  { %1341 = vsyncpa [#allocation4 + $0x1], 1 }
 0x33e   :  { %1342 = vsyncpa [#allocation7], 1 }
 0x33f   :  { %1344 = vsyncpa [#allocation7 + $0x1], 1 }
 0x340   :  { %1345 = vsyncpa [#allocation5], 1 }
 0x341   :  { %1347 = vsyncpa [#allocation5 + $0x1], 1 }

// kernel: tpu_custom_call.1
= control target key start
LH: loop header
LB: loop body
LE: loop exit
PB: predicated region body
PF: predicated region fallthrough
CT: control target
= control target key end

     0   :  { %s2942_s0 = inlined_call_operand.hbm [shape: f32[128,256], index: 0, kind: input, shape index: {}]   ;;  %s2943_s1 = inlined_call_operand.hbm [shape: f32[256,512], index: 1, kind: input, shape index: {}]   ;;  %s2944_s2 = inlined_call_operand.vmem [shape: f32[1,512], index: 2, kind: input, shape index: {}]   ;;  %s2945_s3 = inlined_call_operand.hbm [shape: f32[512,256], index: 3, kind: input, shape index: {}]   ;;  %s2946_s4 = inlined_call_operand.vmem [shape: f32[1,256], index: 4, kind: input, shape index: {}]   ;;  %s2947_s5 = inlined_call_operand.hbm [shape: f32[128,256], index: 5, kind: output, shape index: {}]  }
   0x1   :  { %2976 = sst [smem:[#allocation43_spill]] %s2943_s1 }
   0x2   :  { %2977 = sst [smem:[#allocation44_spill]] %s2946_s4 }
   0x3   :  { %2978 = sst [smem:[#allocation45_spill]] %s2947_s5 }
   0x4   :  { %10 = vsyncpa [#allocation4], 0 }
   0x5   :  { %12 = vsyncpa [#allocation4 + $0x1], 0 }
   0x6   :  { %13 = vsyncpa [#allocation7], 0 }
   0x7   :  { %15 = vsyncpa [#allocation7 + $0x1], 0 }
   0x8   :  { %16 = vsyncpa [#allocation5], 0 }
   0x9   :  { %18 = vsyncpa [#allocation5 + $0x1], 0  ;;  %s2060_s18 = smov 0   ;;  %s2062_s19 = smov 0  }
   0xa   :  { %s2064_s20 = smov 0   ;;  %s2066_s21 = smov 0  }
   0xb   :  { %s2068_s22 = smov 0   ;;  %s2070_s23 = smov 0  }
   0xc   :  { %s2072_s24 = smov 0   ;;  %s2074_s25 = smov 0  }
   0xd   :  { %s2076_s26 = smov 0   ;;  %s2078_s27 = smov 0  }
   0xe   :  { %s2080_s28 = smov 0  }
   0xf LB: > { %2979 = sst [smem:[#allocation13_spill]] %s1985_s20  ;;  %s33_s29 = sadd.s32 1, %s2009_s26  ;;  %s2017_s28 = sphi %s2080_s28, %s24_s28   ;;  %s2013_s27 = sphi %s2078_s27, %s3067_s27   ;;  %s2009_s26 = sphi %s2076_s26, %s3073_s26   ;;  %s2005_s25 = sphi %s2074_s25, %s3065_s25   ;;  %s2001_s24 = sphi %s2072_s24, %s3072_s24   ;;  %s1997_s23 = sphi %s2070_s23, %s3064_s23   ;;  %s1993_s22 = sphi %s2068_s22, %s3071_s22   ;;  %s1989_s21 = sphi %s2066_s21, %s3070_s21   ;;  %s1985_s20 = sphi %s2064_s20, %s3062_s20   ;;  %s1981_s19 = sphi %s2062_s19, %s3069_s19   ;;  %s1977_s18 = sphi %s2060_s18, %s3068_s18  }
  0x10   : > { %2980 = sst [smem:[#allocation14_spill]] %s1997_s23  ;;  %p2950_p0 = scmp.eq.s32.totalorder %s2017_s28, 0 }
  0x11   : > { %2981 = sst [smem:[#allocation15_spill]] %s2005_s25  ;;  %p2117_p1 = scmp.ge.s32.totalorder %s33_s29, 2 }
  0x12   : > { %2982 = sst [smem:[#allocation16_spill]] %s2013_s27  ;;  %s69_s6 = sadd.s32 1, %s1985_s20 }
  0x13   : > { %p76_p2 = scmp.ne.s32.totalorder %s1985_s20, %s1981_s19  ;;  %s3075_s29 = smov (%p2117_p1, %s33_s29), 0 }
  0x14   : > { %2984 = sst [smem:[#allocation17_spill]] %s3075_s29  ;;  %s66_s7 = ssub.s32 %s2009_s26, %s3075_s29 }
  0x15   : > { %p78_p4 = por %p76_p2, %p2950_p0  ;;  %p2949_p5 = scmp.lt.s32.totalorder %s2017_s28, 4 }
  0x16   : > { %p67_p6 = scmp.eq.s32.totalorder %s66_s7, 0  ;;  %s230_s8 = sand.u32 1, %s2017_s28  }
  0x17   : > { %s232_s10 = sand.u32 1, %s1985_s20   ;;  %s1485_s12 = sshll.u32 %s2009_s26, 8 }
  0x18   : > { %s2137_s9 = scalar_select %p67_p6, %s1985_s20, %s69_s6  }
  0x19   : > { %s2140_s11 = sshll.u32 %s232_s10, 9  ;;  %s2986_s1 = sld [smem:[#allocation43_spill]] }
  0x1a   : > { %2985 = sst [smem:[#allocation18_spill]] %s2137_s9  ;;  %s234_s16 = scalar_lea.vmem [#allocation6], %s2140_s11 }
  0x1b   : > { %s241_s17 = sshll.u32 %s234_s16, 4  ;;  %p2151_p7 = pnand %p2949_p5, %p78_p4  ;;  %s2155_s17 = int_to_ptr.vmem [resolvable:$true] %s241_s17 }
  0x1c   : > { %s2158_s7 = scalar_lea.sflag [#allocation7], %s230_s8 }
  0x1d   : > { %p2953_p10 = pneg %p2151_p7 }
  0x1f   : > { %s2146_s15 = scalar_lea.hbm %s2986_s1, %s1485_s12  ;;  %s1806_s14 = scalar_lea.hbm %s2986_s1, 16384 }
  0x20   : > { %s1801_s10 = scalar_lea.hbm %s2146_s15, 8192  ;;  %p1807_p13 = scmp.lt.u32.totalorder %s2146_s15, %s2986_s1 }
  0x21   : > { %p1802_p9 = scmp.ne.s32.totalorder %s2146_s15, %s1801_s10  ;;  %p1808_p2 = scmp.lt.u32.totalorder %s1806_s14, %s1801_s10 }
  0x22   : > { %p1810_p6 = scmp.lt.u32.totalorder %s1801_s10, %s2146_s15 }
  0x23   : > { %p1804_p11 = pnand %p2953_p10, %p1802_p9  ;;  %p1809_p4 = por %p1808_p2, %p1807_p13 }
  0x25   : > { %p1805_p12 = pneg %p1804_p11  ;;  %p1811_p5 = por %p1810_p6, %p1809_p4 }
  0x27   : > { %p1812_p3 = pnand %p1811_p5, %p1805_p12 }
  0x29   : > { %1815 = shalt.err (!%p1812_p3)
}
  0x2a   : > { %s1816_s8 = scalar_lea.vmem %s2155_s17, 8192  ;;  %s2019_s12 = smov [#allocation6]  }
  0x2b   : > { %p1817_p9 = scmp.ne.s32.totalorder %s2155_s17, %s1816_s8  ;;  %s1821_s13 = sshll.u32 %s2019_s12, 4  ;;  %s1822_s13 = int_to_ptr.vmem [resolvable:$false] %s1821_s13 }
  0x2c   : > { %s1823_s29 = scalar_lea.vmem %s1822_s13, 16384  ;;  %p1824_p8 = scmp.lt.s32.totalorder %s2155_s17, %s1822_s13 }
  0x2d   : > { %p1819_p11 = pnand %p1817_p9, %p2953_p10  ;;  %p1825_p13 = scmp.lt.s32.totalorder %s1823_s29, %s1816_s8 }
  0x2f   : > { %p1820_p0 = pneg %p1819_p11  ;;  %p1826_p2 = por %p1825_p13, %p1824_p8 }
  0x31   : > { %p1827_p4 = pnand %p1826_p2, %p1820_p0 }
  0x33   : > { %1830 = shalt.err (!%p1827_p4)
}
  0x34   : > { %s2020_s10 = smov 512   ;;  %s2951_s14 = smov 256  }
  0x35   : > { %s2954_s16 = smov 16   ;;  %p279_p0 = scmp.lt.s32.totalorder %s2017_s28, 5 }
  0x36   : > { %1632 = dma.hbm_to_vmem [thread:$0]  (!%p2151_p7), %s2146_s15, 8192, %s2155_s17, %s2158_s7, %s2020_s10, %s2951_s14, %s2954_s16  }
  0x37   : > { %p2988_p3 = scmp.ge.s32.totalorder %s2017_s28, 1  ;;  %s2196_s12 = sadd.s32 4294967295, %s2017_s28  }
  0x38   : > { %s1455_s13 = sadd.s32 4294967294, %s2017_s28   ;;  %s36_s29 = sadd.s32 1, %s2013_s27 }
  0x39   : > { %p2191_p5 = pnand %p2988_p3, %p279_p0  ;;  %s43_s1 = sadd.s32 1, %s1997_s23 }
  0x3a   : > { %s3077_s29 = smov (!%p2117_p1, %s36_s29), %s2013_s27  ;;  %p50_p8 = scmp.ne.s32.totalorder %s1997_s23, %s1993_s22 }
  0x3b   : > { %s2989_s8 = scalar_select %p2191_p5, 1, 0 }
  0x3c   : > { %p56_p12 = scmp.ne.s32.totalorder %s1993_s22, %s1989_s21  ;;  %p38_p6 = scmp.ge.s32.totalorder %s3077_s29, 2 }
  0x3d   : > { %p57_p9 = scmp.eq.s32.totalorder %s2196_s12, 0  ;;  %p2990_p11 = scmp.eq.s32.totalorder %s2017_s28, 0 }
  0x3e   : > { %p179_p2 = scmp.eq.s32.totalorder %s2196_s12, 3  ;;  %s3079_s29 = smov (%p38_p6, %s3077_s29), 0 }
  0x3f   : > { %p2211_p13 = por %p2990_p11, %p50_p8  ;;  %2992 = sst [smem:[#allocation19_spill]] %s3079_s29 }
  0x40   : > { %p2221_p1 = por %p57_p9, %p56_p12  ;;  %p2994_p4 = scmp.ne.s32.totalorder %s1981_s19, %s1977_s18 }
  0x41   : > { %s40_s10 = ssub.s32 %s2013_s27, %s3079_s29  ;;  %p2234_p3 = por %p179_p2, %p50_p8 }
  0x42   : > { %s2993_s30 = scalar_select %p2221_p1, 1, 0 }
  0x43   : > { %p2228_p0 = por %p2994_p4, %p57_p9  ;;  %p41_p11 = scmp.eq.s32.totalorder %s40_s10, 0 }
  0x44   : > { %s2996_s14 = scalar_select %p2234_p3, 1, 0 }
  0x45   : > { %s2995_s17 = scalar_select %p2228_p0, 1, 0 }
  0x46   : > { %p185_p10 = scmp.eq.s32.totalorder %s1455_s13, 3  ;;  %s208_s16 = sand.u32 1, %s1997_s23  }
  0x47   : > { %s1484_s9 = sshll.u32 %s2013_s27, 11  ;;  %s1458_s18 = sshll.u32 %s208_s16, 7 }
  0x48   : > { %s2241_s20 = scalar_select %p41_p11, %s1997_s23, %s43_s1  }
  0x49   : > { %p2246_p6 = por %p185_p10, %p56_p12  ;;  %s2253_s29 = scalar_lea.hbm %s2942_s0, %s1484_s9 }
  0x4a   : > { %2997 = sst [smem:[#allocation20_spill]] %s2241_s20  ;;  %p2999_p8 = scmp.lt.s32.totalorder %s2017_s28, 4 }
  0x4b   : > { %s2998_s5 = scalar_select %p2246_p6, 1, 0 }
  0x4c   : > { %p2259_p9 = pnand %p2999_p8, %p2211_p13  ;;  %s212_s13 = scalar_lea.vmem [#allocation3], %s1458_s18 }
  0x4d   : > { %s220_s10 = sshll.u32 %s212_s13, 4  ;;  %s2265_s27 = scalar_lea.sflag [#allocation4], %s208_s16  ;;  %s2263_s10 = int_to_ptr.vmem [resolvable:$true] %s220_s10 }
  0x4e   : > { %s1831_s4 = scalar_lea.hbm %s2253_s29, 2048  ;;  %p1833_p12 = pneg %p2259_p9 }
  0x4f   : > { %p1832_p10 = scmp.ne.s32.totalorder %s2253_s29, %s1831_s4  ;;  %s1836_s15 = scalar_lea.hbm %s2942_s0, 4096 }
  0x50   : > { %p1837_p13 = scmp.lt.u32.totalorder %s2253_s29, %s2942_s0  ;;  %p1838_p11 = scmp.lt.u32.totalorder %s1836_s15, %s1831_s4 }
  0x51   : > { %p1834_p2 = pnand %p1833_p12, %p1832_p10  ;;  %p1840_p6 = scmp.lt.u32.totalorder %s1831_s4, %s2253_s29 }
  0x52   : > { %p1839_p8 = por %p1838_p11, %p1837_p13 }
  0x53   : > { %p1835_p4 = pneg %p1834_p2 }
  0x54   : > { %p1841_p3 = por %p1840_p6, %p1839_p8 }
  0x56   : > { %p1842_p0 = pnand %p1841_p3, %p1835_p4 }
  0x58   : > { %1845 = shalt.err (!%p1842_p0)
}
  0x59   : > { %s1846_s16 = scalar_lea.vmem %s2263_s10, 2048  ;;  %s2023_s18 = smov [#allocation3]  }
  0x5a   : > { %p1847_p10 = scmp.ne.s32.totalorder %s2263_s10, %s1846_s16  ;;  %s1851_s13 = sshll.u32 %s2023_s18, 4  ;;  %s1852_s13 = int_to_ptr.vmem [resolvable:$false] %s1851_s13 }
  0x5b   : > { %s1853_s20 = scalar_lea.vmem %s1852_s13, 4096  ;;  %p1854_p5 = scmp.lt.s32.totalorder %s2263_s10, %s1852_s13 }
  0x5c   : > { %p1849_p2 = pnand %p1847_p10, %p1833_p12  ;;  %p1855_p13 = scmp.lt.s32.totalorder %s1853_s20, %s1846_s16 }
  0x5e   : > { %p1850_p1 = pneg %p1849_p2  ;;  %p1856_p11 = por %p1855_p13, %p1854_p5 }
  0x60   : > { %p1857_p6 = pnand %p1856_p11, %p1850_p1 }
  0x62   : > { %1860 = shalt.err (!%p1857_p6)
}
  0x63   : > { %s3001_s23 = smov 16   ;;  %s3002_s4 = smov 256  }
  0x64   : > { %1629 = dma.hbm_to_vmem [thread:$0]  (!%p2259_p9), %s2253_s29, 2048, %s2263_s10, %s2265_s27, %s3002_s4, %s3002_s4, %s3001_s23  }
  0x65   : > { %s1487_s25 = sshll.u32 %s2009_s26, 13  ;;  %s263_s9 = scalar_lea.vmem [#allocation8], %s2140_s11 }
  0x66   : > { %s271_s15 = sshll.u32 %s263_s9, 4  ;;  %s2301_s13 = scalar_lea.hbm %s2945_s3, %s1487_s25  ;;  %s2303_s15 = int_to_ptr.vmem [resolvable:$true] %s271_s15 }
  0x67   : > { %s1861_s1 = scalar_lea.hbm %s2301_s13, 8192  ;;  %p3003_p1 = pneg %p2151_p7 }
  0x68   : > { %p1862_p5 = scmp.ne.s32.totalorder %s2301_s13, %s1861_s1  ;;  %s1866_s29 = scalar_lea.hbm %s2945_s3, 16384 }
  0x69   : > { %p1867_p9 = scmp.lt.u32.totalorder %s2301_s13, %s2945_s3  ;;  %p1868_p12 = scmp.lt.u32.totalorder %s1866_s29, %s1861_s1 }
  0x6a   : > { %p1864_p0 = pnand %p1862_p5, %p3003_p1  ;;  %p1870_p8 = scmp.lt.u32.totalorder %s1861_s1, %s2301_s13 }
  0x6b   : > { %p1869_p4 = por %p1868_p12, %p1867_p9 }
  0x6c   : > { %p1865_p3 = pneg %p1864_p0 }
  0x6d   : > { %p1871_p10 = por %p1870_p8, %p1869_p4 }
  0x6f   : > { %p1872_p2 = pnand %p1871_p10, %p1865_p3 }
  0x71   : > { %1875 = shalt.err (!%p1872_p2)
}
  0x72   : > { %s1876_s25 = scalar_lea.vmem %s2303_s15, 8192  ;;  %p3004_p11 = pmov %p3003_p1 }
  0x73   : > { %p1877_p13 = scmp.ne.s32.totalorder %s2303_s15, %s1876_s25  ;;  %s2024_s9 = smov [#allocation8]  }
  0x74   : > { %s1881_s18 = sshll.u32 %s2024_s9, 4  ;;  %s1882_s18 = int_to_ptr.vmem [resolvable:$false] %s1881_s18 }
  0x75   : > { %p1879_p6 = pnand %p1877_p13, %p3004_p11  ;;  %s1883_s16 = scalar_lea.vmem %s1882_s18, 16384 }
  0x76   : > { %p1884_p1 = scmp.lt.s32.totalorder %s2303_s15, %s1882_s18  ;;  %p1885_p0 = scmp.lt.s32.totalorder %s1883_s16, %s1876_s25 }
  0x77   : > { %p1880_p5 = pneg %p1879_p6 }
  0x78   : > { %p1886_p9 = por %p1885_p0, %p1884_p1 }
  0x7a   : > { %p1887_p12 = pnand %p1886_p9, %p1880_p5 }
  0x7c   : > { %1890 = shalt.err (!%p1887_p12)
}
  0x7d   : > { %1635 = dma.hbm_to_vmem [thread:$0]  (!%p2151_p7), %s2301_s13, 8192, %s2303_s15, %s2158_s7, %s3002_s4, %s3002_s4, %s3001_s23  }
  0x7e   : > { %p3005_p3 = scmp.ne.s32.totalorder %s2989_s8, 0 }
  0x80   : > { %283 = sbr.rel (%p3005_p3) target bundleno = 809 (0x329), region = 40 }
  0x87   : > { %s2335_s1 = sand.u32 1, %s1993_s22   ;;  %p3006_p4 = scmp.ne.s32.totalorder %s2993_s30, 0 }
  0x88   : > { %s1470_s27 = sshll.u32 %s2335_s1, 7  ;;  %s286_s11 = scalar_lea.sflag [#allocation4], %s2335_s1 }
  0x89   : > { %s2339_s29 = scalar_lea.vmem [#allocation3], %s1470_s27 }
  0x8a   : > { %1964 = dma.done.wait (%p3006_p4), %s286_s11, 2048  }
  0x8b   : > { %1966 = vsyncadd (%p3006_p4), %s286_s11, 4294965248  ;;  %s294_s6 = sand.u32 1, %s2196_s12   ;;  %s296_s7 = sand.u32 1, %s1981_s19  }
  0x8c   : > { %s1471_s8 = sshll.u32 %s296_s7, 9  ;;  %s295_s23 = scalar_lea.sflag [#allocation7], %s294_s6 }
  0x8d   : > { %s2347_s4 = scalar_lea.vmem [#allocation6], %s1471_s8  ;;  %p3007_p7 = scmp.ne.s32.totalorder %s2995_s17, 0 }
  0x8f   : > { %1968 = dma.done.wait (%p3007_p7), %s295_s23, 16384  }
  0x90   : > { %1970 = vsyncadd (%p3007_p7), %s295_s23, 4294950912  ;;  %s1474_s15 = sshll.u32 %s2001_s24, 1  ;;  %s2360_s10 = scalar_lea.vmem [#allocation8], %s1471_s8 }
  0x91   : > { %p351_p8 = scmp.lt.s32.totalorder %s1474_s15, 3  ;;  %s2362_s20 = scalar_lea.vmem [#allocation9], %s1470_s27 }
  0x92   : > { %p1475_p10 = scmp.ne.s32.totalorder %s2001_s24, 0 }
  0x93   : > { %s3081_s15 = smov (!%p351_p8, %s1474_s15), 3  ;;  %v2025_v0 = vmov (!%p1475_p10), 0.0  }
  0x94   : > { %s353_s12 = scalar_lea.vmem %s2944_s2, %s3081_s15  ;;  %360 = sbr.rel (%p1475_p10) target bundleno = 156 (0x9c), region = 56  ;;  %361 = vst [vmem:[#allocation2] sm:$0xff] (!%p1475_p10), %v2025_v0  ;;  %362 = vst [vmem:[#allocation2 + $0x8] sm:$0xff] (!%p1475_p10), %v2025_v0 }
  0x95   : > { %363 = vst [vmem:[#allocation2 + $0x10] sm:$0xff] (!%p1475_p10), %v2025_v0  ;;  %364 = vst [vmem:[#allocation2 + $0x18] sm:$0xff] (!%p1475_p10), %v2025_v0 }
  0x96   : > { %365 = vst [vmem:[#allocation2 + $0x20] sm:$0xff] (!%p1475_p10), %v2025_v0  ;;  %366 = vst [vmem:[#allocation2 + $0x28] sm:$0xff] (!%p1475_p10), %v2025_v0 }
  0x97   : > { %367 = vst [vmem:[#allocation2 + $0x30] sm:$0xff] (!%p1475_p10), %v2025_v0  ;;  %368 = vst [vmem:[#allocation2 + $0x38] sm:$0xff] (!%p1475_p10), %v2025_v0 }
  0x98   : > { %369 = vst [vmem:[#allocation2 + $0x40] sm:$0xff] (!%p1475_p10), %v2025_v0  ;;  %370 = vst [vmem:[#allocation2 + $0x48] sm:$0xff] (!%p1475_p10), %v2025_v0 }
  0x99   : > { %371 = vst [vmem:[#allocation2 + $0x50] sm:$0xff] (!%p1475_p10), %v2025_v0  ;;  %372 = vst [vmem:[#allocation2 + $0x58] sm:$0xff] (!%p1475_p10), %v2025_v0 }
  0x9a   : > { %373 = vst [vmem:[#allocation2 + $0x60] sm:$0xff] (!%p1475_p10), %v2025_v0  ;;  %374 = vst [vmem:[#allocation2 + $0x68] sm:$0xff] (!%p1475_p10), %v2025_v0 }
  0x9b   : > { %375 = vst [vmem:[#allocation2 + $0x70] sm:$0xff] %v2025_v0  ;;  %376 = vst [vmem:[#allocation2 + $0x78] sm:$0xff] %v2025_v0 }
  0x9c PF: > { %v394_v1 = vld [vmem:[%s2347_s4 + $0x8] sm:$0xff]  ;;  %v396_v2 = vld [vmem:[%s2347_s4 + $0x18] sm:$0xff]  ;;  %v393_v3 = vld [vmem:[%s2347_s4] sm:$0xff]  ;;  %p1476_p2 = scmp.ne.s32.totalorder %s2001_s24, 1 }
  0x9d   : > { %v1490_v4 = vpack.c.bf16 %v396_v2, %v394_v1  ;;  %v395_v5 = vld [vmem:[%s2347_s4 + $0x10] sm:$0xff]  ;;  %v398_v6 = vld [vmem:[%s2347_s4 + $0x28] sm:$0xff]  ;;  %v400_v7 = vld [vmem:[%s2347_s4 + $0x38] sm:$0xff]  ;;  %s3053_s16 = sld [smem:[#allocation44_spill]] (!%p1476_p2) }
  0x9e   : > { %v1492_v8 = vpack.c.bf16 %v395_v5, %v393_v3  ;;  %v1494_v9 = vpack.c.bf16 %v400_v7, %v398_v6  ;;  %v397_v10 = vld [vmem:[%s2347_s4 + $0x20] sm:$0xff]  ;;  %v399_v11 = vld [vmem:[%s2347_s4 + $0x30] sm:$0xff]  ;;  %v402_v12 = vld [vmem:[%s2347_s4 + $0x48] sm:$0xff] }
  0x9f   : > { %1491 = vmatprep.subr.bf16.mxu0 %v1490_v4  ;;  %v404_v13 = vld [vmem:[%s2347_s4 + $0x58] sm:$0xff]  ;;  %v1496_v14 = vpack.c.bf16 %v399_v11, %v397_v10  ;;  %v401_v16 = vld [vmem:[%s2347_s4 + $0x40] sm:$0xff]  ;;  %v403_v17 = vld [vmem:[%s2347_s4 + $0x50] sm:$0xff] }
  0xa0   : > { %1493 = vmatpush1.bf16.msra.mxu0 %v1492_v8  ;;  %v1498_v15 = vpack.c.bf16 %v404_v13, %v402_v12  ;;  %v406_v18 = vld [vmem:[%s2347_s4 + $0x68] sm:$0xff]  ;;  %v408_v19 = vld [vmem:[%s2347_s4 + $0x78] sm:$0xff]  ;;  %v1500_v20 = vpack.c.bf16 %v403_v17, %v401_v16  ;;  %v405_v22 = vld [vmem:[%s2347_s4 + $0x60] sm:$0xff] }
  0xa1   : > { %1495 = vmatprep.subr.bf16.mxu0 %v1494_v9  ;;  %v1502_v21 = vpack.c.bf16 %v408_v19, %v406_v18  ;;  %v407_v23 = vld [vmem:[%s2347_s4 + $0x70] sm:$0xff]  ;;  %v410_v24 = vld [vmem:[%s2347_s4 + $0x88] sm:$0xff]  ;;  %v412_v25 = vld [vmem:[%s2347_s4 + $0x98] sm:$0xff] }
  0xa2   : > { %v1504_v26 = vpack.c.bf16 %v407_v23, %v405_v22  ;;  %v1506_v27 = vpack.c.bf16 %v412_v25, %v410_v24  ;;  %v409_v28 = vld [vmem:[%s2347_s4 + $0x80] sm:$0xff]  ;;  %v411_v29 = vld [vmem:[%s2347_s4 + $0x90] sm:$0xff]  ;;  %v414_v30 = vld [vmem:[%s2347_s4 + $0xa8] sm:$0xff] }
  0xa3   : > { %v416_v31 = vld [vmem:[%s2347_s4 + $0xb8] sm:$0xff]  ;;  %v1508_v32 = vpack.c.bf16 %v411_v29, %v409_v28  ;;  %v413_v34 = vld [vmem:[%s2347_s4 + $0xa0] sm:$0xff]  ;;  %v415_v35 = vld [vmem:[%s2347_s4 + $0xb0] sm:$0xff] }
  0xa4   : > { %1497 = vmatpush1.bf16.msra.mxu0 %v1496_v14  ;;  %v1510_v33 = vpack.c.bf16 %v416_v31, %v414_v30  ;;  %v418_v36 = vld [vmem:[%s2347_s4 + $0xc8] sm:$0xff]  ;;  %v420_v37 = vld [vmem:[%s2347_s4 + $0xd8] sm:$0xff]  ;;  %v1512_v38 = vpack.c.bf16 %v415_v35, %v413_v34  ;;  %v417_v40 = vld [vmem:[%s2347_s4 + $0xc0] sm:$0xff] }
  0xa5   : > { %1499 = vmatprep.subr.bf16.mxu0 %v1498_v15  ;;  %v1514_v39 = vpack.c.bf16 %v420_v37, %v418_v36  ;;  %v419_v41 = vld [vmem:[%s2347_s4 + $0xd0] sm:$0xff]  ;;  %v378_v42 = vld [vmem:[%s2339_s29 + $0x8] sm:$0xff]  ;;  %v424_v44 = vld [vmem:[%s2347_s4 + $0xf8] sm:$0xff] }
  0xa6   : > { %v422_v43 = vld [vmem:[%s2347_s4 + $0xe8] sm:$0xff]  ;;  %533 = vmatprep.mubr.f32.mxu0 %v378_v42  ;;  %v1516_v45 = vpack.c.bf16 %v419_v41, %v417_v40  ;;  %v421_v47 = vld [vmem:[%s2347_s4 + $0xe0] sm:$0xff]  ;;  %v423_v48 = vld [vmem:[%s2347_s4 + $0xf0] sm:$0xff] }
  0xa7   : > { %v1518_v46 = vpack.c.bf16 %v424_v44, %v422_v43  ;;  %v426_v49 = vld [vmem:[%s2347_s4 + $0x108] sm:$0xff]  ;;  %v428_v50 = vld [vmem:[%s2347_s4 + $0x118] sm:$0xff]  ;;  %v425_v52 = vld [vmem:[%s2347_s4 + $0x100] sm:$0xff]  ;;  %v1520_v57 = vpack.c.bf16 %v423_v48, %v421_v47 }
  0xa8   : > { %1501 = vmatpush1.bf16.msra.mxu0 %v1500_v20  ;;  %v1031_v51 = vld [vmem:[%s2360_s10 + $0x8] sm:$0xff]  ;;  %v427_v53 = vld [vmem:[%s2347_s4 + $0x110] sm:$0xff]  ;;  %v1033_v54 = vld [vmem:[%s2360_s10 + $0x18] sm:$0xff]  ;;  %v1522_v63 = vpack.c.bf16 %v428_v50, %v426_v49 }
  0xa9   : > { %1503 = vmatprep.subr.bf16.mxu0 %v1502_v21  ;;  %v1030_v55 = vld [vmem:[%s2360_s10] sm:$0xff]  ;;  %v1032_v56 = vld [vmem:[%s2360_s10 + $0x10] sm:$0xff]  ;;  %v1554_v58 = vpack.c.bf16 %v1033_v54, %v1031_v51  ;;  %v1035_v60 = vld [vmem:[%s2360_s10 + $0x28] sm:$0xff]  ;;  %v1524_v7 = vpack.c.bf16 %v427_v53, %v425_v52 }
  0xaa   : > { %v1556_v59 = vpack.c.bf16 %v1032_v56, %v1030_v55  ;;  %v1037_v61 = vld [vmem:[%s2360_s10 + $0x38] sm:$0xff]  ;;  %v1034_v62 = vld [vmem:[%s2360_s10 + $0x20] sm:$0xff]  ;;  %v1036_v1 = vld [vmem:[%s2360_s10 + $0x30] sm:$0xff] }
  0xab   : > { %v1558_v0 = vpack.c.bf16 %v1037_v61, %v1035_v60  ;;  %v1039_v2 = vld [vmem:[%s2360_s10 + $0x48] sm:$0xff]  ;;  %v1041_v3 = vld [vmem:[%s2360_s10 + $0x58] sm:$0xff]  ;;  %1555 = vmatprep.subr.bf16.mxu1 %v1554_v58  ;;  %v1560_v6 = vpack.c.bf16 %v1036_v1, %v1034_v62  ;;  %v1038_v9 = vld [vmem:[%s2360_s10 + $0x40] sm:$0xff] }
  0xac   : > { %1505 = vmatpush1.bf16.msra.mxu0 %v1504_v26  ;;  %v430_v4 = vld [vmem:[%s2347_s4 + $0x128] sm:$0xff]  ;;  %v432_v5 = vld [vmem:[%s2347_s4 + $0x138] sm:$0xff]  ;;  %1557 = vmatpush1.bf16.msra.mxu1 %v1556_v59  ;;  %v1562_v8 = vpack.c.bf16 %v1041_v3, %v1039_v2  ;;  %v1040_v10 = vld [vmem:[%s2360_s10 + $0x50] sm:$0xff] }
  0xad   : > { %1507 = vmatprep.subr.bf16.mxu0 %v1506_v27  ;;  %1559 = vmatprep.subr.bf16.mxu1 %v1558_v0  ;;  %v1526_v11 = vpack.c.bf16 %v432_v5, %v430_v4  ;;  %v429_v12 = vld [vmem:[%s2347_s4 + $0x120] sm:$0xff]  ;;  %v431_v13 = vld [vmem:[%s2347_s4 + $0x130] sm:$0xff]  ;;  %v434_v14 = vld [vmem:[%s2347_s4 + $0x148] sm:$0xff]  ;;  %v1564_v16 = vpack.c.bf16 %v1040_v10, %v1038_v9 }
  0xae   : > { %v436_v15 = vld [vmem:[%s2347_s4 + $0x158] sm:$0xff]  ;;  %v1528_v17 = vpack.c.bf16 %v431_v13, %v429_v12  ;;  %v433_v19 = vld [vmem:[%s2347_s4 + $0x140] sm:$0xff]  ;;  %v435_v20 = vld [vmem:[%s2347_s4 + $0x150] sm:$0xff] }
  0xaf   : > { %v1530_v18 = vpack.c.bf16 %v436_v15, %v434_v14  ;;  %v438_v21 = vld [vmem:[%s2347_s4 + $0x168] sm:$0xff]  ;;  %v440_v22 = vld [vmem:[%s2347_s4 + $0x178] sm:$0xff]  ;;  %v1532_v23 = vpack.c.bf16 %v435_v20, %v433_v19  ;;  %v437_v25 = vld [vmem:[%s2347_s4 + $0x160] sm:$0xff] }
  0xb0   : > { %1509 = vmatpush1.bf16.msra.mxu0 %v1508_v32  ;;  %1561 = vmatpush1.bf16.msra.mxu1 %v1560_v6  ;;  %v1534_v24 = vpack.c.bf16 %v440_v22, %v438_v21  ;;  %v439_v26 = vld [vmem:[%s2347_s4 + $0x170] sm:$0xff]  ;;  %v442_v27 = vld [vmem:[%s2347_s4 + $0x188] sm:$0xff]  ;;  %v444_v28 = vld [vmem:[%s2347_s4 + $0x198] sm:$0xff] }
  0xb1   : > { %1511 = vmatprep.subr.bf16.mxu0 %v1510_v33  ;;  %1563 = vmatprep.subr.bf16.mxu1 %v1562_v8  ;;  %v1536_v29 = vpack.c.bf16 %v439_v26, %v437_v25  ;;  %v1538_v30 = vpack.c.bf16 %v444_v28, %v442_v27  ;;  %v441_v31 = vld [vmem:[%s2347_s4 + $0x180] sm:$0xff]  ;;  %v443_v32 = vld [vmem:[%s2347_s4 + $0x190] sm:$0xff]  ;;  %v446_v33 = vld [vmem:[%s2347_s4 + $0x1a8] sm:$0xff] }
  0xb2   : > { %v448_v34 = vld [vmem:[%s2347_s4 + $0x1b8] sm:$0xff]  ;;  %v1540_v35 = vpack.c.bf16 %v443_v32, %v441_v31  ;;  %v445_v37 = vld [vmem:[%s2347_s4 + $0x1a0] sm:$0xff]  ;;  %v451_v44 = vld [vmem:[%s2347_s4 + $0x1d0] sm:$0xff] }
  0xb3   : > { %v1542_v36 = vpack.c.bf16 %v448_v34, %v446_v33  ;;  %v452_v40 = vld [vmem:[%s2347_s4 + $0x1d8] sm:$0xff]  ;;  %v449_v43 = vld [vmem:[%s2347_s4 + $0x1c0] sm:$0xff]  ;;  %v455_v50 = vld [vmem:[%s2347_s4 + $0x1f0] sm:$0xff] }
  0xb4   : > { %1513 = vmatpush1.bf16.msra.mxu0 %v1512_v38  ;;  %1565 = vmatpush1.bf16.msra.mxu1 %v1564_v16  ;;  %v447_v38 = vld [vmem:[%s2347_s4 + $0x1b0] sm:$0xff]  ;;  %v1548_v47 = vpack.c.bf16 %v451_v44, %v449_v43  ;;  %v453_v49 = vld [vmem:[%s2347_s4 + $0x1e0] sm:$0xff]  ;;  %v380_v53 = vld [vmem:[%s2339_s29 + $0x18] sm:$0xff] }
  0xb5   : > { %1515 = vmatprep.subr.bf16.mxu0 %v1514_v39  ;;  %v450_v39 = vld [vmem:[%s2347_s4 + $0x1c8] sm:$0xff]  ;;  %v1544_v41 = vpack.c.bf16 %v447_v38, %v445_v37  ;;  %v1552_v51 = vpack.c.bf16 %v455_v50, %v453_v49  ;;  %v377_v52 = vld [vmem:[%s2339_s29] sm:$0xff]  ;;  %v379_v54 = vld [vmem:[%s2339_s29 + $0x10] sm:$0xff] }
  0xb6   : > { %v1546_v42 = vpack.c.bf16 %v452_v40, %v450_v39  ;;  %v382_v55 = vld [vmem:[%s2339_s29 + $0x28] sm:$0xff]  ;;  %v381_v56 = vld [vmem:[%s2339_s29 + $0x20] sm:$0xff]  ;;  %v383_v58 = vld [vmem:[%s2339_s29 + $0x30] sm:$0xff] }
  0xb7   : > { %v386_v59 = vld [vmem:[%s2339_s29 + $0x48] sm:$0xff]  ;;  %v385_v60 = vld [vmem:[%s2339_s29 + $0x40] sm:$0xff]  ;;  %v388_v61 = vld [vmem:[%s2339_s29 + $0x58] sm:$0xff] }
  0xb8   : > { %1517 = vmatpush1.bf16.msra.mxu0 %v1516_v45  ;;  %v454_v45 = vld [vmem:[%s2347_s4 + $0x1e8] sm:$0xff]  ;;  %v387_v62 = vld [vmem:[%s2339_s29 + $0x50] sm:$0xff]  ;;  %v389_v0 = vld [vmem:[%s2339_s29 + $0x60] sm:$0xff] }
  0xb9   : > { %1519 = vmatprep.subr.bf16.mxu0 %v1518_v46  ;;  %v456_v46 = vld [vmem:[%s2347_s4 + $0x1f8] sm:$0xff]  ;;  %v391_v2 = vld [vmem:[%s2339_s29 + $0x70] sm:$0xff]  ;;  %v1043_v3 = vld [vmem:[%s2360_s10 + $0x68] sm:$0xff] }
  0xba   : > { %v1550_v48 = vpack.c.bf16 %v456_v46, %v454_v45  ;;  %v392_v1 = vld [vmem:[%s2339_s29 + $0x78] sm:$0xff]  ;;  %v1042_v6 = vld [vmem:[%s2360_s10 + $0x60] sm:$0xff]  ;;  %v1047_v9 = vld [vmem:[%s2360_s10 + $0x88] sm:$0xff] }
  0xbb   : > { %v1045_v4 = vld [vmem:[%s2360_s10 + $0x78] sm:$0xff]  ;;  %v1046_v12 = vld [vmem:[%s2360_s10 + $0x80] sm:$0xff]  ;;  %v1048_v13 = vld [vmem:[%s2360_s10 + $0x90] sm:$0xff] }
  0xbc   : > { %1521 = vmatpush1.bf16.msra.mxu0 %v1520_v57  ;;  %v384_v57 = vld [vmem:[%s2339_s29 + $0x38] sm:$0xff]  ;;  %v1566_v5 = vpack.c.bf16 %v1045_v4, %v1043_v3  ;;  %v1572_v14 = vpack.c.bf16 %v1048_v13, %v1046_v12  ;;  %v1051_v15 = vld [vmem:[%s2360_s10 + $0xa8] sm:$0xff]  ;;  %v1052_v19 = vld [vmem:[%s2360_s10 + $0xb0] sm:$0xff] }
  0xbd   : > { %1523 = vmatprep.subr.bf16.mxu0 %v1522_v63  ;;  %v390_v63 = vld [vmem:[%s2339_s29 + $0x68] sm:$0xff]  ;;  %v1049_v10 = vld [vmem:[%s2360_s10 + $0x98] sm:$0xff]  ;;  %v1056_v25 = vld [vmem:[%s2360_s10 + $0xd0] sm:$0xff] }
  0xbe   : > { %1567 = vmatprep.subr.bf16.mxu1 %v1566_v5  ;;  %v1053_v16 = vld [vmem:[%s2360_s10 + $0xb8] sm:$0xff]  ;;  %v1055_v21 = vld [vmem:[%s2360_s10 + $0xc8] sm:$0xff]  ;;  %v1060_v31 = vld [vmem:[%s2360_s10 + $0xf0] sm:$0xff] }
  0xbf   : > { %v1057_v22 = vld [vmem:[%s2360_s10 + $0xd8] sm:$0xff]  ;;  %v1059_v27 = vld [vmem:[%s2360_s10 + $0xe8] sm:$0xff]  ;;  %v1064_v37 = vld [vmem:[%s2360_s10 + $0x110] sm:$0xff] }
  0xc0   : > { %1525 = vmatpush1.bf16.msra.mxu0 %v1524_v7  ;;  %v1044_v7 = vld [vmem:[%s2360_s10 + $0x70] sm:$0xff]  ;;  %v1061_v28 = vld [vmem:[%s2360_s10 + $0xf8] sm:$0xff]  ;;  %v1063_v33 = vld [vmem:[%s2360_s10 + $0x108] sm:$0xff] }
  0xc1   : > { %1527 = vmatprep.subr.bf16.mxu0 %v1526_v11  ;;  %v1568_v8 = vpack.c.bf16 %v1044_v7, %v1042_v6  ;;  %v1570_v11 = vpack.c.bf16 %v1049_v10, %v1047_v9  ;;  %v1065_v34 = vld [vmem:[%s2360_s10 + $0x118] sm:$0xff]  ;;  %v1067_v39 = vld [vmem:[%s2360_s10 + $0x128] sm:$0xff]  ;;  %v1068_v43 = vld [vmem:[%s2360_s10 + $0x130] sm:$0xff] }
  0xc2   : > { %v1069_v40 = vld [vmem:[%s2360_s10 + $0x138] sm:$0xff]  ;;  %v1071_v45 = vld [vmem:[%s2360_s10 + $0x148] sm:$0xff]  ;;  %v1072_v49 = vld [vmem:[%s2360_s10 + $0x150] sm:$0xff] }
  0xc3   : > { %1569 = vmatpush1.bf16.msra.mxu1 %v1568_v8  ;;  %v1073_v46 = vld [vmem:[%s2360_s10 + $0x158] sm:$0xff]  ;;  %v1084_v3 = vld [vmem:[%s2360_s10 + $0x1b0] sm:$0xff]  ;;  %v1087_v5 = vld [vmem:[%s2360_s10 + $0x1c8] sm:$0xff] }
  0xc4   : > { %1529 = vmatpush1.bf16.msra.mxu0 %v1528_v17  ;;  %1571 = vmatprep.subr.bf16.mxu1 %v1570_v11  ;;  %v1574_v17 = vpack.c.bf16 %v1053_v16, %v1051_v15  ;;  %v1089_v6 = vld [vmem:[%s2360_s10 + $0x1d8] sm:$0xff]  ;;  %v1086_v8 = vld [vmem:[%s2360_s10 + $0x1c0] sm:$0xff]  ;;  %v1088_v9 = vld [vmem:[%s2360_s10 + $0x1d0] sm:$0xff] }
  0xc5   : > { %1531 = vmatprep.subr.bf16.mxu0 %v1530_v18  ;;  %v1050_v18 = vld [vmem:[%s2360_s10 + $0xa0] sm:$0xff]  ;;  %v1610_v7 = vpack.c.bf16 %v1089_v6, %v1087_v5  ;;  %v1091_v10 = vld [vmem:[%s2360_s10 + $0x1e8] sm:$0xff]  ;;  %v1612_v11 = vpack.c.bf16 %v1088_v9, %v1086_v8  ;;  %v1093_v12 = vld [vmem:[%s2360_s10 + $0x1f8] sm:$0xff] }
  0xc6   : > { %v1576_v20 = vpack.c.bf16 %v1052_v19, %v1050_v18  ;;  %v1090_v13 = vld [vmem:[%s2360_s10 + $0x1e0] sm:$0xff]  ;;  %v1614_v15 = vpack.c.bf16 %v1093_v12, %v1091_v10 }
  0xc7   : > { %1573 = vmatpush1.bf16.msra.mxu1 %v1572_v14  ;;  %v1092_v14 = vld [vmem:[%s2360_s10 + $0x1f0] sm:$0xff] }
  0xc8   : > { %1533 = vmatpush1.bf16.msra.mxu0 %v1532_v23  ;;  %1575 = vmatprep.subr.bf16.mxu1 %v1574_v17  ;;  %v1578_v23 = vpack.c.bf16 %v1057_v22, %v1055_v21  ;;  %v1616_v16 = vpack.c.bf16 %v1092_v14, %v1090_v13  ;;  %v459_v17 = vlaneseq }
  0xc9   : > { %1535 = vmatprep.subr.bf16.mxu0 %v1534_v24  ;;  %v1054_v24 = vld [vmem:[%s2360_s10 + $0xc0] sm:$0xff] }
  0xca   : > { %v1580_v26 = vpack.c.bf16 %v1056_v25, %v1054_v24  ;;  %v2509_v18 = vshrl.u32 %v459_v17, 7 }
  0xcb   : > { %1577 = vmatpush1.bf16.msra.mxu1 %v1576_v20  ;;  %v457_v20 = vld [vmem:[%s353_s12] sm:$0x3] }
  0xcc   : > { %1537 = vmatpush1.bf16.msra.mxu0 %v1536_v29  ;;  %1579 = vmatprep.subr.bf16.mxu1 %v1578_v23  ;;  %v1582_v29 = vpack.c.bf16 %v1061_v28, %v1059_v27  ;;  %3008 = vst [vmem:[#allocation21_spill] sm:$0xff] %v2509_v18  ;;  %v2965_v19 = vsub.s32 0, %v2509_v18  ;;  %v2964_v21 = vsub.s32 1, %v2509_v18 }
  0xcd   : > { %1539 = vmatprep.subr.bf16.mxu0 %v1538_v30  ;;  %v1058_v30 = vld [vmem:[%s2360_s10 + $0xe0] sm:$0xff] }
  0xce   : > { %v1584_v32 = vpack.c.bf16 %v1060_v31, %v1058_v30  ;;  %v2520_v22 = vrot.slane %v457_v20, %v2965_v19  ;;  %v2524_v23 = vrot.slane %v457_v20, %v2964_v21 }
  0xcf   : > { %1581 = vmatpush1.bf16.msra.mxu1 %v1580_v26 }
  0xd0   : > { %1541 = vmatpush1.bf16.msra.mxu0 %v1540_v35  ;;  %1583 = vmatprep.subr.bf16.mxu1 %v1582_v29  ;;  %v1586_v35 = vpack.c.bf16 %v1065_v34, %v1063_v33 }
  0xd1   : > { %1543 = vmatprep.subr.bf16.mxu0 %v1542_v36  ;;  %v1062_v36 = vld [vmem:[%s2360_s10 + $0x100] sm:$0xff] }
  0xd2   : > { %v1588_v38 = vpack.c.bf16 %v1064_v37, %v1062_v36 }
  0xd3   : > { %1585 = vmatpush1.bf16.msra.mxu1 %v1584_v32 }
  0xd4   : > { %1545 = vmatpush1.bf16.msra.mxu0 %v1544_v41  ;;  %1587 = vmatprep.subr.bf16.mxu1 %v1586_v35  ;;  %v1590_v41 = vpack.c.bf16 %v1069_v40, %v1067_v39 }
  0xd5   : > { %1547 = vmatprep.subr.bf16.mxu0 %v1546_v42  ;;  %v1066_v42 = vld [vmem:[%s2360_s10 + $0x120] sm:$0xff] }
  0xd6   : > { %v1592_v44 = vpack.c.bf16 %v1068_v43, %v1066_v42 }
  0xd7   : > { %1589 = vmatpush1.bf16.msra.mxu1 %v1588_v38 }
  0xd8   : > { %1549 = vmatpush1.bf16.msra.mxu0 %v1548_v47  ;;  %1591 = vmatprep.subr.bf16.mxu1 %v1590_v41  ;;  %v1594_v47 = vpack.c.bf16 %v1073_v46, %v1071_v45 }
  0xd9   : > { %1551 = vmatprep.subr.bf16.mxu0 %v1550_v48  ;;  %v1070_v48 = vld [vmem:[%s2360_s10 + $0x140] sm:$0xff] }
  0xda   : > { %v1596_v50 = vpack.c.bf16 %v1072_v49, %v1070_v48 }
  0xdb   : > { %1593 = vmatpush1.bf16.msra.mxu1 %v1592_v44 }
  0xdc   : > { %1553 = vmatpush1.bf16.msra.mxu0 %v1552_v51  ;;  %1595 = vmatprep.subr.bf16.mxu1 %v1594_v47  ;;  %v1075_v51 = vld [vmem:[%s2360_s10 + $0x168] sm:$0xff]  ;;  %v2968_v47 = vmov -1.0  }
  0xdf   : > { %534 = vmatmul.mubr.f32.vlgmr.msra.gmra.mrb[0].mxu0 %v377_v52  ;;  %1597 = vmatpush1.bf16.msra.mxu1 %v1596_v50  ;;  %v1077_v52 = vld [vmem:[%s2360_s10 + $0x178] sm:$0xff] }
  0xe0   : > { %539 = vmatprep.mubr.f32.mxu0 %v380_v53  ;;  %v1598_v53 = vpack.c.bf16 %v1077_v52, %v1075_v51 }
  0xe2   : > { %1599 = vmatprep.subr.bf16.mxu1 %v1598_v53 }
  0xe3   : > { %540 = vmatmul.mubr.f32.gmra.mrb[2].mxu0 %v379_v54  ;;  %v1074_v54 = vld [vmem:[%s2360_s10 + $0x160] sm:$0xff] }
  0xe4   : > { %545 = vmatprep.mubr.f32.mxu0 %v382_v55  ;;  %v1076_v55 = vld [vmem:[%s2360_s10 + $0x170] sm:$0xff] }
  0xe7   : > { %546 = vmatmul.mubr.f32.gmra.mrb[4].mxu0 %v381_v56  ;;  %v1600_v56 = vpack.c.bf16 %v1076_v55, %v1074_v54 }
  0xe8   : > { %551 = vmatprep.mubr.f32.mxu0 %v384_v57  ;;  %v1079_v57 = vld [vmem:[%s2360_s10 + $0x188] sm:$0xff] }
  0xe9   : > { %1601 = vmatpush1.bf16.msra.mxu1 %v1600_v56 }
  0xeb   : > { %552 = vmatmul.mubr.f32.gmra.mrb[6].mxu0 %v383_v58  ;;  %v1081_v58 = vld [vmem:[%s2360_s10 + $0x198] sm:$0xff] }
  0xec   : > { %557 = vmatprep.mubr.f32.mxu0 %v386_v59  ;;  %v1602_v59 = vpack.c.bf16 %v1081_v58, %v1079_v57 }
  0xee   : > { %1603 = vmatprep.subr.bf16.mxu1 %v1602_v59 }
  0xef   : > { %558 = vmatmul.mubr.f32.gmra.mrb[8].mxu0 %v385_v60  ;;  %v1078_v60 = vld [vmem:[%s2360_s10 + $0x180] sm:$0xff] }
  0xf0   : > { %563 = vmatprep.mubr.f32.mxu0 %v388_v61  ;;  %v1080_v61 = vld [vmem:[%s2360_s10 + $0x190] sm:$0xff] }
  0xf3   : > { %564 = vmatmul.mubr.f32.gmra.mrb[10].mxu0 %v387_v62  ;;  %v1604_v62 = vpack.c.bf16 %v1080_v61, %v1078_v60 }
  0xf4   : > { %569 = vmatprep.mubr.f32.mxu0 %v390_v63  ;;  %v1083_v63 = vld [vmem:[%s2360_s10 + $0x1a8] sm:$0xff] }
  0xf5   : > { %1605 = vmatpush1.bf16.msra.mxu1 %v1604_v62 }
  0xf7   : > { %570 = vmatmul.mubr.f32.gmra.mrb[12].mxu0 %v389_v0  ;;  %v1085_v0 = vld [vmem:[%s2360_s10 + $0x1b8] sm:$0xff] }
  0xf8   : > { %575 = vmatprep.mubr.f32.mxu0 %v392_v1  ;;  %v1606_v1 = vpack.c.bf16 %v1085_v0, %v1083_v63 }
  0xfa   : > { %1607 = vmatprep.subr.bf16.mxu1 %v1606_v1 }
  0xfb   : > { %576 = vmatmul.mubr.f32.gmra.mrb[14].mxu0 %v391_v2  ;;  %v1082_v2 = vld [vmem:[%s2360_s10 + $0x1a0] sm:$0xff] }
  0xfc   : > { %v1608_v4 = vpack.c.bf16 %v1084_v3, %v1082_v2 }
  0xfe   : > { %1609 = vmatpush1.bf16.msra.mxu1 %v1608_v4 }
  0xff   : > { %1611 = vmatprep.subr.bf16.mxu1 %v1610_v7 }
 0x102   : > { %1613 = vmatpush1.bf16.msra.mxu1 %v1612_v11 }
 0x103   : > { %1615 = vmatprep.subr.bf16.mxu1 %v1614_v15 }
 0x106   : > { %1617 = vmatpush1.bf16.msra.mxu1 %v1616_v16 }
 0x1b2   : > { %v535_v24 = vpop.f32.mrb[0].mxu0 }
 0x1b3   : > { %v536_v25 = vadd.f32 %v535_v24, %v2520_v22  ;;  %v537_v26 = vpop.f32.mrb[1].mxu0 }
 0x1b4   : > { %v538_v27 = vadd.f32 %v537_v26, %v2524_v23 }
 0x1b5   : > { %v598_v28 = vmul.f32 0.70710677, %v536_v25  ;;  %v2533_v46 = vmul.f32 0.5, %v536_v25 }
 0x1b6   : > { %v2528_v29 = vmul.f32 0.70710677, %v538_v27  ;;  %v541_v30 = vpop.f32.mrb[2].mxu0  ;;  %v2538_v51 = vmul.f32 0.5, %v538_v27 }
 0x1b7   : > { %v646_v31 = vand.u32 2147483647, %v598_v28  ;;  %v542_v32 = vadd.f32 %v541_v30, %v2520_v22  ;;  %v543_v33 = vpop.f32.mrb[3].mxu0  ;;  %vm614_vm0 = vcmp.ge.f32.partialorder %v598_v28, 0.0 }
 0x1b8   : > { %v647_v34 = vand.u32 2147483647, %v2528_v29  ;;  %v544_v35 = vadd.f32 %v543_v33, %v2524_v23  ;;  %v2536_v48 = vsel %vm614_vm0, 1.0, %v2968_v47  ;;  %vm615_vm10 = vcmp.ge.f32.partialorder %v2528_v29, 0.0 }
 0x1b9   : > { %v662_v36 = vmul.f32 0.3275911, %v646_v31  ;;  %v870_v37 = vsub.f32 0.0, %v646_v31  ;;  %v600_v38 = vmul.f32 0.70710677, %v542_v32  ;;  %v2542_v2 = vmul.f32 0.5, %v542_v32 }
 0x1ba   : > { %v663_v39 = vmul.f32 0.3275911, %v647_v34  ;;  %v871_v40 = vsub.f32 0.0, %v647_v34  ;;  %v601_v41 = vmul.f32 0.70710677, %v544_v35  ;;  %v547_v45 = vpop.f32.mrb[4].mxu0 }
 0x1bb   : > { %v678_v42 = vadd.f32 1.0, %v662_v36  ;;  %v886_v43 = vmul.f32 %v870_v37, %v646_v31  ;;  %v648_v44 = vand.u32 2147483647, %v600_v38  ;;  %v549_v50 = vpop.f32.mrb[5].mxu0  ;;  %vm616_vm1 = vcmp.ge.f32.partialorder %v600_v38, 0.0 }
 0x1bc   : > { %v887_v49 = vmul.f32 %v871_v40, %v647_v34  ;;  %v679_v52 = vadd.f32 1.0, %v663_v39  ;;  %vm617_vm2 = vcmp.ge.f32.partialorder %v601_v41, 0.0  ;;  %v649_v56 = vand.u32 2147483647, %v601_v41 }
 0x1bd   : > { %v664_v53 = vmul.f32 0.3275911, %v648_v44  ;;  %v872_v54 = vsub.f32 0.0, %v648_v44  ;;  %v902_v55 = vmul.f32 1.442695, %v886_v43  ;;  %1737 = vrcp.f32 %v678_v42 }
 0x1be   : > { %v553_v57 = vpop.f32.mrb[6].mxu0  ;;  %v904_v58 = vmul.f32 1.442695, %v887_v49  ;;  %v548_v60 = vadd.f32 %v547_v45, %v2520_v22  ;;  %v665_v63 = vmul.f32 0.3275911, %v649_v56  ;;  %v873_v0 = vsub.f32 0.0, %v649_v56 }
 0x1bf   : > { %v680_v59 = vadd.f32 1.0, %v664_v53  ;;  %v555_v61 = vpop.f32.mrb[7].mxu0  ;;  %v888_v62 = vmul.f32 %v872_v54, %v648_v44  ;;  %v550_v1 = vadd.f32 %v549_v50, %v2524_v23  ;;  %1739 = vrcp.f32 %v679_v52 }
 0x1c0   : > { %v2544_v3 = vmul.f32 0.5, %v544_v35  ;;  %v602_v4 = vmul.f32 0.70710677, %v548_v60  ;;  %1741 = vpow2.f32 %v902_v55  ;;  %v2548_v5 = vsel %vm616_vm1, 1.0, %v2968_v47 }
 0x1c1   : > { %v889_v6 = vmul.f32 %v873_v0, %v649_v56  ;;  %v603_v7 = vmul.f32 0.70710677, %v550_v1  ;;  %1743 = vpow2.f32 %v904_v58  ;;  %v2552_v9 = vsel %vm617_vm2, 1.0, %v2968_v47 }
 0x1c2   : > { %v559_v8 = vpop.f32.mrb[8].mxu0  ;;  %v650_v10 = vand.u32 2147483647, %v602_v4  ;;  %v554_v11 = vadd.f32 %v553_v57, %v2520_v22  ;;  %1745 = vrcp.f32 %v680_v59  ;;  %v906_v13 = vmul.f32 1.442695, %v888_v62 }
 0x1c3   : > { %v561_v12 = vpop.f32.mrb[9].mxu0  ;;  %v681_v14 = vadd.f32 1.0, %v665_v63  ;;  %v2555_v15 = vmul.f32 0.5, %v548_v60  ;;  %vm618_vm3 = vcmp.ge.f32.partialorder %v602_v4, 0.0  ;;  %v651_v20 = vand.u32 2147483647, %v603_v7 }
 0x1c4   : > { %v666_v16 = vmul.f32 0.3275911, %v650_v10  ;;  %v874_v17 = vsub.f32 0.0, %v650_v10  ;;  %v908_v24 = vmul.f32 1.442695, %v889_v6  ;;  %vm619_vm4 = vcmp.ge.f32.partialorder %v603_v7, 0.0 }
 0x1c5   : > { %v604_v25 = vmul.f32 0.70710677, %v554_v11  ;;  %v556_v26 = vadd.f32 %v555_v61, %v2524_v23  ;;  %v667_v31 = vmul.f32 0.3275911, %v651_v20  ;;  %v875_v32 = vsub.f32 0.0, %v651_v20 }
 0x1c6   : > { %v565_v27 = vpop.f32.mrb[10].mxu0  ;;  %v682_v28 = vadd.f32 1.0, %v666_v16  ;;  %v890_v30 = vmul.f32 %v874_v17, %v650_v10  ;;  %1747 = vpow2.f32 %v906_v13  ;;  %v2558_v34 = vmul.f32 0.5, %v550_v1 }
 0x1c7   : > { %v567_v33 = vpop.f32.mrb[11].mxu0  ;;  %v652_v35 = vand.u32 2147483647, %v604_v25  ;;  %v605_v36 = vmul.f32 0.70710677, %v556_v26  ;;  %v2560_v37 = vpop.eup %1737  ;;  %1749 = vrcp.f32 %v681_v14  ;;  %v2564_v38 = vsel %vm618_vm3, 1.0, %v2968_v47 }
 0x1c8   : > { %v2568_v39 = vsel %vm619_vm4, 1.0, %v2968_v47  ;;  %v891_v40 = vmul.f32 %v875_v32, %v651_v20  ;;  %1751 = vpow2.f32 %v908_v24  ;;  %v910_v41 = vmul.f32 1.442695, %v890_v30 }
 0x1c9   : > { %v668_v42 = vmul.f32 0.3275911, %v652_v35  ;;  %v876_v43 = vsub.f32 0.0, %v652_v35  ;;  %v2572_v45 = vpop.eup %1739  ;;  %1753 = vrcp.f32 %v682_v28  ;;  %v683_v49 = vadd.f32 1.0, %v667_v31 }
 0x1ca   : > { %v2570_v44 = vpop.f32.mrb[12].mxu0  ;;  %vm620_vm5 = vcmp.ge.f32.partialorder %v604_v25, 0.0  ;;  %v653_v50 = vand.u32 2147483647, %v605_v36  ;;  %v2576_v53 = vpop.eup %1741  ;;  %v912_v54 = vmul.f32 1.442695, %v891_v40  ;;  %v560_v56 = vadd.f32 %v559_v8, %v2520_v22 }
 0x1cb   : > { %v2574_v52 = vpop.f32.mrb[13].mxu0  ;;  %v684_v55 = vadd.f32 1.0, %v668_v42  ;;  %vm621_vm6 = vcmp.ge.f32.partialorder %v605_v36, 0.0  ;;  %v2579_v57 = vpop.eup %1743  ;;  %v892_v58 = vmul.f32 %v876_v43, %v652_v35  ;;  %v562_v61 = vadd.f32 %v561_v12, %v2524_v23 }
 0x1cc   : > { %v669_v59 = vmul.f32 0.3275911, %v653_v50  ;;  %v877_v60 = vsub.f32 0.0, %v653_v50  ;;  %v2582_v62 = vpop.eup %1745  ;;  %1755 = vpow2.f32 %v910_v41  ;;  %v2584_v63 = vmul.f32 0.5, %v554_v11 }
 0x1cd   : > { %v2586_v0 = vmul.f32 0.5, %v556_v26  ;;  %v606_v1 = vmul.f32 0.70710677, %v560_v56  ;;  %1757 = vrcp.f32 %v683_v49  ;;  %v2592_v6 = vsel %vm620_vm5, 1.0, %v2968_v47 }
 0x1ce   : > { %v2588_v4 = vpop.f32.mrb[14].mxu0  ;;  %v893_v7 = vmul.f32 %v877_v60, %v653_v50  ;;  %v607_v8 = vmul.f32 0.70710677, %v562_v61  ;;  %1759 = vpow2.f32 %v912_v54  ;;  %v2598_v12 = vsel %vm621_vm6, 1.0, %v2968_v47 }
 0x1cf   : > { %v2594_v10 = vpop.f32.mrb[15].mxu0  ;;  %v654_v11 = vand.u32 2147483647, %v606_v1  ;;  %v2601_v13 = vadd.f32 %v565_v27, %v2520_v22  ;;  %1761 = vrcp.f32 %v684_v55  ;;  %v914_v14 = vmul.f32 1.442695, %v892_v58 }
 0x1d0   : > { %v685_v16 = vadd.f32 1.0, %v669_v59  ;;  %v2603_v17 = vmul.f32 0.5, %v560_v56  ;;  %v2605_v20 = vpop.eup %1747  ;;  %v2607_v26 = vmul.f32 0.5, %v562_v61  ;;  %v655_v28 = vand.u32 2147483647, %v607_v8 }
 0x1d1   : > { %3009 = vst [vmem:[#allocation22_spill] sm:$0xff] %v2601_v13  ;;  %v670_v24 = vmul.f32 0.3275911, %v654_v11  ;;  %v878_v25 = vsub.f32 0.0, %v654_v11  ;;  %v2609_v30 = vpop.eup %1749  ;;  %v916_v31 = vmul.f32 1.442695, %v893_v7  ;;  %v568_v27 = vadd.f32 %v567_v33, %v2524_v23 }
 0x1d2   : > { %3010 = vst [vmem:[#allocation23_spill] sm:$0xff] %v2603_v17  ;;  %3011 = vst [vmem:[#allocation24_spill] sm:$0xff] %v2607_v26  ;;  %vm622_vm7 = vcmp.ge.f32.partialorder %v606_v1, 0.0  ;;  %v608_v32 = vmul.f32 0.70710677, %v2601_v13  ;;  %v2613_v35 = vpop.eup %1751  ;;  %vm623_vm8 = vcmp.ge.f32.partialorder %v607_v8, 0.0  ;;  %1763 = vpow2.f32 %v914_v14 }
 0x1d3   : > { %v894_v36 = vmul.f32 %v878_v25, %v654_v11  ;;  %v671_v40 = vmul.f32 0.3275911, %v655_v28  ;;  %v879_v41 = vsub.f32 0.0, %v655_v28  ;;  %v2615_v42 = vpop.eup %1753  ;;  %v686_v43 = vadd.f32 1.0, %v670_v24 }
 0x1d4   : > { %v656_v49 = vand.u32 2147483647, %v608_v32  ;;  %v609_v50 = vmul.f32 0.70710677, %v568_v27  ;;  %1765 = vrcp.f32 %v685_v16  ;;  %v2618_v54 = vsel %vm622_vm7, 1.0, %v2968_v47 }
 0x1d5   : > { %3012 = vst [vmem:[#allocation25_spill] sm:$0xff] %v2618_v54  ;;  %v918_v55 = vmul.f32 1.442695, %v894_v36  ;;  %v895_v56 = vmul.f32 %v879_v41, %v655_v28  ;;  %v2621_v33 = vsel %vm623_vm8, 1.0, %v2968_v47  ;;  %v687_v58 = vadd.f32 1.0, %v671_v40 }
 0x1d6   : > { %3013 = vst [vmem:[#allocation26_spill] sm:$0xff] %v2621_v33  ;;  %v672_v59 = vmul.f32 0.3275911, %v656_v49  ;;  %v880_v60 = vsub.f32 0.0, %v656_v49  ;;  %v2623_v61 = vpop.eup %1755  ;;  %1767 = vpow2.f32 %v916_v31  ;;  %vm624_vm9 = vcmp.ge.f32.partialorder %v608_v32, 0.0 }
 0x1d7   : > { %v920_v1 = vmul.f32 1.442695, %v895_v56  ;;  %v657_v7 = vand.u32 2147483647, %v609_v50  ;;  %v2625_v8 = vpop.eup %1757  ;;  %1769 = vrcp.f32 %v686_v43  ;;  %v2629_v16 = vadd.f32 %v2570_v44, %v2520_v22 }
 0x1d8   : > { %v688_v11 = vadd.f32 1.0, %v672_v59  ;;  %v896_v14 = vmul.f32 %v880_v60, %v656_v49  ;;  %v2631_v24 = vpop.eup %1759  ;;  %1771 = vpow2.f32 %v918_v55  ;;  %v2635_v31 = vadd.f32 %v2574_v52, %v2524_v23 }
 0x1d9   : > { %3014 = vst [vmem:[#allocation27_spill] sm:$0xff] %v2629_v16  ;;  %v673_v25 = vmul.f32 0.3275911, %v657_v7  ;;  %v881_v28 = vsub.f32 0.0, %v657_v7  ;;  %v2637_v36 = vpop.eup %1761  ;;  %1773 = vrcp.f32 %v687_v58  ;;  %v2639_v41 = vmul.f32 0.5, %v568_v27 }
 0x1da   : > { %3015 = vst [vmem:[#allocation28_spill] sm:$0xff] %v2635_v31  ;;  %v922_v40 = vmul.f32 1.442695, %v896_v14  ;;  %v610_v43 = vmul.f32 0.70710677, %v2629_v16  ;;  %1775 = vpow2.f32 %v920_v1  ;;  %vm625_vm11 = vcmp.ge.f32.partialorder %v609_v50, 0.0 }
 0x1db   : > { %3016 = vst [vmem:[#allocation29_spill] sm:$0xff] %v2639_v41  ;;  %v689_v44 = vadd.f32 1.0, %v673_v25  ;;  %v897_v49 = vmul.f32 %v881_v28, %v657_v7  ;;  %v611_v55 = vmul.f32 0.70710677, %v2635_v31  ;;  %1777 = vrcp.f32 %v688_v11 }
 0x1dc   : > { %v658_v56 = vand.u32 2147483647, %v610_v43  ;;  %v2646_v52 = vadd.f32 %v2588_v4, %v2520_v22  ;;  %v2650_v27 = vsel %vm624_vm9, 1.0, %v2968_v47  ;;  %1779 = vpow2.f32 %v922_v40  ;;  %v2652_v59 = vpop.eup %1763 }
 0x1dd   : > { %3018 = vst [vmem:[#allocation31_spill] sm:$0xff] %v2650_v27  ;;  %v924_v58 = vmul.f32 1.442695, %v897_v49  ;;  %vm626_vm12 = vcmp.ge.f32.partialorder %v610_v43, 0.0  ;;  %vm627_vm13 = vcmp.ge.f32.partialorder %v611_v55, 0.0  ;;  %v2657_v50 = vsel %vm625_vm11, 1.0, %v2968_v47 }
 0x1de   : > { %3017 = vst [vmem:[#allocation30_spill] sm:$0xff] %v2646_v52  ;;  %v674_v60 = vmul.f32 0.3275911, %v658_v56  ;;  %v882_v1 = vsub.f32 0.0, %v658_v56  ;;  %v659_v7 = vand.u32 2147483647, %v611_v55  ;;  %v2654_v11 = vpop.eup %1765  ;;  %1781 = vrcp.f32 %v689_v44 }
 0x1df   : > { %3019 = vst [vmem:[#allocation32_spill] sm:$0xff] %v2657_v50  ;;  %v2660_v22 = vmul.f32 0.70710677, %v2646_v52  ;;  %v2664_v4 = vadd.f32 %v2594_v10, %v2524_v23  ;;  %v2670_v49 = vsel %vm626_vm12, 1.0, %v2968_v47  ;;  %v2673_v55 = vsel %vm627_vm13, 1.0, %v2968_v47 }
 0x1e0   : > { %v690_v32 = vadd.f32 1.0, %v674_v60  ;;  %v898_v14 = vmul.f32 %v882_v1, %v658_v56  ;;  %v675_v25 = vmul.f32 0.3275911, %v659_v7  ;;  %v883_v28 = vsub.f32 0.0, %v659_v7  ;;  %v2666_v40 = vpop.eup %1767  ;;  %3021 = vst [vmem:[#allocation34_spill] sm:$0xff] %v2670_v49  ;;  %3022 = vst [vmem:[#allocation35_spill] sm:$0xff] %v2673_v55 }
 0x1e1   : > { %3020 = vst [vmem:[#allocation33_spill] sm:$0xff] %v2664_v4  ;;  %v660_v44 = vand.u32 2147483647, %v2660_v22  ;;  %v613_v21 = vmul.f32 0.70710677, %v2664_v4  ;;  %v2677_v19 = vpop.eup %1769  ;;  %1783 = vpow2.f32 %v924_v58  ;;  %v3024_v52 = vmov -1.0  }
 0x1e2   : > { %v926_v23 = vmul.f32 1.442695, %v898_v14  ;;  %v691_v10 = vadd.f32 1.0, %v675_v25  ;;  %v899_v56 = vmul.f32 %v883_v28, %v659_v7  ;;  %v2679_v60 = vpop.eup %1771  ;;  %1785 = vrcp.f32 %v690_v32 }
 0x1e3   : > { %3023 = vst [vmem:[#allocation36_spill] sm:$0xff] %v2679_v60  ;;  %v676_v1 = vmul.f32 0.3275911, %v660_v44  ;;  %v884_v43 = vsub.f32 0.0, %v660_v44  ;;  %vm629_vm14 = vcmp.ge.f32.partialorder %v613_v21, 0.0  ;;  %v2681_v18 = vpop.eup %1773  ;;  %v2691_v7 = vsel %vm615_vm10, 1.0, %v3024_v52 }
 0x1e4   : > { %1787 = vpow2.f32 %v926_v23  ;;  %v928_v47 = vmul.f32 1.442695, %v899_v56  ;;  %v2684_v16 = vsel %vm629_vm14, 1.0, %v3024_v52  ;;  %v661_v4 = vand.u32 2147483647, %v613_v21  ;;  %v2686_v13 = vpop.eup %1775 }
 0x1e5   : > { %3025 = vst [vmem:[#allocation37_spill] sm:$0xff] %v2684_v16  ;;  %1789 = vrcp.f32 %v691_v10  ;;  %v692_v58 = vadd.f32 1.0, %v676_v1  ;;  %v900_v14 = vmul.f32 %v884_v43, %v660_v44  ;;  %v2693_v32 = vpop.eup %1777  ;;  %v727_v23 = vmul.f32 1.0614054, %v2572_v45 }
 0x1e6   : > { %1791 = vpow2.f32 %v928_v47  ;;  %v677_v25 = vmul.f32 0.3275911, %v661_v4  ;;  %v885_v28 = vsub.f32 0.0, %v661_v4  ;;  %v2696_v56 = vpop.eup %1779  ;;  %v726_v10 = vmul.f32 1.0614054, %v2560_v37 }
 0x1e7   : > { %3026 = vst [vmem:[#allocation38_spill] sm:$0xff] %v2696_v56  ;;  %1793 = vrcp.f32 %v692_v58  ;;  %v930_v21 = vmul.f32 1.442695, %v900_v14  ;;  %v729_v44 = vmul.f32 1.0614054, %v2609_v30  ;;  %vm628_vm15 = vcmp.ge.f32.partialorder %v2660_v22, 0.0 }
 0x1e8   : > { %v693_v1 = vadd.f32 1.0, %v677_v25  ;;  %v901_v43 = vmul.f32 %v885_v28, %v661_v4  ;;  %v743_v29 = vadd.f32 -1.4531521, %v727_v23  ;;  %v728_v52 = vmul.f32 1.0614054, %v2582_v62  ;;  %v2701_v16 = vpop.eup %1781 }
 0x1e9   : > { %1795 = vpow2.f32 %v930_v21  ;;  %v742_v47 = vadd.f32 -1.4531521, %v726_v10  ;;  %v745_v31 = vadd.f32 -1.4531521, %v729_v44  ;;  %v731_v49 = vmul.f32 1.0614054, %v2625_v8 }
 0x1ea   : > { %1797 = vrcp.f32 %v693_v1  ;;  %v932_v41 = vmul.f32 1.442695, %v901_v43  ;;  %v759_v58 = vmul.f32 %v2572_v45, %v743_v29  ;;  %v744_v14 = vadd.f32 -1.4531521, %v728_v52 }
 0x1eb   : > { %v758_v17 = vmul.f32 %v2560_v37, %v742_v47  ;;  %v761_v25 = vmul.f32 %v2609_v30, %v745_v31  ;;  %v747_v4 = vadd.f32 -1.4531521, %v731_v49  ;;  %v730_v28 = vmul.f32 1.0614054, %v2615_v42  ;;  %v2708_v23 = vpop.eup %1783 }
 0x1ec   : > { %3027 = vst [vmem:[#allocation39_spill] sm:$0xff] %v2708_v23  ;;  %1799 = vpow2.f32 %v932_v41  ;;  %v775_v21 = vadd.f32 1.4214138, %v759_v58  ;;  %v760_v10 = vmul.f32 %v2582_v62, %v744_v14  ;;  %v733_v44 = vmul.f32 1.0614054, %v2654_v11  ;;  %v2712_v1 = vpop.eup %1785 }
 0x1ed   : > { %v774_v43 = vadd.f32 1.4214138, %v758_v17  ;;  %v777_v29 = vadd.f32 1.4214138, %v761_v25  ;;  %v763_v52 = vmul.f32 %v2625_v8, %v747_v4  ;;  %v746_v47 = vadd.f32 -1.4531521, %v730_v28 }
 0x1ee   : > { %v2715_v26 = vpop.eup %1787  ;;  %v791_v31 = vmul.f32 %v2572_v45, %v775_v21  ;;  %v776_v49 = vadd.f32 1.4214138, %v760_v10  ;;  %v749_v55 = vadd.f32 -1.4531521, %v733_v44  ;;  %v732_v41 = vmul.f32 1.0614054, %v2637_v36 }
 0x1ef   : > { %3028 = vst [vmem:[#allocation40_spill] sm:$0xff] %v2715_v26  ;;  %v2719_v58 = vpop.eup %1789  ;;  %v790_v14 = vmul.f32 %v2560_v37, %v774_v43  ;;  %v793_v27 = vmul.f32 %v2609_v30, %v777_v29  ;;  %v779_v50 = vadd.f32 1.4214138, %v763_v52  ;;  %v762_v17 = vmul.f32 %v2615_v42, %v746_v47 }
 0x1f0   : > { %v2724_v25 = vpop.eup %1791  ;;  %v807_v4 = vadd.f32 -0.28449672, %v791_v31  ;;  %v792_v28 = vmul.f32 %v2582_v62, %v776_v49  ;;  %v765_v21 = vmul.f32 %v2654_v11, %v749_v55  ;;  %v748_v10 = vadd.f32 -1.4531521, %v732_v41 }
 0x1f1   : > { %3029 = vst [vmem:[#allocation41_spill] sm:$0xff] %v2724_v25  ;;  %v2728_v44 = vpop.eup %1793  ;;  %v806_v26 = vadd.f32 -0.28449672, %v790_v14  ;;  %v809_v54 = vadd.f32 -0.28449672, %v793_v27  ;;  %v795_v33 = vmul.f32 %v2625_v8, %v779_v50 }
 0x1f2   : > { %v778_v43 = vadd.f32 1.4214138, %v762_v17  ;;  %v823_v29 = vmul.f32 %v2572_v45, %v807_v4  ;;  %v808_v52 = vadd.f32 -0.28449672, %v792_v28  ;;  %v781_v56 = vadd.f32 1.4214138, %v765_v21 }
 0x1f3   : > { %v764_v47 = vmul.f32 %v2637_v36, %v748_v10  ;;  %v2733_v25 = vpop.eup %1795  ;;  %v822_v31 = vmul.f32 %v2560_v37, %v806_v26  ;;  %v825_v55 = vmul.f32 %v2609_v30, %v809_v54  ;;  %v811_v49 = vadd.f32 -0.28449672, %v795_v33 }
 0x1f4   : > { %3030 = vst [vmem:[#allocation42_spill] sm:$0xff] %v2733_v25  ;;  %v794_v41 = vmul.f32 %v2615_v42, %v778_v43  ;;  %v2738_v14 = vpop.eup %1797  ;;  %v839_v27 = vadd.f32 0.2548296, %v823_v29  ;;  %v824_v50 = vmul.f32 %v2582_v62, %v808_v52  ;;  %v797_v17 = vmul.f32 %v2654_v11, %v781_v56 }
 0x1f5   : > { %v780_v4 = vadd.f32 1.4214138, %v764_v47  ;;  %v838_v28 = vadd.f32 0.2548296, %v822_v31  ;;  %v841_v21 = vadd.f32 0.2548296, %v825_v55  ;;  %v827_v10 = vmul.f32 %v2625_v8, %v811_v49 }
 0x1f6   : > { %v810_v25 = vadd.f32 -0.28449672, %v794_v41  ;;  %v2743_v23 = vpop.eup %1799  ;;  %v855_v26 = vmul.f32 %v2572_v45, %v839_v27  ;;  %v840_v54 = vadd.f32 0.2548296, %v824_v50  ;;  %v813_v33 = vadd.f32 -0.28449672, %v797_v17 }
 0x1f7   : > { %v796_v43 = vmul.f32 %v2637_v36, %v780_v4  ;;  %v854_v29 = vmul.f32 %v2560_v37, %v838_v28  ;;  %v857_v52 = vmul.f32 %v2609_v30, %v841_v21  ;;  %v843_v60 = vadd.f32 0.2548296, %v827_v10 }
 0x1f8   : > { %v826_v56 = vmul.f32 %v2615_v42, %v810_v25  ;;  %v935_v47 = vmul.f32 %v2579_v57, %v855_v26  ;;  %v856_v31 = vmul.f32 %v2582_v62, %v840_v54  ;;  %v829_v55 = vmul.f32 %v2654_v11, %v813_v33 }
 0x1f9   : > { %v812_v49 = vadd.f32 -0.28449672, %v796_v43  ;;  %v934_v45 = vmul.f32 %v2576_v53, %v854_v29  ;;  %v937_v41 = vmul.f32 %v2613_v35, %v857_v52  ;;  %v859_v27 = vmul.f32 %v2625_v8, %v843_v60 }
 0x1fa   : > { %v842_v50 = vadd.f32 0.2548296, %v826_v56  ;;  %v951_v37 = vsub.f32 1.0, %v935_v47  ;;  %v936_v30 = vmul.f32 %v2605_v20, %v856_v31  ;;  %v845_v17 = vadd.f32 0.2548296, %v829_v55 }
 0x1fb   : > { %v828_v25 = vmul.f32 %v2637_v36, %v812_v49  ;;  %v950_v4 = vsub.f32 1.0, %v934_v45  ;;  %v953_v57 = vsub.f32 1.0, %v937_v41  ;;  %v939_v62 = vmul.f32 %v2631_v24, %v859_v27 }
 0x1fc   : > { %v858_v28 = vmul.f32 %v2615_v42, %v842_v50  ;;  %v967_v21 = vmul.f32 %v951_v37, %v2691_v7  ;;  %v952_v53 = vsub.f32 1.0, %v936_v30  ;;  %v861_v35 = vmul.f32 %v2654_v11, %v845_v17 }
 0x1fd   : > { %v844_v10 = vadd.f32 0.2548296, %v828_v25  ;;  %v966_v8 = vmul.f32 %v950_v4, %v2536_v48  ;;  %v969_v60 = vmul.f32 %v953_v57, %v2552_v9  ;;  %v955_v20 = vsub.f32 1.0, %v939_v62 }
 0x1fe   : > { %v938_v26 = vmul.f32 %v2623_v61, %v858_v28  ;;  %v983_v54 = vadd.f32 1.0, %v967_v21  ;;  %v968_v33 = vmul.f32 %v952_v53, %v2548_v5  ;;  %v941_v24 = vmul.f32 %v2666_v40, %v861_v35 }
 0x1ff   : > { %v860_v42 = vmul.f32 %v2637_v36, %v844_v10  ;;  %v982_v43 = vadd.f32 1.0, %v966_v8  ;;  %v985_v7 = vadd.f32 1.0, %v969_v60  ;;  %v971_v29 = vmul.f32 %v955_v20, %v2568_v39 }
 0x200   : > { %v954_v11 = vsub.f32 1.0, %v938_v26  ;;  %v999_v52 = vmul.f32 %v983_v54, %v2538_v51  ;;  %v984_v48 = vadd.f32 1.0, %v968_v33  ;;  %v957_v56 = vsub.f32 1.0, %v941_v24 }
 0x201   : > { %v940_v9 = vmul.f32 %v2652_v59, %v860_v42  ;;  %v998_v61 = vmul.f32 %v982_v43, %v2533_v46  ;;  %v1001_v47 = vmul.f32 %v985_v7, %v2544_v3  ;;  %v987_v5 = vadd.f32 1.0, %v971_v29 }
 0x202   : > { %v970_v40 = vmul.f32 %v954_v11, %v2564_v38  ;;  %1158 = vmatprep.mubr.f32.mxu1 %v999_v52  ;;  %v1000_v36 = vmul.f32 %v984_v48, %v2542_v2  ;;  %v973_v31 = vmul.f32 %v957_v56, %v2598_v12  ;;  %v735_v55 = vmul.f32 1.0614054, %v2681_v18 }
 0x203   : > { %v956_v39 = vsub.f32 1.0, %v940_v9  ;;  %1159 = vmatmul.mubr.f32.vlgmr.msra.gmra.mrb[0].mxu1 %v998_v61  ;;  %v1003_v51 = vmul.f32 %v987_v5, %v2558_v34  ;;  %v734_v59 = vmul.f32 1.0614054, %v2677_v19  ;;  %v737_v46 = vmul.f32 1.0614054, %v2701_v16 }
 0x204   : > { %v986_v49 = vadd.f32 1.0, %v970_v40  ;;  %1164 = vmatprep.mubr.f32.mxu1 %v1001_v47  ;;  %v989_v3 = vadd.f32 1.0, %v973_v31  ;;  %v751_v45 = vadd.f32 -1.4531521, %v735_v55  ;;  %v736_v2 = vmul.f32 1.0614054, %v2693_v32 }
 0x205   : > { %v972_v38 = vmul.f32 %v956_v39, %v2592_v6  ;;  %v750_v41 = vadd.f32 -1.4531521, %v734_v59  ;;  %v753_v27 = vadd.f32 -1.4531521, %v737_v46  ;;  %v739_v50 = vmul.f32 1.0614054, %v2719_v58 }
 0x206   : > { %v1002_v12 = vmul.f32 %v986_v49, %v2555_v15  ;;  %v1005_v34 = vmul.f32 %v989_v3, %v2586_v0  ;;  %v767_v30 = vmul.f32 %v2681_v18, %v751_v45  ;;  %v752_v17 = vadd.f32 -1.4531521, %v736_v2 }
 0x207   : > { %v988_v37 = vadd.f32 1.0, %v972_v38  ;;  %1165 = vmatmul.mubr.f32.gmra.mrb[2].mxu1 %v1000_v36  ;;  %v766_v25 = vmul.f32 %v2677_v19, %v750_v41  ;;  %v769_v6 = vmul.f32 %v2701_v16, %v753_v27  ;;  %v755_v4 = vadd.f32 -1.4531521, %v739_v50 }
 0x208   : > { %v738_v57 = vmul.f32 1.0614054, %v2712_v1  ;;  %1170 = vmatprep.mubr.f32.mxu1 %v1003_v51  ;;  %v783_v62 = vadd.f32 1.4214138, %v767_v30  ;;  %v768_v28 = vmul.f32 %v2693_v32, %v752_v17  ;;  %v741_v0 = vmul.f32 1.0614054, %v2738_v14 }
 0x209   : > { %v1004_v15 = vmul.f32 %v988_v37, %v2584_v63  ;;  %v782_v21 = vadd.f32 1.4214138, %v766_v25  ;;  %v785_v53 = vadd.f32 1.4214138, %v769_v6  ;;  %v771_v35 = vmul.f32 %v2719_v58, %v755_v4 }
 0x20a   : > { %v754_v10 = vadd.f32 -1.4531521, %v738_v57  ;;  %v799_v8 = vmul.f32 %v2681_v18, %v783_v62  ;;  %v784_v60 = vadd.f32 1.4214138, %v768_v28  ;;  %v757_v20 = vadd.f32 -1.4531521, %v741_v0 }
 0x20b   : > { %v740_v26 = vmul.f32 1.0614054, %v2728_v44  ;;  %1171 = vmatmul.mubr.f32.gmra.mrb[4].mxu1 %v1002_v12  ;;  %v798_v54 = vmul.f32 %v2677_v19, %v782_v21  ;;  %v801_v63 = vmul.f32 %v2701_v16, %v785_v53  ;;  %v787_v33 = vadd.f32 1.4214138, %v771_v35  ;;  %v3033_v0 = vld [vmem:[#allocation38_spill] sm:$0xff] }
 0x20c   : > { %v770_v24 = vmul.f32 %v2712_v1, %v754_v10  ;;  %1176 = vmatprep.mubr.f32.mxu1 %v1005_v34  ;;  %v815_v42 = vadd.f32 -0.28449672, %v799_v8  ;;  %v800_v43 = vmul.f32 %v2693_v32, %v784_v60  ;;  %v773_v7 = vmul.f32 %v2738_v14, %v757_v20  ;;  %v3034_v10 = vld [vmem:[#allocation41_spill] sm:$0xff]  ;;  %v3035_v20 = vld [vmem:[#allocation26_spill] sm:$0xff] }
 0x20d   : > { %v756_v29 = vadd.f32 -1.4531521, %v740_v26  ;;  %v814_v11 = vadd.f32 -0.28449672, %v798_v54  ;;  %v817_v52 = vadd.f32 -0.28449672, %v801_v63  ;;  %v803_v48 = vmul.f32 %v2719_v58, %v787_v33 }
 0x20e   : > { %v786_v56 = vadd.f32 1.4214138, %v770_v24  ;;  %v831_v9 = vmul.f32 %v2681_v18, %v815_v42  ;;  %v816_v61 = vadd.f32 -0.28449672, %v800_v43  ;;  %v789_v47 = vadd.f32 1.4214138, %v773_v7 }
 0x20f   : > { %v772_v5 = vmul.f32 %v2728_v44, %v756_v29  ;;  %1177 = vmatmul.mubr.f32.gmra.mrb[6].mxu1 %v1004_v15  ;;  %v830_v40 = vmul.f32 %v2677_v19, %v814_v11  ;;  %v833_v36 = vmul.f32 %v2701_v16, %v817_v52  ;;  %v819_v31 = vadd.f32 -0.28449672, %v803_v48  ;;  %v3032_v15 = vld [vmem:[#allocation39_spill] sm:$0xff]  ;;  %v3037_v42 = vld [vmem:[#allocation32_spill] sm:$0xff] }
 0x210   : > { %v802_v39 = vmul.f32 %v2712_v1, %v786_v56  ;;  %v847_v55 = vadd.f32 0.2548296, %v831_v9  ;;  %v832_v51 = vmul.f32 %v2693_v32, %v816_v61  ;;  %v805_v49 = vmul.f32 %v2738_v14, %v789_v47  ;;  %v3038_v29 = vld [vmem:[#allocation40_spill] sm:$0xff]  ;;  %v3039_v48 = vld [vmem:[#allocation31_spill] sm:$0xff] }
 0x211   : > { %v788_v59 = vadd.f32 1.4214138, %v772_v5  ;;  %v846_v46 = vadd.f32 0.2548296, %v830_v40  ;;  %v849_v3 = vadd.f32 0.2548296, %v833_v36  ;;  %v835_v38 = vmul.f32 %v2719_v58, %v819_v31 }
 0x212   : > { %v818_v45 = vadd.f32 -0.28449672, %v802_v39  ;;  %v863_v2 = vmul.f32 %v2681_v18, %v847_v55  ;;  %v848_v12 = vadd.f32 0.2548296, %v832_v51  ;;  %v821_v41 = vadd.f32 -0.28449672, %v805_v49 }
 0x213   : > { %v804_v27 = vmul.f32 %v2728_v44, %v788_v59  ;;  %v862_v50 = vmul.f32 %v2677_v19, %v846_v46  ;;  %v865_v34 = vmul.f32 %v2701_v16, %v849_v3  ;;  %v851_v37 = vadd.f32 0.2548296, %v835_v38  ;;  %v3031_v18 = vld [vmem:[#allocation36_spill] sm:$0xff]  ;;  %v3040_v5 = vld [vmem:[#allocation35_spill] sm:$0xff]  ;;  %v3042_v51 = vld [vmem:[#allocation42_spill] sm:$0xff] }
 0x214   : > { %v834_v30 = vmul.f32 %v2712_v1, %v818_v45  ;;  %v943_v17 = vmul.f32 %v2686_v13, %v863_v2  ;;  %v864_v25 = vmul.f32 %v2693_v32, %v848_v12  ;;  %v837_v6 = vmul.f32 %v2738_v14, %v821_v41  ;;  %v3041_v36 = vld [vmem:[#allocation24_spill] sm:$0xff]  ;;  %v3043_v59 = vld [vmem:[#allocation23_spill] sm:$0xff]  ;;  %v3044_v3 = vld [vmem:[#allocation29_spill] sm:$0xff] }
 0x215   : > { %v820_v4 = vadd.f32 -0.28449672, %v804_v27  ;;  %v942_v57 = vmul.f32 %v3031_v18, %v862_v50  ;;  %v945_v62 = vmul.f32 %v3032_v15, %v865_v34  ;;  %v867_v19 = vmul.f32 %v2719_v58, %v851_v37  ;;  %v3036_v58 = vld [vmem:[#allocation25_spill] sm:$0xff]  ;;  %v3045_v2 = vld [vmem:[#allocation34_spill] sm:$0xff]  ;;  %v3046_v12 = vld [vmem:[#allocation28_spill] sm:$0xff] }
 0x216   : > { %v850_v28 = vadd.f32 0.2548296, %v834_v30  ;;  %v959_v16 = vsub.f32 1.0, %v943_v17  ;;  %v944_v21 = vmul.f32 %v3033_v0, %v864_v25  ;;  %v853_v53 = vadd.f32 0.2548296, %v837_v6  ;;  %v3047_v41 = vld [vmem:[#allocation37_spill] sm:$0xff] }
 0x217   : > { %v836_v13 = vmul.f32 %v2728_v44, %v820_v4  ;;  %v958_v35 = vsub.f32 1.0, %v942_v57  ;;  %v961_v32 = vsub.f32 1.0, %v945_v62  ;;  %v947_v8 = vmul.f32 %v3034_v10, %v867_v19  ;;  %v3048_v34 = vld [vmem:[#allocation22_spill] sm:$0xff]  ;;  %v3050_v15 = vld [vmem:[#allocation33_spill] sm:$0xff]  ;;  %v3051_v19 = vld [vmem:[#allocation27_spill] sm:$0xff] }
 0x218   : > { %v866_v60 = vmul.f32 %v2712_v1, %v850_v28  ;;  %v975_v26 = vmul.f32 %v959_v16, %v3035_v20  ;;  %v960_v54 = vsub.f32 1.0, %v944_v21  ;;  %v869_v63 = vmul.f32 %v2738_v14, %v853_v53  ;;  %v3052_v53 = vld [vmem:[#allocation30_spill] sm:$0xff] }
 0x219   : > { %v852_v33 = vadd.f32 0.2548296, %v836_v13  ;;  %v974_v24 = vmul.f32 %v958_v35, %v3036_v58  ;;  %v977_v43 = vmul.f32 %v961_v32, %v3037_v42  ;;  %v963_v7 = vsub.f32 1.0, %v947_v8  ;;  %v1014_v35 = vld [vmem:[#allocation2] sm:$0xff]  ;;  %v1015_v32 = vld [vmem:[#allocation2 + $0x8] sm:$0xff] }
 0x21a   : > { %v946_v11 = vmul.f32 %v3038_v29, %v866_v60  ;;  %v991_v52 = vadd.f32 1.0, %v975_v26  ;;  %v976_v56 = vmul.f32 %v960_v54, %v3039_v48  ;;  %v949_v9 = vmul.f32 %v2743_v23, %v869_v63  ;;  %v1016_v26 = vld [vmem:[#allocation2 + $0x10] sm:$0xff]  ;;  %v1017_v54 = vld [vmem:[#allocation2 + $0x18] sm:$0xff]  ;;  %v1018_v42 = vld [vmem:[#allocation2 + $0x20] sm:$0xff] }
 0x21b   : > { %v868_v1 = vmul.f32 %v2728_v44, %v852_v33  ;;  %v990_v61 = vadd.f32 1.0, %v974_v24  ;;  %v993_v47 = vadd.f32 1.0, %v977_v43  ;;  %v979_v40 = vmul.f32 %v963_v7, %v3040_v5  ;;  %v1019_v43 = vld [vmem:[#allocation2 + $0x28] sm:$0xff]  ;;  %v1020_v48 = vld [vmem:[#allocation2 + $0x30] sm:$0xff]  ;;  %v1022_v5 = vld [vmem:[#allocation2 + $0x40] sm:$0xff] }
 0x21c   : > { %v962_v14 = vsub.f32 1.0, %v946_v11  ;;  %v1007_v31 = vmul.f32 %v991_v52, %v3041_v36  ;;  %v992_v39 = vadd.f32 1.0, %v976_v56  ;;  %v965_v55 = vsub.f32 1.0, %v949_v9  ;;  %v1021_v56 = vld [vmem:[#allocation2 + $0x38] sm:$0xff] }
 0x21d   : > { %v948_v49 = vmul.f32 %v3042_v51, %v868_v1  ;;  %v1006_v46 = vmul.f32 %v990_v61, %v3043_v59  ;;  %v1009_v38 = vmul.f32 %v993_v47, %v3044_v3  ;;  %v995_v45 = vadd.f32 1.0, %v979_v40  ;;  %v1023_v40 = vld [vmem:[#allocation2 + $0x48] sm:$0xff]  ;;  %v1025_v51 = vld [vmem:[#allocation2 + $0x58] sm:$0xff] }
 0x21e   : > { %v978_v23 = vmul.f32 %v962_v14, %v3045_v2  ;;  %v595_v44 = vmul.f32 0.5, %v3046_v12  ;;  %1182 = vmatprep.mubr.f32.mxu1 %v1007_v31  ;;  %v981_v27 = vmul.f32 %v965_v55, %v3047_v41  ;;  %v592_v37 = vmul.f32 0.5, %v3048_v34  ;;  %v1024_v55 = vld [vmem:[#allocation2 + $0x50] sm:$0xff] }
 0x21f   : > { %v964_v50 = vsub.f32 1.0, %v948_v49  ;;  %1183 = vmatmul.mubr.f32.gmra.mrb[8].mxu1 %v1006_v46  ;;  %v3049_v30 = vmov -1.0   ;;  %v597_v62 = vmul.f32 0.5, %v3050_v15  ;;  %v594_v28 = vmul.f32 0.5, %v3051_v19  ;;  %v1028_v41 = vld [vmem:[#allocation2 + $0x70] sm:$0xff] }
 0x220   : > { %v644_v17 = vsel %vm628_vm15, 1.0, %v3049_v30  ;;  %1188 = vmatprep.mubr.f32.mxu1 %v1009_v38  ;;  %v1011_v25 = vmul.f32 %v995_v45, %v595_v44  ;;  %v997_v6 = vadd.f32 1.0, %v981_v27  ;;  %v1008_v4 = vmul.f32 %v992_v39, %v592_v37  ;;  %v1026_v38 = vld [vmem:[#allocation2 + $0x60] sm:$0xff]  ;;  %v1027_v45 = vld [vmem:[#allocation2 + $0x68] sm:$0xff]  ;;  %v1029_v27 = vld [vmem:[#allocation2 + $0x78] sm:$0xff] }
 0x221   : > { %v994_v18 = vadd.f32 1.0, %v978_v23  ;;  %v980_v57 = vmul.f32 %v964_v50, %v644_v17  ;;  %v596_v13 = vmul.f32 0.5, %v3052_v53 }
 0x222   : > { %v1013_v16 = vmul.f32 %v997_v6, %v597_v62 }
 0x223   : > { %1189 = vmatmul.mubr.f32.gmra.mrb[10].mxu1 %v1008_v4  ;;  %v1010_v0 = vmul.f32 %v994_v18, %v594_v28  ;;  %v996_v21 = vadd.f32 1.0, %v980_v57  ;;  %v3054_v4 = vld [vmem:[#allocation21_spill] sm:$0xff] (!%p1476_p2) }
 0x224   : > { %1194 = vmatprep.mubr.f32.mxu1 %v1011_v25  ;;  %v1259_v25 = vld [vmem:[%s3053_s16] sm:$0x3] (!%p1476_p2)  ;;  %v3055_v18 = vsub.s32 (!%p1476_p2), 0, %v3054_v4  ;;  %v3056_v15 = vsub.s32 (!%p1476_p2), 1, %v3054_v4 }
 0x225   : > { %v1012_v22 = vmul.f32 %v996_v21, %v596_v13 }
 0x226   : > { %v1264_v57 = vrot.slane (!%p1476_p2), %v1259_v25, %v3055_v18  ;;  %v1268_v62 = vrot.slane (!%p1476_p2), %v1259_v25, %v3056_v15 }
 0x227   : > { %1195 = vmatmul.mubr.f32.gmra.mrb[12].mxu1 %v1010_v0 }
 0x228   : > { %1200 = vmatprep.mubr.f32.mxu1 %v1013_v16 }
 0x22b   : > { %1201 = vmatmul.mubr.f32.gmra.mrb[14].mxu1 %v1012_v22 }
 0x2d6   : > { %v1160_v10 = vpop.f32.mrb[0].mxu1 }
 0x2d7   : > { %v1207_v8 = vadd.f32 %v1160_v10, %v1014_v35  ;;  %v1162_v60 = vpop.f32.mrb[1].mxu1 }
 0x2d8   : > { %v1208_v20 = vadd.f32 %v1162_v60, %v1015_v32 }
 0x2d9   : > { %1223 = vst [vmem:[#allocation2] sm:$0xff] %v1207_v8 }
 0x2da   : > { %1224 = vst [vmem:[#allocation2 + $0x8] sm:$0xff] %v1208_v20  ;;  %v1166_v63 = vpop.f32.mrb[2].mxu1 }
 0x2db   : > { %v1209_v33 = vadd.f32 %v1166_v63, %v1016_v26  ;;  %v1168_v58 = vpop.f32.mrb[3].mxu1 }
 0x2dc   : > { %v1210_v24 = vadd.f32 %v1168_v58, %v1017_v54 }
 0x2dd   : > { %1225 = vst [vmem:[#allocation2 + $0x10] sm:$0xff] %v1209_v33 }
 0x2de   : > { %1226 = vst [vmem:[#allocation2 + $0x18] sm:$0xff] %v1210_v24  ;;  %v1172_v7 = vpop.f32.mrb[4].mxu1 }
 0x2df   : > { %v1211_v29 = vadd.f32 %v1172_v7, %v1018_v42  ;;  %v1174_v11 = vpop.f32.mrb[5].mxu1 }
 0x2e0   : > { %v1212_v52 = vadd.f32 %v1174_v11, %v1019_v43  ;;  %v1243_v17 = vld [vmem:[#allocation2] sm:$0xff] (!%p1476_p2) }
 0x2e1   : > { %1227 = vst [vmem:[#allocation2 + $0x20] sm:$0xff] %v1211_v29  ;;  %v1244_v6 = vld [vmem:[#allocation2 + $0x8] sm:$0xff] (!%p1476_p2)  ;;  %v1271_v13 = vadd.f32 (!%p1476_p2), %v1264_v57, %v1243_v17 }
 0x2e2   : > { %1228 = vst [vmem:[#allocation2 + $0x28] sm:$0xff] %v1212_v52  ;;  %v1178_v9 = vpop.f32.mrb[6].mxu1  ;;  %v1272_v22 = vadd.f32 (!%p1476_p2), %v1268_v62, %v1244_v6 }
 0x2e3   : > { %v1213_v1 = vadd.f32 %v1178_v9, %v1020_v48  ;;  %v1180_v61 = vpop.f32.mrb[7].mxu1  ;;  %1287 = vst [vmem:[%s2362_s20] sm:$0xff] (!%p1476_p2), %v1271_v13 }
 0x2e4   : > { %v1214_v47 = vadd.f32 %v1180_v61, %v1021_v56  ;;  %v1245_v19 = vld [vmem:[#allocation2 + $0x10] sm:$0xff] (!%p1476_p2)  ;;  %1288 = vst [vmem:[%s2362_s20 + $0x8] sm:$0xff] (!%p1476_p2), %v1272_v22 }
 0x2e5   : > { %1229 = vst [vmem:[#allocation2 + $0x30] sm:$0xff] %v1213_v1  ;;  %v1246_v28 = vld [vmem:[#allocation2 + $0x18] sm:$0xff] (!%p1476_p2)  ;;  %v1273_v35 = vadd.f32 (!%p1476_p2), %v1264_v57, %v1245_v19 }
 0x2e6   : > { %1230 = vst [vmem:[#allocation2 + $0x38] sm:$0xff] %v1214_v47  ;;  %v1274_v32 = vadd.f32 (!%p1476_p2), %v1268_v62, %v1246_v28 }
 0x2e7   : > { %1289 = vst [vmem:[%s2362_s20 + $0x10] sm:$0xff] (!%p1476_p2), %v1273_v35 }
 0x2e8   : > { %v1247_v16 = vld [vmem:[#allocation2 + $0x20] sm:$0xff] (!%p1476_p2)  ;;  %1290 = vst [vmem:[%s2362_s20 + $0x18] sm:$0xff] (!%p1476_p2), %v1274_v32 }
 0x2e9   : > { %v1248_v0 = vld [vmem:[#allocation2 + $0x28] sm:$0xff] (!%p1476_p2)  ;;  %v1275_v20 = vadd.f32 (!%p1476_p2), %v1264_v57, %v1247_v16 }
 0x2ea   : > { %v1276_v26 = vadd.f32 (!%p1476_p2), %v1268_v62, %v1248_v0 }
 0x2eb   : > { %1291 = vst [vmem:[%s2362_s20 + $0x20] sm:$0xff] (!%p1476_p2), %v1275_v20 }
 0x2ec   : > { %v1249_v21 = vld [vmem:[#allocation2 + $0x30] sm:$0xff] (!%p1476_p2)  ;;  %1292 = vst [vmem:[%s2362_s20 + $0x28] sm:$0xff] (!%p1476_p2), %v1276_v26 }
 0x2ed   : > { %v1250_v53 = vld [vmem:[#allocation2 + $0x38] sm:$0xff] (!%p1476_p2)  ;;  %v1277_v54 = vadd.f32 (!%p1476_p2), %v1264_v57, %v1249_v21 }
 0x2ee   : > { %v1278_v63 = vadd.f32 (!%p1476_p2), %v1268_v62, %v1250_v53 }
 0x2ef   : > { %1293 = vst [vmem:[%s2362_s20 + $0x30] sm:$0xff] (!%p1476_p2), %v1277_v54 }
 0x2f0   : > { %1294 = vst [vmem:[%s2362_s20 + $0x38] sm:$0xff] (!%p1476_p2), %v1278_v63 }
 0x2f2   : > { %v1184_v14 = vpop.f32.mrb[8].mxu1 }
 0x2f3   : > { %v1215_v36 = vadd.f32 %v1184_v14, %v1022_v5  ;;  %v1186_v31 = vpop.f32.mrb[9].mxu1 }
 0x2f4   : > { %v1216_v39 = vadd.f32 %v1186_v31, %v1023_v40 }
 0x2f5   : > { %1231 = vst [vmem:[#allocation2 + $0x40] sm:$0xff] %v1215_v36 }
 0x2f6   : > { %1232 = vst [vmem:[#allocation2 + $0x48] sm:$0xff] %v1216_v39  ;;  %v1190_v49 = vpop.f32.mrb[10].mxu1 }
 0x2f7   : > { %v1217_v59 = vadd.f32 %v1190_v49, %v1024_v55  ;;  %v1192_v46 = vpop.f32.mrb[11].mxu1 }
 0x2f8   : > { %v1218_v3 = vadd.f32 %v1192_v46, %v1025_v51 }
 0x2f9   : > { %1233 = vst [vmem:[#allocation2 + $0x50] sm:$0xff] %v1217_v59 }
 0x2fa   : > { %1234 = vst [vmem:[#allocation2 + $0x58] sm:$0xff] %v1218_v3  ;;  %v1196_v2 = vpop.f32.mrb[12].mxu1 }
 0x2fb   : > { %v1219_v23 = vadd.f32 %v1196_v2, %v1026_v38  ;;  %v1198_v12 = vpop.f32.mrb[13].mxu1 }
 0x2fc   : > { %v1220_v44 = vadd.f32 %v1198_v12, %v1027_v45  ;;  %1242 = sbr.rel (%p1476_p2) target bundleno = 781 (0x30d), region = 60  ;;  %v1251_v10 = vld [vmem:[#allocation2 + $0x40] sm:$0xff] (!%p1476_p2) }
 0x2fd   : > { %1235 = vst [vmem:[#allocation2 + $0x60] sm:$0xff] %v1219_v23  ;;  %v1252_v8 = vld [vmem:[#allocation2 + $0x48] sm:$0xff] (!%p1476_p2)  ;;  %v1279_v42 = vadd.f32 (!%p1476_p2), %v1264_v57, %v1251_v10 }
 0x2fe   : > { %1236 = vst [vmem:[#allocation2 + $0x68] sm:$0xff] %v1220_v44  ;;  %v1202_v50 = vpop.f32.mrb[14].mxu1  ;;  %v1280_v43 = vadd.f32 (!%p1476_p2), %v1268_v62, %v1252_v8 }
 0x2ff   : > { %v1221_v34 = vadd.f32 %v1202_v50, %v1028_v41  ;;  %v1204_v37 = vpop.f32.mrb[15].mxu1  ;;  %1295 = vst [vmem:[%s2362_s20 + $0x40] sm:$0xff] (!%p1476_p2), %v1279_v42 }
 0x300   : > { %v1222_v30 = vadd.f32 %v1204_v37, %v1029_v27  ;;  %v1253_v60 = vld [vmem:[#allocation2 + $0x50] sm:$0xff] (!%p1476_p2)  ;;  %1296 = vst [vmem:[%s2362_s20 + $0x48] sm:$0xff] (!%p1476_p2), %v1280_v43 }
 0x301   : > { %1237 = vst [vmem:[#allocation2 + $0x70] sm:$0xff] %v1221_v34  ;;  %v1254_v33 = vld [vmem:[#allocation2 + $0x58] sm:$0xff] (!%p1476_p2)  ;;  %v1281_v7 = vadd.f32 (!%p1476_p2), %v1264_v57, %v1253_v60 }
 0x302   : > { %1238 = vst [vmem:[#allocation2 + $0x78] sm:$0xff] %v1222_v30  ;;  %v1282_v29 = vadd.f32 (!%p1476_p2), %v1268_v62, %v1254_v33 }
 0x303   : > { %1297 = vst [vmem:[%s2362_s20 + $0x50] sm:$0xff] %v1281_v7 }
 0x304   : > { %v1255_v58 = vld [vmem:[#allocation2 + $0x60] sm:$0xff]  ;;  %1298 = vst [vmem:[%s2362_s20 + $0x58] sm:$0xff] %v1282_v29 }
 0x305   : > { %v1256_v24 = vld [vmem:[#allocation2 + $0x68] sm:$0xff]  ;;  %v1283_v48 = vadd.f32 %v1264_v57, %v1255_v58 }
 0x306   : > { %v1284_v56 = vadd.f32 %v1268_v62, %v1256_v24 }
 0x307   : > { %1299 = vst [vmem:[%s2362_s20 + $0x60] sm:$0xff] %v1283_v48 }
 0x308   : > { %v1257_v11 = vld [vmem:[#allocation2 + $0x70] sm:$0xff]  ;;  %1300 = vst [vmem:[%s2362_s20 + $0x68] sm:$0xff] %v1284_v56 }
 0x309   : > { %v1258_v52 = vld [vmem:[#allocation2 + $0x78] sm:$0xff]  ;;  %v1285_v9 = vadd.f32 %v1264_v57, %v1257_v11 }
 0x30a   : > { %v1286_v1 = vadd.f32 %v1268_v62, %v1258_v52 }
 0x30b   : > { %1301 = vst [vmem:[%s2362_s20 + $0x70] sm:$0xff] %v1285_v9 }
 0x30c   : > { %1302 = vst [vmem:[%s2362_s20 + $0x78] sm:$0xff] %v1286_v1 }
 0x30d PF: > { %s3057_s24 = sld [smem:[#allocation15_spill]]  ;;  %s1318_s8 = sshll.u32 %s2362_s20, 4  ;;  %s2879_s8 = int_to_ptr.vmem [resolvable:$true] %s1318_s8 }
 0x30e   : > { %s3058_s6 = sld [smem:[#allocation45_spill]]  ;;  %s1304_s23 = scalar_lea.sflag [#allocation5], %s2335_s1 }
 0x30f   : > { %s1891_s4 = scalar_lea.vmem %s2879_s8, 2048  ;;  %p3059_p11 = scmp.ne.s32.totalorder %s2996_s14, 0 }
 0x310   : > { %p1892_p13 = scmp.ne.s32.totalorder %s2879_s8, %s1891_s4  ;;  %s2027_s15 = smov [#allocation9]  }
 0x311   : > { %s1895_s30 = sshll.u32 %s2027_s15, 4  ;;  %s1896_s30 = int_to_ptr.vmem [resolvable:$false] %s1895_s30 }
 0x312   : > { %p1893_p6 = pnand %p1892_p13, %p3059_p11  ;;  %s1897_s13 = scalar_lea.vmem %s1896_s30, 4096 }
 0x313   : > { %s1489_s27 = sshll.u32 %s3057_s24, 11  ;;  %p1898_p1 = scmp.lt.s32.totalorder %s2879_s8, %s1896_s30 }
 0x314   : > { %s2876_s7 = scalar_lea.hbm %s3058_s6, %s1489_s27  ;;  %p1894_p5 = pneg %p1893_p6 }
 0x315   : > { %p1899_p0 = scmp.lt.s32.totalorder %s1897_s13, %s1891_s4 }
 0x317   : > { %p1900_p9 = por %p1899_p0, %p1898_p1 }
 0x319   : > { %p1901_p12 = pnand %p1900_p9, %p1894_p5 }
 0x31b   : > { %1904 = shalt.err (!%p1901_p12)
}
 0x31c   : > { %s1905_s12 = scalar_lea.hbm %s2876_s7, 2048  ;;  %s1909_s17 = scalar_lea.hbm %s3058_s6, 4096 }
 0x31d   : > { %p1906_p3 = scmp.ne.s32.totalorder %s2876_s7, %s1905_s12  ;;  %p1910_p8 = scmp.lt.u32.totalorder %s2876_s7, %s3058_s6 }
 0x31e   : > { %p1911_p10 = scmp.lt.u32.totalorder %s1909_s17, %s1905_s12  ;;  %p1913_p13 = scmp.lt.u32.totalorder %s1905_s12, %s2876_s7 }
 0x31f   : > { %p1907_p4 = pnand %p1906_p3, %p3059_p11 }
 0x320   : > { %p1912_p2 = por %p1911_p10, %p1910_p8 }
 0x321   : > { %p1908_p7 = pneg %p1907_p4 }
 0x322   : > { %p1914_p6 = por %p1913_p13, %p1912_p2 }
 0x324   : > { %p1915_p5 = pnand %p1914_p6, %p1908_p7 }
 0x326   : > { %1918 = shalt.err (!%p1915_p5)
}
 0x327   : > { %s2028_s18 = smov 256   ;;  %s2029_s16 = smov 16  }
 0x328   : > { %1624 = dma.vmem_to_hbm [thread:$0]  (%p3059_p11), %s2879_s8, 2048, %s2876_s7, %s1304_s23, %s2028_s18, %s2028_s18, %s2029_s16  }
 0x329 PF: > { %p1641_p1 = scmp.ge.s32.totalorder %s2017_s28, 2  ;;  %s1333_s24 = sand.u32 1, %s1989_s21  }
 0x32a   : > { %p3060_p0 = scmp.ne.s32.totalorder %s2998_s5, 0  ;;  %s1334_s27 = scalar_lea.sflag [#allocation5], %s1333_s24 }
 0x32c   : > { %p1637_p9 = pnand %p1641_p1, %p3060_p0 }
 0x32e   : > { %1972 = dma.done.wait (!%p1637_p9), %s1334_s27, 2048  }
 0x32f   : > { %1974 = vsyncadd (!%p1637_p9), %s1334_s27, 4294965248  ;;  %s24_s28 = sadd.s32 1, %s2017_s28   ;;  %s3061_s11 = sld [smem:[#allocation13_spill]] }
 0x330   : > { %p21_p12 = scmp.ge.s32.totalorder %s24_s28, 6   ;;  %s3062_s20 = sld [smem:[#allocation18_spill]] }
 0x331   : > { %s3063_s14 = sld [smem:[#allocation14_spill]]  ;;  %s3064_s23 = sld [smem:[#allocation20_spill]] }
 0x332   : > { %s3065_s25 = sld [smem:[#allocation16_spill]]  ;;  %s3066_s1 = sld [smem:[#allocation17_spill]] }
 0x333   : > { %s3067_s27 = sld [smem:[#allocation19_spill]]  ;;  %s3068_s18 = smov %s1981_s19 }
 0x334   : > { %s3070_s21 = smov %s1993_s22  ;;  %s3072_s24 = smov %s2009_s26 }
 0x335   : > { %s3069_s19 = smov %s3061_s11  ;;  %23 = sbr.rel (!%p21_p12) target bundleno = 15 (0xf), region = 120 }
 0x337   : > { %s3071_s22 = smov %s3063_s14 }
 0x338   : > { %s3073_s26 = smov %s3066_s1 }
 0x33c   :  { %1339 = vsyncpa [#allocation4], 1 }
 0x33d   :  { %1341 = vsyncpa [#allocation4 + $0x1], 1 }
 0x33e   :  { %1342 = vsyncpa [#allocation7], 1 }
 0x33f   :  { %1344 = vsyncpa [#allocation7 + $0x1], 1 }
 0x340   :  { %1345 = vsyncpa [#allocation5], 1 }
 0x341   :  { %1347 = vsyncpa [#allocation5 + $0x1], 1 }

</bundles_post_ra>
